<compile_context>
chip_gen: v5e
topology: v5e:2x2
jax: 0.10.0
libtpu: 0.0.40
codegen_flags: <defaults>
</compile_context>

<pallas_src>
import jax
import jax.numpy as jnp
from jax.experimental import pallas as pl
from jax.experimental.pallas import tpu as pltpu

FEATURE_DIM = 1024
NUM_CLASSES = 2
LANE = 128  # lane-dense padded class dimension (avoids masked vst.msk stores)


def _round_up(x, m):
    return ((x + m - 1) // m) * m


def _fused_gap_linear_kernel(x_ref, wf_ref, bf_ref, out_ref, acc_ref):
    """Grid = (B_pad // TB, HW_pad // S_TILE); the spatial axis is the reduction.

    x_ref:   [TB, S_TILE, C]  bf16  (NHWC-style: channels on lanes)
    wf_ref:  [C, 128]         f32   fused (W_enc @ W_cls) / HW, lane-padded
    bf_ref:  [1, 128]         f32   fused bias, lane-padded
    out_ref: [TB, 128]        f32   lane-dense logits (cols >= NUM_CLASSES have 0 weight)
    acc_ref: [TB, C]          f32   running spatial sum (VMEM scratch)
    """
    s = pl.program_id(1)

    @pl.when(s == 0)
    def _():
        acc_ref[...] = jnp.zeros_like(acc_ref)

    # Partial global-average-pool: sum over this spatial tile, accumulate in f32.
    # (The 1/HW scale is folded into wf, so no per-element multiply here.)
    acc_ref[...] += jnp.sum(x_ref[...].astype(jnp.float32), axis=1)

    @pl.when(s == pl.num_programs(1) - 1)
    def _():
        out_ref[...] = (
            jnp.dot(acc_ref[...], wf_ref[...], preferred_element_type=jnp.float32)
            + bf_ref[...]
        )


def convnext_classifier(x_nchw, w_enc, b_enc, w_cls, b_cls):
    """NCHW input -> [B, NUM_CLASSES] logits via one tiled, pipelined pallas_call."""
    B, C, H, W = x_nchw.shape
    HW = H * W

    # ---- fold affine encoder head + classifier + 1/HW GAP scale (exact) ------
    w_fused = (w_enc @ w_cls) / float(HW)                         # [C, NUM_CLASSES]
    b_fused = b_enc.reshape(1, -1) @ w_cls + b_cls.reshape(1, -1)  # [1, NUM_CLASSES]
    w_fused_p = jnp.zeros((C, LANE), jnp.float32).at[:, :NUM_CLASSES].set(w_fused)
    b_fused_p = jnp.zeros((1, LANE), jnp.float32).at[:, :NUM_CLASSES].set(b_fused)

    # ---- tiling ---------------------------------------------------------------
    # Batch tile: multiple of 8 (f32 sublane). Spatial tile: multiple of 128.
    # Double-buffered x tile (incl. lane padding) stays a few MiB -> safe on
    # v7x's 64 MiB VMEM as well as v5e/v6e.
    TB = min(32, _round_up(B, 8))
    S_TILE = min(512, _round_up(HW, 128))
    B_pad = _round_up(B, TB)
    HW_pad = _round_up(HW, S_TILE)

    # NHWC-style layout (channels on lanes, spatial on sublanes); bf16 halves the
    # HBM traffic on the streaming-bound input.  Zero padding is a no-op for the
    # spatial sum (true 1/HW is folded into the weights).
    x3 = jnp.transpose(x_nchw, (0, 2, 3, 1)).reshape(B, HW, C).astype(jnp.bfloat16)
    x3 = jnp.pad(x3, ((0, B_pad - B), (0, HW_pad - HW), (0, 0)))

    grid = (B_pad // TB, HW_pad // S_TILE)

    out_padded = pl.pallas_call(
        _fused_gap_linear_kernel,
        out_shape=jax.ShapeDtypeStruct((B_pad, LANE), jnp.float32),
        grid_spec=pltpu.PrefetchScalarGridSpec(
            num_scalar_prefetch=0,
            grid=grid,
            in_specs=[
                pl.BlockSpec((TB, S_TILE, C), lambda b, s: (b, s, 0)),
                pl.BlockSpec((C, LANE), lambda b, s: (0, 0)),   # weights DMA'd once,
                pl.BlockSpec((1, LANE), lambda b, s: (0, 0)),   # stay VMEM-resident
            ],
            out_specs=pl.BlockSpec((TB, LANE), lambda b, s: (b, 0)),
            scratch_shapes=[pltpu.VMEM((TB, C), jnp.float32)],
        ),
        compiler_params=pltpu.CompilerParams(
            dimension_semantics=("parallel", "arbitrary"),  # batch across v7x TCs
            vmem_limit_bytes=32 * 1024 * 1024,
        ),
    )(x3, w_fused_p, b_fused_p)

    return out_padded[:B, :NUM_CLASSES]


if __name__ == "__main__":
    key = jax.random.PRNGKey(0)
    kx, k1, k2, k3, k4 = jax.random.split(key, 5)

    B, C, H, W = 2, 4, 32, 32
    x = jax.random.normal(kx, (B, C, H, W), dtype=jnp.float32)

    # Deterministic parameter init (PyTorch nn.Linear-style uniform bounds).
    enc_bound = 1.0 / (C ** 0.5)
    w_enc = jax.random.uniform(k1, (C, FEATURE_DIM), jnp.float32, -enc_bound, enc_bound)
    b_enc = jax.random.uniform(k2, (1, FEATURE_DIM), jnp.float32, -enc_bound, enc_bound)

    cls_bound = 1.0 / (FEATURE_DIM ** 0.5)
    w_cls = jax.random.uniform(k3, (FEATURE_DIM, NUM_CLASSES), jnp.float32,
                               -cls_bound, cls_bound)
    b_cls = jax.random.uniform(k4, (1, NUM_CLASSES), jnp.float32,
                               -cls_bound, cls_bound)

    logits = convnext_classifier(x, w_enc, b_enc, w_cls, b_cls)
    jax.block_until_ready(logits)

    # Pure-JAX reference (same bf16 rounding on x as the kernel's streaming path).
    x_bf = x.astype(jnp.bfloat16).astype(jnp.float32)
    pooled = x_bf.reshape(B, C, -1).mean(-1)                   # [B, C]
    ref = (pooled @ w_enc + b_enc) @ w_cls + b_cls             # [B, NUM_CLASSES]

    assert logits.shape == (B, NUM_CLASSES)
    assert jnp.allclose(logits, ref, atol=1e-3, rtol=1e-3), "kernel/reference mismatch"

    print("KERNEL_OK")
</pallas_src>

<mosaic_0001>
module attributes {stable_mosaic.version = 11 : i64} {
  func.func @_fused_gap_linear_kernel(%arg0: i32, %arg1: i32, %arg2: memref<8x512x4xbf16, #tpu.memory_space<vmem>>, %arg3: memref<4x128xf32, #tpu.memory_space<vmem>>, %arg4: memref<1x128xf32, #tpu.memory_space<vmem>>, %arg5: memref<8x128xf32, #tpu.memory_space<vmem>>, %arg6: memref<8x4xf32, #tpu.memory_space<vmem>>) attributes {dimension_semantics = [#tpu.dimension_semantics<parallel>, #tpu.dimension_semantics<arbitrary>], iteration_bounds = array<i64: 1, 2>, scalar_prefetch = 0 : i64, scratch_operands = 1 : i64, tpu.core_type = #tpu.core_type<tc>, window_params = [{transform_indices = @transform_0, window_bounds = array<i64: 8, 512, 4>}, {pipeline_mode = #tpu.pipeline_mode<synchronous>, transform_indices = @transform_1, window_bounds = array<i64: 4, 128>}, {pipeline_mode = #tpu.pipeline_mode<synchronous>, transform_indices = @transform_2, window_bounds = array<i64: 1, 128>}, {transform_indices = @transform_3, window_bounds = array<i64: 8, 128>}]} {
    %c0_i32 = arith.constant 0 : i32
    %0 = arith.cmpi eq, %arg1, %c0_i32 : i32
    %1 = arith.extui %0 : i1 to i32
    %c0_i32_0 = arith.constant 0 : i32
    %2 = arith.cmpi ne, %1, %c0_i32_0 : i32
    scf.if %2 {
      %cst_8 = arith.constant 0.000000e+00 : f32
      %12 = vector.broadcast %cst_8 : f32 to vector<8x4xf32>
      %c0_9 = arith.constant 0 : index
      %c0_10 = arith.constant 0 : index
      %13 = vector.load %arg6[%c0_9, %c0_10] : memref<8x4xf32, #tpu.memory_space<vmem>>, vector<8x4xf32>
      tpu.vector_store %arg6[%c0_9, %c0_10], %12 {strides = array<i32>} : memref<8x4xf32, #tpu.memory_space<vmem>>, vector<8x4xf32>,
    } else {
    }
    %c0 = arith.constant 0 : index
    %c0_1 = arith.constant 0 : index
    %3 = vector.load %arg6[%c0, %c0_1] : memref<8x4xf32, #tpu.memory_space<vmem>>, vector<8x4xf32>
    %c0_2 = arith.constant 0 : index
    %c0_3 = arith.constant 0 : index
    %c0_4 = arith.constant 0 : index
    %4 = vector.load %arg2[%c0_2, %c0_3, %c0_4] : memref<8x512x4xbf16, #tpu.memory_space<vmem>>, vector<8x512x4xbf16>
    %5 = arith.extf %4 : vector<8x512x4xbf16> to vector<8x512x4xf32>
    %cst = arith.constant dense<0.000000e+00> : vector<8x4xf32>
    %6 = vector.multi_reduction <add>, %5, %cst [1] : vector<8x512x4xf32> to vector<8x4xf32>
    %7 = arith.addf %3, %6 : vector<8x4xf32>
    %c0_5 = arith.constant 0 : index
    %c0_6 = arith.constant 0 : index
    %8 = vector.load %arg6[%c0_5, %c0_6] : memref<8x4xf32, #tpu.memory_space<vmem>>, vector<8x4xf32>
    tpu.vector_store %arg6[%c0_5, %c0_6], %7 {strides = array<i32>} : memref<8x4xf32, #tpu.memory_space<vmem>>, vector<8x4xf32>,
    %c1_i32 = arith.constant 1 : i32
    %9 = arith.cmpi eq, %arg1, %c1_i32 : i32
    %10 = arith.extui %9 : i1 to i32
    %c0_i32_7 = arith.constant 0 : i32
    %11 = arith.cmpi ne, %10, %c0_i32_7 : i32
    scf.if %11 {
      %c0_8 = arith.constant 0 : index
      %c0_9 = arith.constant 0 : index
      %12 = vector.load %arg6[%c0_8, %c0_9] : memref<8x4xf32, #tpu.memory_space<vmem>>, vector<8x4xf32>
      %c0_10 = arith.constant 0 : index
      %c0_11 = arith.constant 0 : index
      %13 = vector.load %arg3[%c0_10, %c0_11] : memref<4x128xf32, #tpu.memory_space<vmem>>, vector<4x128xf32>
      %cst_12 = arith.constant dense<0.000000e+00> : vector<8x128xf32>
      %14 = tpu.matmul %12, %13, %cst_12 {dimension_numbers = #tpu.dot_dimension_numbers<[1], [0], [0], [1], [0, 0, 1, 1], [], []>} : vector<8x4xf32>, vector<4x128xf32>, vector<8x128xf32> -> vector<8x128xf32>
      %c0_13 = arith.constant 0 : index
      %c0_14 = arith.constant 0 : index
      %15 = vector.load %arg4[%c0_13, %c0_14] : memref<1x128xf32, #tpu.memory_space<vmem>>, vector<1x128xf32>
      %16 = vector.broadcast %15 : vector<1x128xf32> to vector<8x128xf32>
      %17 = arith.addf %14, %16 : vector<8x128xf32>
      %c0_15 = arith.constant 0 : index
      %c0_16 = arith.constant 0 : index
      %18 = vector.load %arg5[%c0_15, %c0_16] : memref<8x128xf32, #tpu.memory_space<vmem>>, vector<8x128xf32>
      tpu.vector_store %arg5[%c0_15, %c0_16], %17 {strides = array<i32>} : memref<8x128xf32, #tpu.memory_space<vmem>>, vector<8x128xf32>,
    } else {
    }
    return
  }
  func.func @transform_0(%arg0: i32, %arg1: i32) -> (i32, i32, i32) {
    %c0_i32 = arith.constant 0 : i32
    %c0_i32_0 = arith.constant 0 : i32
    return %arg0, %arg1, %c0_i32 : i32, i32, i32
  }
  func.func @transform_1(%arg0: i32, %arg1: i32) -> (i32, i32) {
    %c0_i32 = arith.constant 0 : i32
    %c0_i32_0 = arith.constant 0 : i32
    %c0_i32_1 = arith.constant 0 : i32
    return %c0_i32, %c0_i32_0 : i32, i32
  }
  func.func @transform_2(%arg0: i32, %arg1: i32) -> (i32, i32) {
    %c0_i32 = arith.constant 0 : i32
    %c0_i32_0 = arith.constant 0 : i32
    %c0_i32_1 = arith.constant 0 : i32
    return %c0_i32, %c0_i32_0 : i32, i32
  }
  func.func @transform_3(%arg0: i32, %arg1: i32) -> (i32, i32) {
    %c0_i32 = arith.constant 0 : i32
    %c0_i32_0 = arith.constant 0 : i32
    return %arg0, %c0_i32 : i32, i32
  }
}

</mosaic_0001>

<bundles_post_ra>
// kernel: tpu_custom_call.1
= control target key start
LH: loop header
LB: loop body
LE: loop exit
PB: predicated region body
PF: predicated region fallthrough
CT: control target
= control target key end

     0   :  { %8 = vsyncpa [#allocation5], 0  ;;  %s8019_s12 = smov 0   ;;  %s8021_s13 = smov 0   ;;  %s11688_s0 = inlined_call_operand.vmem [shape: bf16[8,1024,4], index: 0, kind: input, shape index: {}]   ;;  %s11689_s1 = inlined_call_operand.vmem [shape: f32[4,128], index: 1, kind: input, shape index: {}]   ;;  %s11690_s2 = inlined_call_operand.vmem [shape: f32[1,128], index: 2, kind: input, shape index: {}]   ;;  %s11691_s3 = inlined_call_operand.hbm [shape: f32[8,128], index: 3, kind: output, shape index: {}]  }
   0x1   :  { %s8023_s14 = smov 0   ;;  %s8025_s15 = smov 0  }
   0x2   :  { %s8027_s16 = smov 0  }
   0x3 LB: > { %s6580_s17 = sadd.s32 4294967295, %s7995_s16   ;;  %s23_s18 = sadd.s32 1, %s7991_s15  ;;  %s7995_s16 = sphi %s8027_s16, %s14_s16   ;;  %s7991_s15 = sphi %s8025_s15, %s13021_s15   ;;  %s7987_s14 = sphi %s8023_s14, %s13020_s14   ;;  %s7983_s13 = sphi %s8021_s13, %s13019_s13   ;;  %s7979_s12 = sphi %s8019_s12, %s13018_s12  }
   0x4   : > { %p24_p0 = scmp.ge.s32.totalorder %s23_s18, 2  ;;  %p42_p1 = scmp.ne.s32.totalorder %s7983_s13, %s7979_s12 }
   0x5   : > { %p43_p2 = scmp.eq.s32.totalorder %s7995_s16, 0  ;;  %s35_s20 = sadd.s32 1, %s7983_s13 }
   0x6   : > { %s13023_s18 = smov (%p24_p0, %s23_s18), 0  ;;  %p6582_p5 = scmp.ge.s32.totalorder %s7995_s16, 2 }
   0x7   : > { %p44_p3 = por %p43_p2, %p42_p1  ;;  %s31_s19 = ssub.s32 %s7991_s15, %s13023_s18 }
   0x8   : > { %p33_p4 = scmp.eq.s32.totalorder %s31_s19, 0  ;;  %142 = sbr.rel (%p6582_p5) target bundleno = 273 (0x111), region = 24 }
   0xa   : > { %s8055_s21 = scalar_select %p33_p4, %s7983_s13, %s35_s20  }
   0xd   : > { %145 = sbr.rel (!%p44_p3) target bundleno = 273 (0x111), region = 28  ;;  %s147_s22 = sand.u32 (%p44_p3), 1, %s7983_s13  }
   0xe   : > { %s6596_s23 = sshll.u32 (%p44_p3), %s7991_s15, 8  ;;  %s6583_s24 = sshll.u32 (%p44_p3), %s147_s22, 11 }
   0xf   : > { %s8063_s27 = scalar_lea.vmem (%p44_p3), %s11688_s0, %s6596_s23  ;;  %s8068_s28 = scalar_lea.vmem (%p44_p3), [#allocation3], %s6583_s24 }
  0x10   : > { %v172_v0 = vld [vmem:[%s8063_s27] sm:$0xff] (%p44_p3)   ;;  %v176_v1 = vld [vmem:[%s8063_s27 + $0x8] sm:$0xff] (%p44_p3)   ;;  %v180_v2 = vld [vmem:[%s8063_s27 + $0x10] sm:$0xff] (%p44_p3)  }
  0x11   : > { %173 = vst [vmem:[%s8068_s28] sm:$0xff] (%p44_p3), %v172_v0   ;;  %v184_v3 = vld [vmem:[%s8063_s27 + $0x18] sm:$0xff] (%p44_p3)   ;;  %v188_v4 = vld [vmem:[%s8063_s27 + $0x20] sm:$0xff] (%p44_p3)   ;;  %v192_v5 = vld [vmem:[%s8063_s27 + $0x28] sm:$0xff] (%p44_p3)  }
  0x12   : > { %177 = vst [vmem:[%s8068_s28 + $0x8] sm:$0xff] %v176_v1   ;;  %v196_v6 = vld [vmem:[%s8063_s27 + $0x30] sm:$0xff]   ;;  %v200_v7 = vld [vmem:[%s8063_s27 + $0x38] sm:$0xff]   ;;  %v204_v8 = vld [vmem:[%s8063_s27 + $0x40] sm:$0xff]  }
  0x13   : > { %181 = vst [vmem:[%s8068_s28 + $0x10] sm:$0xff] %v180_v2   ;;  %v208_v9 = vld [vmem:[%s8063_s27 + $0x48] sm:$0xff]   ;;  %v212_v10 = vld [vmem:[%s8063_s27 + $0x50] sm:$0xff]   ;;  %v216_v11 = vld [vmem:[%s8063_s27 + $0x58] sm:$0xff]  }
  0x14   : > { %185 = vst [vmem:[%s8068_s28 + $0x18] sm:$0xff] %v184_v3   ;;  %v220_v12 = vld [vmem:[%s8063_s27 + $0x60] sm:$0xff]   ;;  %v224_v13 = vld [vmem:[%s8063_s27 + $0x68] sm:$0xff]   ;;  %v228_v14 = vld [vmem:[%s8063_s27 + $0x70] sm:$0xff]  }
  0x15   : > { %189 = vst [vmem:[%s8068_s28 + $0x20] sm:$0xff] %v188_v4   ;;  %v232_v15 = vld [vmem:[%s8063_s27 + $0x78] sm:$0xff]   ;;  %v236_v16 = vld [vmem:[%s8063_s27 + $0x80] sm:$0xff]   ;;  %v240_v17 = vld [vmem:[%s8063_s27 + $0x88] sm:$0xff]  }
  0x16   : > { %193 = vst [vmem:[%s8068_s28 + $0x28] sm:$0xff] %v192_v5   ;;  %v244_v18 = vld [vmem:[%s8063_s27 + $0x90] sm:$0xff]   ;;  %v248_v19 = vld [vmem:[%s8063_s27 + $0x98] sm:$0xff]   ;;  %v252_v20 = vld [vmem:[%s8063_s27 + $0xa0] sm:$0xff]  }
  0x17   : > { %197 = vst [vmem:[%s8068_s28 + $0x30] sm:$0xff] %v196_v6   ;;  %v256_v21 = vld [vmem:[%s8063_s27 + $0xa8] sm:$0xff]   ;;  %v260_v22 = vld [vmem:[%s8063_s27 + $0xb0] sm:$0xff]   ;;  %v264_v23 = vld [vmem:[%s8063_s27 + $0xb8] sm:$0xff]  }
  0x18   : > { %201 = vst [vmem:[%s8068_s28 + $0x38] sm:$0xff] %v200_v7   ;;  %v268_v24 = vld [vmem:[%s8063_s27 + $0xc0] sm:$0xff]   ;;  %v272_v25 = vld [vmem:[%s8063_s27 + $0xc8] sm:$0xff]   ;;  %v276_v26 = vld [vmem:[%s8063_s27 + $0xd0] sm:$0xff]  }
  0x19   : > { %205 = vst [vmem:[%s8068_s28 + $0x40] sm:$0xff] %v204_v8   ;;  %v280_v27 = vld [vmem:[%s8063_s27 + $0xd8] sm:$0xff]   ;;  %v284_v28 = vld [vmem:[%s8063_s27 + $0xe0] sm:$0xff]   ;;  %v288_v29 = vld [vmem:[%s8063_s27 + $0xe8] sm:$0xff]  }
  0x1a   : > { %209 = vst [vmem:[%s8068_s28 + $0x48] sm:$0xff] %v208_v9   ;;  %v292_v30 = vld [vmem:[%s8063_s27 + $0xf0] sm:$0xff]   ;;  %v296_v31 = vld [vmem:[%s8063_s27 + $0xf8] sm:$0xff]   ;;  %v300_v32 = vld [vmem:[%s8063_s27 + $0x200] sm:$0xff]  }
  0x1b   : > { %213 = vst [vmem:[%s8068_s28 + $0x50] sm:$0xff] %v212_v10   ;;  %v304_v33 = vld [vmem:[%s8063_s27 + $0x208] sm:$0xff]   ;;  %v308_v34 = vld [vmem:[%s8063_s27 + $0x210] sm:$0xff]   ;;  %v312_v35 = vld [vmem:[%s8063_s27 + $0x218] sm:$0xff]  }
  0x1c   : > { %217 = vst [vmem:[%s8068_s28 + $0x58] sm:$0xff] %v216_v11   ;;  %v316_v36 = vld [vmem:[%s8063_s27 + $0x220] sm:$0xff]   ;;  %v320_v37 = vld [vmem:[%s8063_s27 + $0x228] sm:$0xff]   ;;  %v324_v38 = vld [vmem:[%s8063_s27 + $0x230] sm:$0xff]  }
  0x1d   : > { %221 = vst [vmem:[%s8068_s28 + $0x60] sm:$0xff] %v220_v12   ;;  %v328_v39 = vld [vmem:[%s8063_s27 + $0x238] sm:$0xff]   ;;  %v332_v40 = vld [vmem:[%s8063_s27 + $0x240] sm:$0xff]   ;;  %v336_v41 = vld [vmem:[%s8063_s27 + $0x248] sm:$0xff]  }
  0x1e   : > { %225 = vst [vmem:[%s8068_s28 + $0x68] sm:$0xff] %v224_v13   ;;  %v340_v42 = vld [vmem:[%s8063_s27 + $0x250] sm:$0xff]   ;;  %v344_v43 = vld [vmem:[%s8063_s27 + $0x258] sm:$0xff]   ;;  %v348_v44 = vld [vmem:[%s8063_s27 + $0x260] sm:$0xff]  }
  0x1f   : > { %229 = vst [vmem:[%s8068_s28 + $0x70] sm:$0xff] %v228_v14   ;;  %v352_v45 = vld [vmem:[%s8063_s27 + $0x268] sm:$0xff]   ;;  %v356_v46 = vld [vmem:[%s8063_s27 + $0x270] sm:$0xff]   ;;  %v360_v47 = vld [vmem:[%s8063_s27 + $0x278] sm:$0xff]  }
  0x20   : > { %233 = vst [vmem:[%s8068_s28 + $0x78] sm:$0xff] %v232_v15   ;;  %v364_v48 = vld [vmem:[%s8063_s27 + $0x280] sm:$0xff]   ;;  %v368_v49 = vld [vmem:[%s8063_s27 + $0x288] sm:$0xff]   ;;  %v372_v50 = vld [vmem:[%s8063_s27 + $0x290] sm:$0xff]  }
  0x21   : > { %237 = vst [vmem:[%s8068_s28 + $0x80] sm:$0xff] %v236_v16   ;;  %v376_v51 = vld [vmem:[%s8063_s27 + $0x298] sm:$0xff]   ;;  %v380_v52 = vld [vmem:[%s8063_s27 + $0x2a0] sm:$0xff]   ;;  %v384_v53 = vld [vmem:[%s8063_s27 + $0x2a8] sm:$0xff]  }
  0x22   : > { %241 = vst [vmem:[%s8068_s28 + $0x88] sm:$0xff] %v240_v17   ;;  %v388_v54 = vld [vmem:[%s8063_s27 + $0x2b0] sm:$0xff]   ;;  %v392_v55 = vld [vmem:[%s8063_s27 + $0x2b8] sm:$0xff]   ;;  %v396_v56 = vld [vmem:[%s8063_s27 + $0x2c0] sm:$0xff]  }
  0x23   : > { %245 = vst [vmem:[%s8068_s28 + $0x90] sm:$0xff] %v244_v18   ;;  %v400_v57 = vld [vmem:[%s8063_s27 + $0x2c8] sm:$0xff]   ;;  %v404_v58 = vld [vmem:[%s8063_s27 + $0x2d0] sm:$0xff]   ;;  %v408_v59 = vld [vmem:[%s8063_s27 + $0x2d8] sm:$0xff]  }
  0x24   : > { %249 = vst [vmem:[%s8068_s28 + $0x98] sm:$0xff] %v248_v19   ;;  %v412_v60 = vld [vmem:[%s8063_s27 + $0x2e0] sm:$0xff]   ;;  %v416_v61 = vld [vmem:[%s8063_s27 + $0x2e8] sm:$0xff]   ;;  %v420_v62 = vld [vmem:[%s8063_s27 + $0x2f0] sm:$0xff]  }
  0x25   : > { %253 = vst [vmem:[%s8068_s28 + $0xa0] sm:$0xff] %v252_v20   ;;  %v424_v63 = vld [vmem:[%s8063_s27 + $0x2f8] sm:$0xff]   ;;  %v428_v0 = vld [vmem:[%s8063_s27 + $0x400] sm:$0xff]   ;;  %v432_v1 = vld [vmem:[%s8063_s27 + $0x408] sm:$0xff]  }
  0x26   : > { %257 = vst [vmem:[%s8068_s28 + $0xa8] sm:$0xff] %v256_v21   ;;  %v436_v2 = vld [vmem:[%s8063_s27 + $0x410] sm:$0xff]   ;;  %v440_v3 = vld [vmem:[%s8063_s27 + $0x418] sm:$0xff]   ;;  %v444_v4 = vld [vmem:[%s8063_s27 + $0x420] sm:$0xff]  }
  0x27   : > { %261 = vst [vmem:[%s8068_s28 + $0xb0] sm:$0xff] %v260_v22   ;;  %v448_v5 = vld [vmem:[%s8063_s27 + $0x428] sm:$0xff]   ;;  %v452_v6 = vld [vmem:[%s8063_s27 + $0x430] sm:$0xff]   ;;  %v456_v7 = vld [vmem:[%s8063_s27 + $0x438] sm:$0xff]  }
  0x28   : > { %265 = vst [vmem:[%s8068_s28 + $0xb8] sm:$0xff] %v264_v23   ;;  %v460_v8 = vld [vmem:[%s8063_s27 + $0x440] sm:$0xff]   ;;  %v464_v9 = vld [vmem:[%s8063_s27 + $0x448] sm:$0xff]   ;;  %v468_v10 = vld [vmem:[%s8063_s27 + $0x450] sm:$0xff]  }
  0x29   : > { %269 = vst [vmem:[%s8068_s28 + $0xc0] sm:$0xff] %v268_v24   ;;  %v472_v11 = vld [vmem:[%s8063_s27 + $0x458] sm:$0xff]   ;;  %v476_v12 = vld [vmem:[%s8063_s27 + $0x460] sm:$0xff]   ;;  %v480_v13 = vld [vmem:[%s8063_s27 + $0x468] sm:$0xff]  }
  0x2a   : > { %273 = vst [vmem:[%s8068_s28 + $0xc8] sm:$0xff] %v272_v25   ;;  %v484_v14 = vld [vmem:[%s8063_s27 + $0x470] sm:$0xff]   ;;  %v488_v15 = vld [vmem:[%s8063_s27 + $0x478] sm:$0xff]   ;;  %v492_v16 = vld [vmem:[%s8063_s27 + $0x480] sm:$0xff]  }
  0x2b   : > { %277 = vst [vmem:[%s8068_s28 + $0xd0] sm:$0xff] %v276_v26   ;;  %v496_v17 = vld [vmem:[%s8063_s27 + $0x488] sm:$0xff]   ;;  %v500_v18 = vld [vmem:[%s8063_s27 + $0x490] sm:$0xff]   ;;  %v504_v19 = vld [vmem:[%s8063_s27 + $0x498] sm:$0xff]  }
  0x2c   : > { %281 = vst [vmem:[%s8068_s28 + $0xd8] sm:$0xff] %v280_v27   ;;  %v508_v20 = vld [vmem:[%s8063_s27 + $0x4a0] sm:$0xff]   ;;  %v512_v21 = vld [vmem:[%s8063_s27 + $0x4a8] sm:$0xff]   ;;  %v516_v22 = vld [vmem:[%s8063_s27 + $0x4b0] sm:$0xff]  }
  0x2d   : > { %285 = vst [vmem:[%s8068_s28 + $0xe0] sm:$0xff] %v284_v28   ;;  %v520_v23 = vld [vmem:[%s8063_s27 + $0x4b8] sm:$0xff]   ;;  %v524_v24 = vld [vmem:[%s8063_s27 + $0x4c0] sm:$0xff]   ;;  %v528_v25 = vld [vmem:[%s8063_s27 + $0x4c8] sm:$0xff]  }
  0x2e   : > { %289 = vst [vmem:[%s8068_s28 + $0xe8] sm:$0xff] %v288_v29   ;;  %v532_v26 = vld [vmem:[%s8063_s27 + $0x4d0] sm:$0xff]   ;;  %v536_v27 = vld [vmem:[%s8063_s27 + $0x4d8] sm:$0xff]   ;;  %v540_v28 = vld [vmem:[%s8063_s27 + $0x4e0] sm:$0xff]  }
  0x2f   : > { %293 = vst [vmem:[%s8068_s28 + $0xf0] sm:$0xff] %v292_v30   ;;  %v544_v29 = vld [vmem:[%s8063_s27 + $0x4e8] sm:$0xff]   ;;  %v548_v30 = vld [vmem:[%s8063_s27 + $0x4f0] sm:$0xff]  }
  0x30   : > { %297 = vst [vmem:[%s8068_s28 + $0xf8] sm:$0xff] %v296_v31   ;;  %v552_v31 = vld [vmem:[%s8063_s27 + $0x4f8] sm:$0xff]  }
  0x31   : > { %301 = vst [vmem:[%s8068_s28 + $0x100] sm:$0xff] %v300_v32   ;;  %v556_v32 = vld [vmem:[%s8063_s27 + $0x600] sm:$0xff]  }
  0x32   : > { %305 = vst [vmem:[%s8068_s28 + $0x108] sm:$0xff] %v304_v33   ;;  %v560_v33 = vld [vmem:[%s8063_s27 + $0x608] sm:$0xff]  }
  0x33   : > { %309 = vst [vmem:[%s8068_s28 + $0x110] sm:$0xff] %v308_v34   ;;  %v564_v34 = vld [vmem:[%s8063_s27 + $0x610] sm:$0xff]  }
  0x34   : > { %313 = vst [vmem:[%s8068_s28 + $0x118] sm:$0xff] %v312_v35   ;;  %v568_v35 = vld [vmem:[%s8063_s27 + $0x618] sm:$0xff]  }
  0x35   : > { %317 = vst [vmem:[%s8068_s28 + $0x120] sm:$0xff] %v316_v36   ;;  %v572_v36 = vld [vmem:[%s8063_s27 + $0x620] sm:$0xff]  }
  0x36   : > { %321 = vst [vmem:[%s8068_s28 + $0x128] sm:$0xff] %v320_v37   ;;  %v576_v37 = vld [vmem:[%s8063_s27 + $0x628] sm:$0xff]  }
  0x37   : > { %325 = vst [vmem:[%s8068_s28 + $0x130] sm:$0xff] %v324_v38   ;;  %v580_v38 = vld [vmem:[%s8063_s27 + $0x630] sm:$0xff]  }
  0x38   : > { %329 = vst [vmem:[%s8068_s28 + $0x138] sm:$0xff] %v328_v39   ;;  %v584_v39 = vld [vmem:[%s8063_s27 + $0x638] sm:$0xff]  }
  0x39   : > { %333 = vst [vmem:[%s8068_s28 + $0x140] sm:$0xff] %v332_v40   ;;  %v588_v40 = vld [vmem:[%s8063_s27 + $0x640] sm:$0xff]  }
  0x3a   : > { %337 = vst [vmem:[%s8068_s28 + $0x148] sm:$0xff] %v336_v41   ;;  %v592_v41 = vld [vmem:[%s8063_s27 + $0x648] sm:$0xff]  }
  0x3b   : > { %341 = vst [vmem:[%s8068_s28 + $0x150] sm:$0xff] %v340_v42   ;;  %v596_v42 = vld [vmem:[%s8063_s27 + $0x650] sm:$0xff]  }
  0x3c   : > { %345 = vst [vmem:[%s8068_s28 + $0x158] sm:$0xff] %v344_v43   ;;  %v600_v43 = vld [vmem:[%s8063_s27 + $0x658] sm:$0xff]  }
  0x3d   : > { %349 = vst [vmem:[%s8068_s28 + $0x160] sm:$0xff] %v348_v44   ;;  %v604_v44 = vld [vmem:[%s8063_s27 + $0x660] sm:$0xff]  }
  0x3e   : > { %353 = vst [vmem:[%s8068_s28 + $0x168] sm:$0xff] %v352_v45   ;;  %v608_v45 = vld [vmem:[%s8063_s27 + $0x668] sm:$0xff]  }
  0x3f   : > { %357 = vst [vmem:[%s8068_s28 + $0x170] sm:$0xff] %v356_v46   ;;  %v612_v46 = vld [vmem:[%s8063_s27 + $0x670] sm:$0xff]  }
  0x40   : > { %361 = vst [vmem:[%s8068_s28 + $0x178] sm:$0xff] %v360_v47   ;;  %v616_v47 = vld [vmem:[%s8063_s27 + $0x678] sm:$0xff]  }
  0x41   : > { %365 = vst [vmem:[%s8068_s28 + $0x180] sm:$0xff] %v364_v48   ;;  %v620_v48 = vld [vmem:[%s8063_s27 + $0x680] sm:$0xff]  }
  0x42   : > { %369 = vst [vmem:[%s8068_s28 + $0x188] sm:$0xff] %v368_v49   ;;  %v624_v49 = vld [vmem:[%s8063_s27 + $0x688] sm:$0xff]  }
  0x43   : > { %373 = vst [vmem:[%s8068_s28 + $0x190] sm:$0xff] %v372_v50   ;;  %v628_v50 = vld [vmem:[%s8063_s27 + $0x690] sm:$0xff]  }
  0x44   : > { %377 = vst [vmem:[%s8068_s28 + $0x198] sm:$0xff] %v376_v51   ;;  %v632_v51 = vld [vmem:[%s8063_s27 + $0x698] sm:$0xff]  }
  0x45   : > { %381 = vst [vmem:[%s8068_s28 + $0x1a0] sm:$0xff] %v380_v52   ;;  %v636_v52 = vld [vmem:[%s8063_s27 + $0x6a0] sm:$0xff]  }
  0x46   : > { %385 = vst [vmem:[%s8068_s28 + $0x1a8] sm:$0xff] %v384_v53   ;;  %v640_v53 = vld [vmem:[%s8063_s27 + $0x6a8] sm:$0xff]  }
  0x47   : > { %389 = vst [vmem:[%s8068_s28 + $0x1b0] sm:$0xff] %v388_v54   ;;  %v644_v54 = vld [vmem:[%s8063_s27 + $0x6b0] sm:$0xff]  }
  0x48   : > { %393 = vst [vmem:[%s8068_s28 + $0x1b8] sm:$0xff] %v392_v55   ;;  %v648_v55 = vld [vmem:[%s8063_s27 + $0x6b8] sm:$0xff]  }
  0x49   : > { %397 = vst [vmem:[%s8068_s28 + $0x1c0] sm:$0xff] %v396_v56   ;;  %v652_v56 = vld [vmem:[%s8063_s27 + $0x6c0] sm:$0xff]  }
  0x4a   : > { %401 = vst [vmem:[%s8068_s28 + $0x1c8] sm:$0xff] %v400_v57   ;;  %v656_v57 = vld [vmem:[%s8063_s27 + $0x6c8] sm:$0xff]  }
  0x4b   : > { %405 = vst [vmem:[%s8068_s28 + $0x1d0] sm:$0xff] %v404_v58   ;;  %v660_v58 = vld [vmem:[%s8063_s27 + $0x6d0] sm:$0xff]  }
  0x4c   : > { %409 = vst [vmem:[%s8068_s28 + $0x1d8] sm:$0xff] %v408_v59   ;;  %v664_v59 = vld [vmem:[%s8063_s27 + $0x6d8] sm:$0xff]  }
  0x4d   : > { %413 = vst [vmem:[%s8068_s28 + $0x1e0] sm:$0xff] %v412_v60   ;;  %v668_v60 = vld [vmem:[%s8063_s27 + $0x6e0] sm:$0xff]  }
  0x4e   : > { %417 = vst [vmem:[%s8068_s28 + $0x1e8] sm:$0xff] %v416_v61   ;;  %v672_v61 = vld [vmem:[%s8063_s27 + $0x6e8] sm:$0xff]  }
  0x4f   : > { %421 = vst [vmem:[%s8068_s28 + $0x1f0] sm:$0xff] %v420_v62   ;;  %v676_v62 = vld [vmem:[%s8063_s27 + $0x6f0] sm:$0xff]  }
  0x50   : > { %425 = vst [vmem:[%s8068_s28 + $0x1f8] sm:$0xff] %v424_v63   ;;  %v680_v63 = vld [vmem:[%s8063_s27 + $0x6f8] sm:$0xff]  }
  0x51   : > { %429 = vst [vmem:[%s8068_s28 + $0x200] sm:$0xff] %v428_v0   ;;  %v684_v0 = vld [vmem:[%s8063_s27 + $0x800] sm:$0xff]  }
  0x52   : > { %433 = vst [vmem:[%s8068_s28 + $0x208] sm:$0xff] %v432_v1   ;;  %v688_v1 = vld [vmem:[%s8063_s27 + $0x808] sm:$0xff]  }
  0x53   : > { %437 = vst [vmem:[%s8068_s28 + $0x210] sm:$0xff] %v436_v2   ;;  %v692_v2 = vld [vmem:[%s8063_s27 + $0x810] sm:$0xff]  }
  0x54   : > { %441 = vst [vmem:[%s8068_s28 + $0x218] sm:$0xff] %v440_v3   ;;  %v696_v3 = vld [vmem:[%s8063_s27 + $0x818] sm:$0xff]  }
  0x55   : > { %445 = vst [vmem:[%s8068_s28 + $0x220] sm:$0xff] %v444_v4   ;;  %v700_v4 = vld [vmem:[%s8063_s27 + $0x820] sm:$0xff]  }
  0x56   : > { %449 = vst [vmem:[%s8068_s28 + $0x228] sm:$0xff] %v448_v5   ;;  %v704_v5 = vld [vmem:[%s8063_s27 + $0x828] sm:$0xff]  }
  0x57   : > { %453 = vst [vmem:[%s8068_s28 + $0x230] sm:$0xff] %v452_v6   ;;  %v708_v6 = vld [vmem:[%s8063_s27 + $0x830] sm:$0xff]  }
  0x58   : > { %457 = vst [vmem:[%s8068_s28 + $0x238] sm:$0xff] %v456_v7   ;;  %v712_v7 = vld [vmem:[%s8063_s27 + $0x838] sm:$0xff]  }
  0x59   : > { %461 = vst [vmem:[%s8068_s28 + $0x240] sm:$0xff] %v460_v8   ;;  %v716_v8 = vld [vmem:[%s8063_s27 + $0x840] sm:$0xff]  }
  0x5a   : > { %465 = vst [vmem:[%s8068_s28 + $0x248] sm:$0xff] %v464_v9   ;;  %v720_v9 = vld [vmem:[%s8063_s27 + $0x848] sm:$0xff]  }
  0x5b   : > { %469 = vst [vmem:[%s8068_s28 + $0x250] sm:$0xff] %v468_v10   ;;  %v724_v10 = vld [vmem:[%s8063_s27 + $0x850] sm:$0xff]  }
  0x5c   : > { %473 = vst [vmem:[%s8068_s28 + $0x258] sm:$0xff] %v472_v11   ;;  %v728_v11 = vld [vmem:[%s8063_s27 + $0x858] sm:$0xff]  }
  0x5d   : > { %477 = vst [vmem:[%s8068_s28 + $0x260] sm:$0xff] %v476_v12   ;;  %v732_v12 = vld [vmem:[%s8063_s27 + $0x860] sm:$0xff]  }
  0x5e   : > { %481 = vst [vmem:[%s8068_s28 + $0x268] sm:$0xff] %v480_v13   ;;  %v736_v13 = vld [vmem:[%s8063_s27 + $0x868] sm:$0xff]  }
  0x5f   : > { %485 = vst [vmem:[%s8068_s28 + $0x270] sm:$0xff] %v484_v14   ;;  %v740_v14 = vld [vmem:[%s8063_s27 + $0x870] sm:$0xff]  }
  0x60   : > { %489 = vst [vmem:[%s8068_s28 + $0x278] sm:$0xff] %v488_v15   ;;  %v744_v15 = vld [vmem:[%s8063_s27 + $0x878] sm:$0xff]  }
  0x61   : > { %493 = vst [vmem:[%s8068_s28 + $0x280] sm:$0xff] %v492_v16   ;;  %v748_v16 = vld [vmem:[%s8063_s27 + $0x880] sm:$0xff]  }
  0x62   : > { %497 = vst [vmem:[%s8068_s28 + $0x288] sm:$0xff] %v496_v17   ;;  %v752_v17 = vld [vmem:[%s8063_s27 + $0x888] sm:$0xff]  }
  0x63   : > { %501 = vst [vmem:[%s8068_s28 + $0x290] sm:$0xff] %v500_v18   ;;  %v756_v18 = vld [vmem:[%s8063_s27 + $0x890] sm:$0xff]  }
  0x64   : > { %505 = vst [vmem:[%s8068_s28 + $0x298] sm:$0xff] %v504_v19   ;;  %v760_v19 = vld [vmem:[%s8063_s27 + $0x898] sm:$0xff]  }
  0x65   : > { %509 = vst [vmem:[%s8068_s28 + $0x2a0] sm:$0xff] %v508_v20   ;;  %v764_v20 = vld [vmem:[%s8063_s27 + $0x8a0] sm:$0xff]  }
  0x66   : > { %513 = vst [vmem:[%s8068_s28 + $0x2a8] sm:$0xff] %v512_v21   ;;  %v768_v21 = vld [vmem:[%s8063_s27 + $0x8a8] sm:$0xff]  }
  0x67   : > { %517 = vst [vmem:[%s8068_s28 + $0x2b0] sm:$0xff] %v516_v22   ;;  %v772_v22 = vld [vmem:[%s8063_s27 + $0x8b0] sm:$0xff]  }
  0x68   : > { %521 = vst [vmem:[%s8068_s28 + $0x2b8] sm:$0xff] %v520_v23   ;;  %v776_v23 = vld [vmem:[%s8063_s27 + $0x8b8] sm:$0xff]  }
  0x69   : > { %525 = vst [vmem:[%s8068_s28 + $0x2c0] sm:$0xff] %v524_v24   ;;  %v780_v24 = vld [vmem:[%s8063_s27 + $0x8c0] sm:$0xff]  }
  0x6a   : > { %529 = vst [vmem:[%s8068_s28 + $0x2c8] sm:$0xff] %v528_v25   ;;  %v784_v25 = vld [vmem:[%s8063_s27 + $0x8c8] sm:$0xff]  }
  0x6b   : > { %533 = vst [vmem:[%s8068_s28 + $0x2d0] sm:$0xff] %v532_v26   ;;  %v788_v26 = vld [vmem:[%s8063_s27 + $0x8d0] sm:$0xff]  }
  0x6c   : > { %537 = vst [vmem:[%s8068_s28 + $0x2d8] sm:$0xff] %v536_v27   ;;  %v792_v27 = vld [vmem:[%s8063_s27 + $0x8d8] sm:$0xff]  }
  0x6d   : > { %541 = vst [vmem:[%s8068_s28 + $0x2e0] sm:$0xff] %v540_v28   ;;  %v796_v28 = vld [vmem:[%s8063_s27 + $0x8e0] sm:$0xff]  }
  0x6e   : > { %545 = vst [vmem:[%s8068_s28 + $0x2e8] sm:$0xff] %v544_v29   ;;  %v800_v29 = vld [vmem:[%s8063_s27 + $0x8e8] sm:$0xff]  }
  0x6f   : > { %549 = vst [vmem:[%s8068_s28 + $0x2f0] sm:$0xff] %v548_v30   ;;  %v804_v30 = vld [vmem:[%s8063_s27 + $0x8f0] sm:$0xff]  }
  0x70   : > { %553 = vst [vmem:[%s8068_s28 + $0x2f8] sm:$0xff] %v552_v31   ;;  %v808_v31 = vld [vmem:[%s8063_s27 + $0x8f8] sm:$0xff]  }
  0x71   : > { %557 = vst [vmem:[%s8068_s28 + $0x300] sm:$0xff] %v556_v32   ;;  %v812_v32 = vld [vmem:[%s8063_s27 + $0xa00] sm:$0xff]  }
  0x72   : > { %561 = vst [vmem:[%s8068_s28 + $0x308] sm:$0xff] %v560_v33   ;;  %v816_v33 = vld [vmem:[%s8063_s27 + $0xa08] sm:$0xff]  }
  0x73   : > { %565 = vst [vmem:[%s8068_s28 + $0x310] sm:$0xff] %v564_v34   ;;  %v820_v34 = vld [vmem:[%s8063_s27 + $0xa10] sm:$0xff]  }
  0x74   : > { %569 = vst [vmem:[%s8068_s28 + $0x318] sm:$0xff] %v568_v35   ;;  %v824_v35 = vld [vmem:[%s8063_s27 + $0xa18] sm:$0xff]  }
  0x75   : > { %573 = vst [vmem:[%s8068_s28 + $0x320] sm:$0xff] %v572_v36   ;;  %v828_v36 = vld [vmem:[%s8063_s27 + $0xa20] sm:$0xff]  }
  0x76   : > { %577 = vst [vmem:[%s8068_s28 + $0x328] sm:$0xff] %v576_v37   ;;  %v832_v37 = vld [vmem:[%s8063_s27 + $0xa28] sm:$0xff]  }
  0x77   : > { %581 = vst [vmem:[%s8068_s28 + $0x330] sm:$0xff] %v580_v38   ;;  %v836_v38 = vld [vmem:[%s8063_s27 + $0xa30] sm:$0xff]  }
  0x78   : > { %585 = vst [vmem:[%s8068_s28 + $0x338] sm:$0xff] %v584_v39   ;;  %v840_v39 = vld [vmem:[%s8063_s27 + $0xa38] sm:$0xff]  }
  0x79   : > { %589 = vst [vmem:[%s8068_s28 + $0x340] sm:$0xff] %v588_v40   ;;  %v844_v40 = vld [vmem:[%s8063_s27 + $0xa40] sm:$0xff]  }
  0x7a   : > { %593 = vst [vmem:[%s8068_s28 + $0x348] sm:$0xff] %v592_v41   ;;  %v848_v41 = vld [vmem:[%s8063_s27 + $0xa48] sm:$0xff]  }
  0x7b   : > { %597 = vst [vmem:[%s8068_s28 + $0x350] sm:$0xff] %v596_v42   ;;  %v852_v42 = vld [vmem:[%s8063_s27 + $0xa50] sm:$0xff]  }
  0x7c   : > { %601 = vst [vmem:[%s8068_s28 + $0x358] sm:$0xff] %v600_v43   ;;  %v856_v43 = vld [vmem:[%s8063_s27 + $0xa58] sm:$0xff]  }
  0x7d   : > { %605 = vst [vmem:[%s8068_s28 + $0x360] sm:$0xff] %v604_v44   ;;  %v860_v44 = vld [vmem:[%s8063_s27 + $0xa60] sm:$0xff]  }
  0x7e   : > { %609 = vst [vmem:[%s8068_s28 + $0x368] sm:$0xff] %v608_v45   ;;  %v864_v45 = vld [vmem:[%s8063_s27 + $0xa68] sm:$0xff]  }
  0x7f   : > { %613 = vst [vmem:[%s8068_s28 + $0x370] sm:$0xff] %v612_v46   ;;  %v868_v46 = vld [vmem:[%s8063_s27 + $0xa70] sm:$0xff]  }
  0x80   : > { %617 = vst [vmem:[%s8068_s28 + $0x378] sm:$0xff] %v616_v47   ;;  %v872_v47 = vld [vmem:[%s8063_s27 + $0xa78] sm:$0xff]  }
  0x81   : > { %621 = vst [vmem:[%s8068_s28 + $0x380] sm:$0xff] %v620_v48   ;;  %v876_v48 = vld [vmem:[%s8063_s27 + $0xa80] sm:$0xff]  }
  0x82   : > { %625 = vst [vmem:[%s8068_s28 + $0x388] sm:$0xff] %v624_v49   ;;  %v880_v49 = vld [vmem:[%s8063_s27 + $0xa88] sm:$0xff]  }
  0x83   : > { %629 = vst [vmem:[%s8068_s28 + $0x390] sm:$0xff] %v628_v50   ;;  %v884_v50 = vld [vmem:[%s8063_s27 + $0xa90] sm:$0xff]  }
  0x84   : > { %633 = vst [vmem:[%s8068_s28 + $0x398] sm:$0xff] %v632_v51   ;;  %v888_v51 = vld [vmem:[%s8063_s27 + $0xa98] sm:$0xff]  }
  0x85   : > { %637 = vst [vmem:[%s8068_s28 + $0x3a0] sm:$0xff] %v636_v52   ;;  %v892_v52 = vld [vmem:[%s8063_s27 + $0xaa0] sm:$0xff]  }
  0x86   : > { %641 = vst [vmem:[%s8068_s28 + $0x3a8] sm:$0xff] %v640_v53   ;;  %v896_v53 = vld [vmem:[%s8063_s27 + $0xaa8] sm:$0xff]  }
  0x87   : > { %645 = vst [vmem:[%s8068_s28 + $0x3b0] sm:$0xff] %v644_v54   ;;  %v900_v54 = vld [vmem:[%s8063_s27 + $0xab0] sm:$0xff]  }
  0x88   : > { %649 = vst [vmem:[%s8068_s28 + $0x3b8] sm:$0xff] %v648_v55   ;;  %v904_v55 = vld [vmem:[%s8063_s27 + $0xab8] sm:$0xff]  }
  0x89   : > { %653 = vst [vmem:[%s8068_s28 + $0x3c0] sm:$0xff] %v652_v56   ;;  %v908_v56 = vld [vmem:[%s8063_s27 + $0xac0] sm:$0xff]  }
  0x8a   : > { %657 = vst [vmem:[%s8068_s28 + $0x3c8] sm:$0xff] %v656_v57   ;;  %v912_v57 = vld [vmem:[%s8063_s27 + $0xac8] sm:$0xff]  }
  0x8b   : > { %661 = vst [vmem:[%s8068_s28 + $0x3d0] sm:$0xff] %v660_v58   ;;  %v916_v58 = vld [vmem:[%s8063_s27 + $0xad0] sm:$0xff]  }
  0x8c   : > { %665 = vst [vmem:[%s8068_s28 + $0x3d8] sm:$0xff] %v664_v59   ;;  %v920_v59 = vld [vmem:[%s8063_s27 + $0xad8] sm:$0xff]  }
  0x8d   : > { %669 = vst [vmem:[%s8068_s28 + $0x3e0] sm:$0xff] %v668_v60   ;;  %v924_v60 = vld [vmem:[%s8063_s27 + $0xae0] sm:$0xff]  }
  0x8e   : > { %673 = vst [vmem:[%s8068_s28 + $0x3e8] sm:$0xff] %v672_v61   ;;  %v928_v61 = vld [vmem:[%s8063_s27 + $0xae8] sm:$0xff]  }
  0x8f   : > { %677 = vst [vmem:[%s8068_s28 + $0x3f0] sm:$0xff] %v676_v62   ;;  %v932_v62 = vld [vmem:[%s8063_s27 + $0xaf0] sm:$0xff]  }
  0x90   : > { %681 = vst [vmem:[%s8068_s28 + $0x3f8] sm:$0xff] %v680_v63   ;;  %v936_v63 = vld [vmem:[%s8063_s27 + $0xaf8] sm:$0xff]  }
  0x91   : > { %685 = vst [vmem:[%s8068_s28 + $0x400] sm:$0xff] %v684_v0   ;;  %v940_v0 = vld [vmem:[%s8063_s27 + $0xc00] sm:$0xff]  }
  0x92   : > { %689 = vst [vmem:[%s8068_s28 + $0x408] sm:$0xff] %v688_v1   ;;  %v944_v1 = vld [vmem:[%s8063_s27 + $0xc08] sm:$0xff]  }
  0x93   : > { %693 = vst [vmem:[%s8068_s28 + $0x410] sm:$0xff] %v692_v2   ;;  %v948_v2 = vld [vmem:[%s8063_s27 + $0xc10] sm:$0xff]  }
  0x94   : > { %697 = vst [vmem:[%s8068_s28 + $0x418] sm:$0xff] %v696_v3   ;;  %v952_v3 = vld [vmem:[%s8063_s27 + $0xc18] sm:$0xff]  }
  0x95   : > { %701 = vst [vmem:[%s8068_s28 + $0x420] sm:$0xff] %v700_v4   ;;  %v956_v4 = vld [vmem:[%s8063_s27 + $0xc20] sm:$0xff]  }
  0x96   : > { %705 = vst [vmem:[%s8068_s28 + $0x428] sm:$0xff] %v704_v5   ;;  %v960_v5 = vld [vmem:[%s8063_s27 + $0xc28] sm:$0xff]  }
  0x97   : > { %709 = vst [vmem:[%s8068_s28 + $0x430] sm:$0xff] %v708_v6   ;;  %v964_v6 = vld [vmem:[%s8063_s27 + $0xc30] sm:$0xff]  }
  0x98   : > { %713 = vst [vmem:[%s8068_s28 + $0x438] sm:$0xff] %v712_v7   ;;  %v968_v7 = vld [vmem:[%s8063_s27 + $0xc38] sm:$0xff]  }
  0x99   : > { %717 = vst [vmem:[%s8068_s28 + $0x440] sm:$0xff] %v716_v8   ;;  %v972_v8 = vld [vmem:[%s8063_s27 + $0xc40] sm:$0xff]  }
  0x9a   : > { %721 = vst [vmem:[%s8068_s28 + $0x448] sm:$0xff] %v720_v9   ;;  %v976_v9 = vld [vmem:[%s8063_s27 + $0xc48] sm:$0xff]  }
  0x9b   : > { %725 = vst [vmem:[%s8068_s28 + $0x450] sm:$0xff] %v724_v10   ;;  %v980_v10 = vld [vmem:[%s8063_s27 + $0xc50] sm:$0xff]  }
  0x9c   : > { %729 = vst [vmem:[%s8068_s28 + $0x458] sm:$0xff] %v728_v11   ;;  %v984_v11 = vld [vmem:[%s8063_s27 + $0xc58] sm:$0xff]  }
  0x9d   : > { %733 = vst [vmem:[%s8068_s28 + $0x460] sm:$0xff] %v732_v12   ;;  %v988_v12 = vld [vmem:[%s8063_s27 + $0xc60] sm:$0xff]  }
  0x9e   : > { %737 = vst [vmem:[%s8068_s28 + $0x468] sm:$0xff] %v736_v13   ;;  %v992_v13 = vld [vmem:[%s8063_s27 + $0xc68] sm:$0xff]  }
  0x9f   : > { %741 = vst [vmem:[%s8068_s28 + $0x470] sm:$0xff] %v740_v14   ;;  %v996_v14 = vld [vmem:[%s8063_s27 + $0xc70] sm:$0xff]  }
  0xa0   : > { %745 = vst [vmem:[%s8068_s28 + $0x478] sm:$0xff] %v744_v15   ;;  %v1000_v15 = vld [vmem:[%s8063_s27 + $0xc78] sm:$0xff]  }
  0xa1   : > { %749 = vst [vmem:[%s8068_s28 + $0x480] sm:$0xff] %v748_v16   ;;  %v1004_v16 = vld [vmem:[%s8063_s27 + $0xc80] sm:$0xff]  }
  0xa2   : > { %753 = vst [vmem:[%s8068_s28 + $0x488] sm:$0xff] %v752_v17   ;;  %v1008_v17 = vld [vmem:[%s8063_s27 + $0xc88] sm:$0xff]  }
  0xa3   : > { %757 = vst [vmem:[%s8068_s28 + $0x490] sm:$0xff] %v756_v18   ;;  %v1012_v18 = vld [vmem:[%s8063_s27 + $0xc90] sm:$0xff]  }
  0xa4   : > { %761 = vst [vmem:[%s8068_s28 + $0x498] sm:$0xff] %v760_v19   ;;  %v1016_v19 = vld [vmem:[%s8063_s27 + $0xc98] sm:$0xff]  }
  0xa5   : > { %765 = vst [vmem:[%s8068_s28 + $0x4a0] sm:$0xff] %v764_v20   ;;  %v1020_v20 = vld [vmem:[%s8063_s27 + $0xca0] sm:$0xff]  }
  0xa6   : > { %769 = vst [vmem:[%s8068_s28 + $0x4a8] sm:$0xff] %v768_v21   ;;  %v1024_v21 = vld [vmem:[%s8063_s27 + $0xca8] sm:$0xff]  }
  0xa7   : > { %773 = vst [vmem:[%s8068_s28 + $0x4b0] sm:$0xff] %v772_v22   ;;  %v1028_v22 = vld [vmem:[%s8063_s27 + $0xcb0] sm:$0xff]  }
  0xa8   : > { %777 = vst [vmem:[%s8068_s28 + $0x4b8] sm:$0xff] %v776_v23   ;;  %v1032_v23 = vld [vmem:[%s8063_s27 + $0xcb8] sm:$0xff]  }
  0xa9   : > { %781 = vst [vmem:[%s8068_s28 + $0x4c0] sm:$0xff] %v780_v24   ;;  %v1036_v24 = vld [vmem:[%s8063_s27 + $0xcc0] sm:$0xff]  }
  0xaa   : > { %785 = vst [vmem:[%s8068_s28 + $0x4c8] sm:$0xff] %v784_v25   ;;  %v1040_v25 = vld [vmem:[%s8063_s27 + $0xcc8] sm:$0xff]  }
  0xab   : > { %789 = vst [vmem:[%s8068_s28 + $0x4d0] sm:$0xff] %v788_v26   ;;  %v1044_v26 = vld [vmem:[%s8063_s27 + $0xcd0] sm:$0xff]  }
  0xac   : > { %793 = vst [vmem:[%s8068_s28 + $0x4d8] sm:$0xff] %v792_v27   ;;  %v1048_v27 = vld [vmem:[%s8063_s27 + $0xcd8] sm:$0xff]  }
  0xad   : > { %797 = vst [vmem:[%s8068_s28 + $0x4e0] sm:$0xff] %v796_v28   ;;  %v1052_v28 = vld [vmem:[%s8063_s27 + $0xce0] sm:$0xff]  }
  0xae   : > { %801 = vst [vmem:[%s8068_s28 + $0x4e8] sm:$0xff] %v800_v29   ;;  %v1056_v29 = vld [vmem:[%s8063_s27 + $0xce8] sm:$0xff]  }
  0xaf   : > { %805 = vst [vmem:[%s8068_s28 + $0x4f0] sm:$0xff] %v804_v30   ;;  %v1060_v30 = vld [vmem:[%s8063_s27 + $0xcf0] sm:$0xff]  }
  0xb0   : > { %809 = vst [vmem:[%s8068_s28 + $0x4f8] sm:$0xff] %v808_v31   ;;  %v1064_v31 = vld [vmem:[%s8063_s27 + $0xcf8] sm:$0xff]  }
  0xb1   : > { %813 = vst [vmem:[%s8068_s28 + $0x500] sm:$0xff] %v812_v32   ;;  %v1068_v32 = vld [vmem:[%s8063_s27 + $0xe00] sm:$0xff]  }
  0xb2   : > { %817 = vst [vmem:[%s8068_s28 + $0x508] sm:$0xff] %v816_v33   ;;  %v1072_v33 = vld [vmem:[%s8063_s27 + $0xe08] sm:$0xff]  }
  0xb3   : > { %821 = vst [vmem:[%s8068_s28 + $0x510] sm:$0xff] %v820_v34   ;;  %v1076_v34 = vld [vmem:[%s8063_s27 + $0xe10] sm:$0xff]  }
  0xb4   : > { %825 = vst [vmem:[%s8068_s28 + $0x518] sm:$0xff] %v824_v35   ;;  %v1080_v35 = vld [vmem:[%s8063_s27 + $0xe18] sm:$0xff]  }
  0xb5   : > { %829 = vst [vmem:[%s8068_s28 + $0x520] sm:$0xff] %v828_v36   ;;  %v1084_v36 = vld [vmem:[%s8063_s27 + $0xe20] sm:$0xff]  }
  0xb6   : > { %833 = vst [vmem:[%s8068_s28 + $0x528] sm:$0xff] %v832_v37   ;;  %v1088_v37 = vld [vmem:[%s8063_s27 + $0xe28] sm:$0xff]  }
  0xb7   : > { %837 = vst [vmem:[%s8068_s28 + $0x530] sm:$0xff] %v836_v38   ;;  %v1092_v38 = vld [vmem:[%s8063_s27 + $0xe30] sm:$0xff]  }
  0xb8   : > { %841 = vst [vmem:[%s8068_s28 + $0x538] sm:$0xff] %v840_v39   ;;  %v1096_v39 = vld [vmem:[%s8063_s27 + $0xe38] sm:$0xff]  }
  0xb9   : > { %845 = vst [vmem:[%s8068_s28 + $0x540] sm:$0xff] %v844_v40   ;;  %v1100_v40 = vld [vmem:[%s8063_s27 + $0xe40] sm:$0xff]  }
  0xba   : > { %849 = vst [vmem:[%s8068_s28 + $0x548] sm:$0xff] %v848_v41   ;;  %v1104_v41 = vld [vmem:[%s8063_s27 + $0xe48] sm:$0xff]  }
  0xbb   : > { %853 = vst [vmem:[%s8068_s28 + $0x550] sm:$0xff] %v852_v42   ;;  %v1108_v42 = vld [vmem:[%s8063_s27 + $0xe50] sm:$0xff]  }
  0xbc   : > { %857 = vst [vmem:[%s8068_s28 + $0x558] sm:$0xff] %v856_v43   ;;  %v1112_v43 = vld [vmem:[%s8063_s27 + $0xe58] sm:$0xff]  }
  0xbd   : > { %861 = vst [vmem:[%s8068_s28 + $0x560] sm:$0xff] %v860_v44   ;;  %v1116_v44 = vld [vmem:[%s8063_s27 + $0xe60] sm:$0xff]  }
  0xbe   : > { %865 = vst [vmem:[%s8068_s28 + $0x568] sm:$0xff] %v864_v45   ;;  %v1120_v45 = vld [vmem:[%s8063_s27 + $0xe68] sm:$0xff]  }
  0xbf   : > { %869 = vst [vmem:[%s8068_s28 + $0x570] sm:$0xff] %v868_v46   ;;  %v1124_v46 = vld [vmem:[%s8063_s27 + $0xe70] sm:$0xff]  }
  0xc0   : > { %873 = vst [vmem:[%s8068_s28 + $0x578] sm:$0xff] %v872_v47   ;;  %v1128_v47 = vld [vmem:[%s8063_s27 + $0xe78] sm:$0xff]  }
  0xc1   : > { %877 = vst [vmem:[%s8068_s28 + $0x580] sm:$0xff] %v876_v48   ;;  %v1132_v48 = vld [vmem:[%s8063_s27 + $0xe80] sm:$0xff]  }
  0xc2   : > { %881 = vst [vmem:[%s8068_s28 + $0x588] sm:$0xff] %v880_v49   ;;  %v1136_v49 = vld [vmem:[%s8063_s27 + $0xe88] sm:$0xff]  }
  0xc3   : > { %885 = vst [vmem:[%s8068_s28 + $0x590] sm:$0xff] %v884_v50   ;;  %v1140_v50 = vld [vmem:[%s8063_s27 + $0xe90] sm:$0xff]  }
  0xc4   : > { %889 = vst [vmem:[%s8068_s28 + $0x598] sm:$0xff] %v888_v51   ;;  %v1144_v51 = vld [vmem:[%s8063_s27 + $0xe98] sm:$0xff]  }
  0xc5   : > { %893 = vst [vmem:[%s8068_s28 + $0x5a0] sm:$0xff] %v892_v52   ;;  %v1148_v52 = vld [vmem:[%s8063_s27 + $0xea0] sm:$0xff]  }
  0xc6   : > { %897 = vst [vmem:[%s8068_s28 + $0x5a8] sm:$0xff] %v896_v53   ;;  %v1152_v53 = vld [vmem:[%s8063_s27 + $0xea8] sm:$0xff]  }
  0xc7   : > { %901 = vst [vmem:[%s8068_s28 + $0x5b0] sm:$0xff] %v900_v54   ;;  %v1156_v54 = vld [vmem:[%s8063_s27 + $0xeb0] sm:$0xff]  }
  0xc8   : > { %905 = vst [vmem:[%s8068_s28 + $0x5b8] sm:$0xff] %v904_v55   ;;  %v1160_v55 = vld [vmem:[%s8063_s27 + $0xeb8] sm:$0xff]  }
  0xc9   : > { %909 = vst [vmem:[%s8068_s28 + $0x5c0] sm:$0xff] %v908_v56   ;;  %v1164_v56 = vld [vmem:[%s8063_s27 + $0xec0] sm:$0xff]  }
  0xca   : > { %913 = vst [vmem:[%s8068_s28 + $0x5c8] sm:$0xff] %v912_v57   ;;  %v1168_v57 = vld [vmem:[%s8063_s27 + $0xec8] sm:$0xff]  }
  0xcb   : > { %917 = vst [vmem:[%s8068_s28 + $0x5d0] sm:$0xff] %v916_v58   ;;  %v1172_v58 = vld [vmem:[%s8063_s27 + $0xed0] sm:$0xff]  }
  0xcc   : > { %921 = vst [vmem:[%s8068_s28 + $0x5d8] sm:$0xff] %v920_v59   ;;  %v1176_v59 = vld [vmem:[%s8063_s27 + $0xed8] sm:$0xff]  }
  0xcd   : > { %925 = vst [vmem:[%s8068_s28 + $0x5e0] sm:$0xff] %v924_v60   ;;  %v1180_v60 = vld [vmem:[%s8063_s27 + $0xee0] sm:$0xff]  }
  0xce   : > { %929 = vst [vmem:[%s8068_s28 + $0x5e8] sm:$0xff] %v928_v61   ;;  %v1184_v61 = vld [vmem:[%s8063_s27 + $0xee8] sm:$0xff]  }
  0xcf   : > { %933 = vst [vmem:[%s8068_s28 + $0x5f0] sm:$0xff] %v932_v62   ;;  %v1188_v62 = vld [vmem:[%s8063_s27 + $0xef0] sm:$0xff]  }
  0xd0   : > { %937 = vst [vmem:[%s8068_s28 + $0x5f8] sm:$0xff] %v936_v63   ;;  %v1192_v63 = vld [vmem:[%s8063_s27 + $0xef8] sm:$0xff]  }
  0xd1   : > { %941 = vst [vmem:[%s8068_s28 + $0x600] sm:$0xff] %v940_v0  }
  0xd2   : > { %945 = vst [vmem:[%s8068_s28 + $0x608] sm:$0xff] %v944_v1  }
  0xd3   : > { %949 = vst [vmem:[%s8068_s28 + $0x610] sm:$0xff] %v948_v2  }
  0xd4   : > { %953 = vst [vmem:[%s8068_s28 + $0x618] sm:$0xff] %v952_v3  }
  0xd5   : > { %957 = vst [vmem:[%s8068_s28 + $0x620] sm:$0xff] %v956_v4  }
  0xd6   : > { %961 = vst [vmem:[%s8068_s28 + $0x628] sm:$0xff] %v960_v5  }
  0xd7   : > { %965 = vst [vmem:[%s8068_s28 + $0x630] sm:$0xff] %v964_v6  }
  0xd8   : > { %969 = vst [vmem:[%s8068_s28 + $0x638] sm:$0xff] %v968_v7  }
  0xd9   : > { %973 = vst [vmem:[%s8068_s28 + $0x640] sm:$0xff] %v972_v8  }
  0xda   : > { %977 = vst [vmem:[%s8068_s28 + $0x648] sm:$0xff] %v976_v9  }
  0xdb   : > { %981 = vst [vmem:[%s8068_s28 + $0x650] sm:$0xff] %v980_v10  }
  0xdc   : > { %985 = vst [vmem:[%s8068_s28 + $0x658] sm:$0xff] %v984_v11  }
  0xdd   : > { %989 = vst [vmem:[%s8068_s28 + $0x660] sm:$0xff] %v988_v12  }
  0xde   : > { %993 = vst [vmem:[%s8068_s28 + $0x668] sm:$0xff] %v992_v13  }
  0xdf   : > { %997 = vst [vmem:[%s8068_s28 + $0x670] sm:$0xff] %v996_v14  }
  0xe0   : > { %1001 = vst [vmem:[%s8068_s28 + $0x678] sm:$0xff] %v1000_v15  }
  0xe1   : > { %1005 = vst [vmem:[%s8068_s28 + $0x680] sm:$0xff] %v1004_v16  }
  0xe2   : > { %1009 = vst [vmem:[%s8068_s28 + $0x688] sm:$0xff] %v1008_v17  }
  0xe3   : > { %1013 = vst [vmem:[%s8068_s28 + $0x690] sm:$0xff] %v1012_v18  }
  0xe4   : > { %1017 = vst [vmem:[%s8068_s28 + $0x698] sm:$0xff] %v1016_v19  }
  0xe5   : > { %1021 = vst [vmem:[%s8068_s28 + $0x6a0] sm:$0xff] %v1020_v20  }
  0xe6   : > { %1025 = vst [vmem:[%s8068_s28 + $0x6a8] sm:$0xff] %v1024_v21  }
  0xe7   : > { %1029 = vst [vmem:[%s8068_s28 + $0x6b0] sm:$0xff] %v1028_v22  }
  0xe8   : > { %1033 = vst [vmem:[%s8068_s28 + $0x6b8] sm:$0xff] %v1032_v23  }
  0xe9   : > { %1037 = vst [vmem:[%s8068_s28 + $0x6c0] sm:$0xff] %v1036_v24  }
  0xea   : > { %1041 = vst [vmem:[%s8068_s28 + $0x6c8] sm:$0xff] %v1040_v25  }
  0xeb   : > { %1045 = vst [vmem:[%s8068_s28 + $0x6d0] sm:$0xff] %v1044_v26  }
  0xec   : > { %1049 = vst [vmem:[%s8068_s28 + $0x6d8] sm:$0xff] %v1048_v27  }
  0xed   : > { %1053 = vst [vmem:[%s8068_s28 + $0x6e0] sm:$0xff] %v1052_v28  }
  0xee   : > { %1057 = vst [vmem:[%s8068_s28 + $0x6e8] sm:$0xff] %v1056_v29  }
  0xef   : > { %1061 = vst [vmem:[%s8068_s28 + $0x6f0] sm:$0xff] %v1060_v30  }
  0xf0   : > { %1065 = vst [vmem:[%s8068_s28 + $0x6f8] sm:$0xff] %v1064_v31  }
  0xf1   : > { %1069 = vst [vmem:[%s8068_s28 + $0x700] sm:$0xff] %v1068_v32  }
  0xf2   : > { %1073 = vst [vmem:[%s8068_s28 + $0x708] sm:$0xff] %v1072_v33  }
  0xf3   : > { %1077 = vst [vmem:[%s8068_s28 + $0x710] sm:$0xff] %v1076_v34  }
  0xf4   : > { %1081 = vst [vmem:[%s8068_s28 + $0x718] sm:$0xff] %v1080_v35  }
  0xf5   : > { %1085 = vst [vmem:[%s8068_s28 + $0x720] sm:$0xff] %v1084_v36  }
  0xf6   : > { %1089 = vst [vmem:[%s8068_s28 + $0x728] sm:$0xff] %v1088_v37  }
  0xf7   : > { %1093 = vst [vmem:[%s8068_s28 + $0x730] sm:$0xff] %v1092_v38  }
  0xf8   : > { %1097 = vst [vmem:[%s8068_s28 + $0x738] sm:$0xff] %v1096_v39  }
  0xf9   : > { %1101 = vst [vmem:[%s8068_s28 + $0x740] sm:$0xff] %v1100_v40  }
  0xfa   : > { %1105 = vst [vmem:[%s8068_s28 + $0x748] sm:$0xff] %v1104_v41  }
  0xfb   : > { %1109 = vst [vmem:[%s8068_s28 + $0x750] sm:$0xff] %v1108_v42  }
  0xfc   : > { %1113 = vst [vmem:[%s8068_s28 + $0x758] sm:$0xff] %v1112_v43  }
  0xfd   : > { %1117 = vst [vmem:[%s8068_s28 + $0x760] sm:$0xff] %v1116_v44  }
  0xfe   : > { %1121 = vst [vmem:[%s8068_s28 + $0x768] sm:$0xff] %v1120_v45  }
  0xff   : > { %1125 = vst [vmem:[%s8068_s28 + $0x770] sm:$0xff] %v1124_v46  }
 0x100   : > { %1129 = vst [vmem:[%s8068_s28 + $0x778] sm:$0xff] %v1128_v47  }
 0x101   : > { %1133 = vst [vmem:[%s8068_s28 + $0x780] sm:$0xff] %v1132_v48  }
 0x102   : > { %1137 = vst [vmem:[%s8068_s28 + $0x788] sm:$0xff] %v1136_v49  }
 0x103   : > { %1141 = vst [vmem:[%s8068_s28 + $0x790] sm:$0xff] %v1140_v50  }
 0x104   : > { %1145 = vst [vmem:[%s8068_s28 + $0x798] sm:$0xff] %v1144_v51  }
 0x105   : > { %1149 = vst [vmem:[%s8068_s28 + $0x7a0] sm:$0xff] %v1148_v52  }
 0x106   : > { %1153 = vst [vmem:[%s8068_s28 + $0x7a8] sm:$0xff] %v1152_v53  }
 0x107   : > { %1157 = vst [vmem:[%s8068_s28 + $0x7b0] sm:$0xff] %v1156_v54  }
 0x108   : > { %1161 = vst [vmem:[%s8068_s28 + $0x7b8] sm:$0xff] %v1160_v55  }
 0x109   : > { %1165 = vst [vmem:[%s8068_s28 + $0x7c0] sm:$0xff] %v1164_v56  }
 0x10a   : > { %1169 = vst [vmem:[%s8068_s28 + $0x7c8] sm:$0xff] %v1168_v57  }
 0x10b   : > { %1173 = vst [vmem:[%s8068_s28 + $0x7d0] sm:$0xff] %v1172_v58  }
 0x10c   : > { %1177 = vst [vmem:[%s8068_s28 + $0x7d8] sm:$0xff] %v1176_v59  }
 0x10d   : > { %1181 = vst [vmem:[%s8068_s28 + $0x7e0] sm:$0xff] %v1180_v60  }
 0x10e   : > { %1185 = vst [vmem:[%s8068_s28 + $0x7e8] sm:$0xff] %v1184_v61  }
 0x10f   : > { %1189 = vst [vmem:[%s8068_s28 + $0x7f0] sm:$0xff] %v1188_v62  }
 0x110   : > { %1193 = vst [vmem:[%s8068_s28 + $0x7f8] sm:$0xff] %v1192_v63  }
 0x111 PF: > { %p6586_p6 = scmp.ge.s32.totalorder %s7995_s16, 1  ;;  %p4316_p7 = scmp.lt.s32.totalorder %s7995_s16, 3 }
 0x113   : > { %p4317_p8 = pnand %p6586_p6, %p4316_p7 }
 0x115   : > { %4320 = sbr.rel (%p4317_p8) target bundleno = 988 (0x3dc), region = 80 }
 0x11a   : > { %s4323_s29 = sand.u32 1, %s7979_s12   ;;  %p6588_p9 = scmp.ne.s32.totalorder %s7987_s14, 0 }
 0x11b   : > { %s6587_s30 = sshll.u32 %s4323_s29, 11 }
 0x11c   : > { %s8582_s4 = scalar_lea.vmem [#allocation3], %s6587_s30  ;;  %4346 = sbr.rel (%p6588_p9) target bundleno = 291 (0x123), region = 88 }
 0x121   : > { %vm4347_vm0 = vcmask 31744   ;;  %v7997_v0 = vmov 0.0  }
 0x122   : > { %4348 = vst.msk [vmem:[#allocation2] sm:$0xff] %vm4347_vm0, %v7997_v0 }
 0x123 PF: > { %v8586_v1 = vld [vmem:[%s8582_s4] sm:$0xff]   ;;  %v8589_v2 = vld [vmem:[%s8582_s4 + $0x8] sm:$0xff]   ;;  %v8592_v3 = vld [vmem:[%s8582_s4 + $0x10] sm:$0xff]   ;;  %vm5374_vm1 = vcmask 31744   ;;  %vm6447_vm2 = vcmask 1041409   ;;  %vm6449_vm3 = vcmask 1042434  }
 0x124   : > { %v8595_v4 = vld [vmem:[%s8582_s4 + $0x18] sm:$0xff]   ;;  %v8598_v5 = vld [vmem:[%s8582_s4 + $0x20] sm:$0xff]   ;;  %v8601_v6 = vld [vmem:[%s8582_s4 + $0x28] sm:$0xff]   ;;  %vm6451_vm4 = vcmask 1043459   ;;  %vm6453_vm5 = vcmask 1044484   ;;  %vm6455_vm6 = vcmask 1045509  }
 0x125   : > { %v8608_v11 = vld [vmem:[%s8582_s4 + $0x30] sm:$0xff]   ;;  %v8611_v12 = vld [vmem:[%s8582_s4 + $0x38] sm:$0xff]   ;;  %v8618_v17 = vld [vmem:[%s8582_s4 + $0x40] sm:$0xff]   ;;  %vm6457_vm7 = vcmask 1046534   ;;  %vm6459_vm8 = vcmask 1047559   ;;  %p6589_p10 = scmp.ne.s32.totalorder %s7987_s14, 1 }
 0x126   : > { %v8621_v18 = vld [vmem:[%s8582_s4 + $0x48] sm:$0xff]   ;;  %v8628_v23 = vld [vmem:[%s8582_s4 + $0x50] sm:$0xff]   ;;  %v8631_v24 = vld [vmem:[%s8582_s4 + $0x58] sm:$0xff]  }
 0x127   : > { %v8638_v29 = vld [vmem:[%s8582_s4 + $0x60] sm:$0xff]   ;;  %v8641_v30 = vld [vmem:[%s8582_s4 + $0x68] sm:$0xff]   ;;  %v8648_v35 = vld [vmem:[%s8582_s4 + $0x70] sm:$0xff]  }
 0x128   : > { %v8651_v36 = vld [vmem:[%s8582_s4 + $0x78] sm:$0xff]   ;;  %v8658_v41 = vld [vmem:[%s8582_s4 + $0x80] sm:$0xff]   ;;  %v8661_v42 = vld [vmem:[%s8582_s4 + $0x88] sm:$0xff]  }
 0x129   : > { %12084 = vst [vmem:[#allocation7_spill] sm:$0xff] %v8651_v36  ;;  %v8668_v47 = vld [vmem:[%s8582_s4 + $0x90] sm:$0xff]   ;;  %v8671_v48 = vld [vmem:[%s8582_s4 + $0x98] sm:$0xff]   ;;  %v8678_v53 = vld [vmem:[%s8582_s4 + $0xa0] sm:$0xff]  }
 0x12a   : > { %12085 = vst [vmem:[#allocation8_spill] sm:$0xff] %v8658_v41  ;;  %v8681_v54 = vld [vmem:[%s8582_s4 + $0xa8] sm:$0xff]   ;;  %v8688_v59 = vld [vmem:[%s8582_s4 + $0xb0] sm:$0xff]   ;;  %v8691_v60 = vld [vmem:[%s8582_s4 + $0xb8] sm:$0xff]  }
 0x12b   : > { %12086 = vst [vmem:[#allocation9_spill] sm:$0xff] %v8661_v42  ;;  %v8698_v56 = vld [vmem:[%s8582_s4 + $0xc0] sm:$0xff]   ;;  %v8701_v55 = vld [vmem:[%s8582_s4 + $0xc8] sm:$0xff]   ;;  %v8708_v62 = vld [vmem:[%s8582_s4 + $0xd0] sm:$0xff]  }
 0x12c   : > { %12087 = vst [vmem:[#allocation10_spill] sm:$0xff] %v8668_v47  ;;  %v8711_v51 = vld [vmem:[%s8582_s4 + $0xd8] sm:$0xff]   ;;  %v8718_v57 = vld [vmem:[%s8582_s4 + $0xe0] sm:$0xff]   ;;  %v8721_v49 = vld [vmem:[%s8582_s4 + $0xe8] sm:$0xff]  }
 0x12d   : > { %12088 = vst [vmem:[#allocation11_spill] sm:$0xff] %v8671_v48  ;;  %v8728_v63 = vld [vmem:[%s8582_s4 + $0xf0] sm:$0xff]   ;;  %v8731_v45 = vld [vmem:[%s8582_s4 + $0xf8] sm:$0xff]   ;;  %v8738_v61 = vld [vmem:[%s8582_s4 + $0x100] sm:$0xff]  }
 0x12e   : > { %12089 = vst [vmem:[#allocation12_spill] sm:$0xff] %v8678_v53  ;;  %v8741_v43 = vld [vmem:[%s8582_s4 + $0x108] sm:$0xff]   ;;  %v8748_v58 = vld [vmem:[%s8582_s4 + $0x110] sm:$0xff]   ;;  %v8751_v39 = vld [vmem:[%s8582_s4 + $0x118] sm:$0xff]  }
 0x12f   : > { %12090 = vst [vmem:[#allocation13_spill] sm:$0xff] %v8681_v54  ;;  %v8758_v0 = vld [vmem:[%s8582_s4 + $0x120] sm:$0xff]   ;;  %v8761_v37 = vld [vmem:[%s8582_s4 + $0x128] sm:$0xff]   ;;  %v8768_v52 = vld [vmem:[%s8582_s4 + $0x130] sm:$0xff]  }
 0x130   : > { %12091 = vst [vmem:[#allocation14_spill] sm:$0xff] %v8688_v59  ;;  %v8771_v33 = vld [vmem:[%s8582_s4 + $0x138] sm:$0xff]   ;;  %v8778_v28 = vld [vmem:[%s8582_s4 + $0x140] sm:$0xff]   ;;  %v8781_v27 = vld [vmem:[%s8582_s4 + $0x148] sm:$0xff]  }
 0x131   : > { %12092 = vst [vmem:[#allocation15_spill] sm:$0xff] %v8691_v60  ;;  %v8788_v20 = vld [vmem:[%s8582_s4 + $0x150] sm:$0xff]   ;;  %v8791_v46 = vld [vmem:[%s8582_s4 + $0x158] sm:$0xff]   ;;  %v8798_v25 = vld [vmem:[%s8582_s4 + $0x160] sm:$0xff]  }
 0x132   : > { %12093 = vst [vmem:[#allocation16_spill] sm:$0xff] %v8698_v56  ;;  %v8801_v38 = vld [vmem:[%s8582_s4 + $0x168] sm:$0xff]   ;;  %v8808_v32 = vld [vmem:[%s8582_s4 + $0x170] sm:$0xff]   ;;  %v8811_v34 = vld [vmem:[%s8582_s4 + $0x178] sm:$0xff]  }
 0x133   : > { %12094 = vst [vmem:[#allocation17_spill] sm:$0xff] %v8701_v55  ;;  %v8818_v22 = vld [vmem:[%s8582_s4 + $0x180] sm:$0xff]   ;;  %v8821_v44 = vld [vmem:[%s8582_s4 + $0x188] sm:$0xff]   ;;  %v8828_v26 = vld [vmem:[%s8582_s4 + $0x190] sm:$0xff]  }
 0x134   : > { %12095 = vst [vmem:[#allocation18_spill] sm:$0xff] %v8708_v62  ;;  %v8831_v40 = vld [vmem:[%s8582_s4 + $0x198] sm:$0xff]   ;;  %v8838_v31 = vld [vmem:[%s8582_s4 + $0x1a0] sm:$0xff]   ;;  %v8841_v13 = vld [vmem:[%s8582_s4 + $0x1a8] sm:$0xff]  }
 0x135   : > { %12096 = vst [vmem:[#allocation19_spill] sm:$0xff] %v8711_v51  ;;  %v8848_v21 = vld [vmem:[%s8582_s4 + $0x1b0] sm:$0xff]   ;;  %v8851_v9 = vld [vmem:[%s8582_s4 + $0x1b8] sm:$0xff]   ;;  %v8858_v19 = vld [vmem:[%s8582_s4 + $0x1c0] sm:$0xff]  }
 0x136   : > { %12097 = vst [vmem:[#allocation20_spill] sm:$0xff] %v8718_v57  ;;  %v8861_v7 = vld [vmem:[%s8582_s4 + $0x1c8] sm:$0xff]   ;;  %v8868_v16 = vld [vmem:[%s8582_s4 + $0x1d0] sm:$0xff]   ;;  %v8878_v15 = vld [vmem:[%s8582_s4 + $0x1e0] sm:$0xff]  }
 0x137   : > { %12098 = vst [vmem:[#allocation21_spill] sm:$0xff] %v8721_v49  ;;  %v8881_v57 = vld [vmem:[%s8582_s4 + $0x1e8] sm:$0xff]   ;;  %v8888_v50 = vld [vmem:[%s8582_s4 + $0x1f0] sm:$0xff]   ;;  %v8891_v62 = vld [vmem:[%s8582_s4 + $0x1f8] sm:$0xff]  }
 0x138   : > { %12099 = vst [vmem:[#allocation22_spill] sm:$0xff] %v8728_v63  ;;  %v8871_v63 = vld [vmem:[%s8582_s4 + $0x1d8] sm:$0xff]   ;;  %v8898_v14 = vld [vmem:[%s8582_s4 + $0x200] sm:$0xff]   ;;  %v8908_v10 = vld [vmem:[%s8582_s4 + $0x210] sm:$0xff]  }
 0x139   : > { %12100 = vst [vmem:[#allocation23_spill] sm:$0xff] %v8731_v45  ;;  %v8918_v8 = vld [vmem:[%s8582_s4 + $0x220] sm:$0xff]   ;;  %v8928_v45 = vld [vmem:[%s8582_s4 + $0x230] sm:$0xff]   ;;  %v8961_v60 = vld [vmem:[%s8582_s4 + $0x268] sm:$0xff]  }
 0x13a   : > { %12101 = vst [vmem:[#allocation24_spill] sm:$0xff] %v8808_v32  ;;  %v8938_v49 = vld [vmem:[%s8582_s4 + $0x240] sm:$0xff]   ;;  %v8948_v51 = vld [vmem:[%s8582_s4 + $0x250] sm:$0xff]   ;;  %v9121_v41 = vld [vmem:[%s8582_s4 + $0x368] sm:$0xff]  }
 0x13b   : > { %12102 = vst [vmem:[#allocation25_spill] sm:$0xff] %v8811_v34  ;;  %v8958_v55 = vld [vmem:[%s8582_s4 + $0x260] sm:$0xff]   ;;  %v9008_v56 = vld [vmem:[%s8582_s4 + $0x2b0] sm:$0xff]   ;;  %v9131_v32 = vld [vmem:[%s8582_s4 + $0x378] sm:$0xff]  }
 0x13c   : > { %12103 = vst [vmem:[#allocation26_spill] sm:$0xff] %v8818_v22  ;;  %v9028_v59 = vld [vmem:[%s8582_s4 + $0x2d0] sm:$0xff]   ;;  %v9038_v54 = vld [vmem:[%s8582_s4 + $0x2e0] sm:$0xff]   ;;  %v9101_v22 = vld [vmem:[%s8582_s4 + $0x348] sm:$0xff]  }
 0x13d   : > { %12104 = vst [vmem:[#allocation27_spill] sm:$0xff] %v8821_v44  ;;  %v9001_v44 = vld [vmem:[%s8582_s4 + $0x2a8] sm:$0xff]   ;;  %v9048_v53 = vld [vmem:[%s8582_s4 + $0x2f0] sm:$0xff]   ;;  %v9058_v48 = vld [vmem:[%s8582_s4 + $0x300] sm:$0xff]  }
 0x13e   : > { %12105 = vst [vmem:[#allocation28_spill] sm:$0xff] %v8828_v26  ;;  %v8991_v26 = vld [vmem:[%s8582_s4 + $0x298] sm:$0xff]   ;;  %v9068_v47 = vld [vmem:[%s8582_s4 + $0x310] sm:$0xff]   ;;  %v9178_v34 = vld [vmem:[%s8582_s4 + $0x3c0] sm:$0xff]  }
 0x13f   : > { %12106 = vst [vmem:[#allocation29_spill] sm:$0xff] %v8831_v40  ;;  %v8981_v40 = vld [vmem:[%s8582_s4 + $0x288] sm:$0xff]   ;;  %v9168_v42 = vld [vmem:[%s8582_s4 + $0x3b0] sm:$0xff]   ;;  %v9458_v36 = vld [vmem:[%s8582_s4 + $0x580] sm:$0xff]  }
 0x140   : > { %12107 = vst [vmem:[#allocation30_spill] sm:$0xff] %v8838_v31  ;;  %v8971_v31 = vld [vmem:[%s8582_s4 + $0x278] sm:$0xff]  }
 0x141   : > { %12108 = vst [vmem:[#allocation31_spill] sm:$0xff] %v8841_v13  ;;  %v9018_v13 = vld [vmem:[%s8582_s4 + $0x2c0] sm:$0xff]  }
 0x142   : > { %12109 = vst [vmem:[#allocation32_spill] sm:$0xff] %v8848_v21  ;;  %v8951_v21 = vld [vmem:[%s8582_s4 + $0x258] sm:$0xff]  }
 0x143   : > { %12110 = vst [vmem:[#allocation33_spill] sm:$0xff] %v8851_v9  ;;  %v8941_v9 = vld [vmem:[%s8582_s4 + $0x248] sm:$0xff]  }
 0x144   : > { %12111 = vst [vmem:[#allocation34_spill] sm:$0xff] %v8858_v19  ;;  %v8901_v19 = vld [vmem:[%s8582_s4 + $0x208] sm:$0xff]  }
 0x145   : > { %12112 = vst [vmem:[#allocation35_spill] sm:$0xff] %v8861_v7  ;;  %v8968_v7 = vld [vmem:[%s8582_s4 + $0x270] sm:$0xff]  }
 0x146   : > { %12113 = vst [vmem:[#allocation36_spill] sm:$0xff] %v8868_v16  ;;  %v8911_v16 = vld [vmem:[%s8582_s4 + $0x218] sm:$0xff]  }
 0x147   : > { %12114 = vst [vmem:[#allocation37_spill] sm:$0xff] %v8871_v63  ;;  %v8978_v63 = vld [vmem:[%s8582_s4 + $0x280] sm:$0xff]  }
 0x148   : > { %12115 = vst [vmem:[#allocation38_spill] sm:$0xff] %v8878_v15  ;;  %v8921_v15 = vld [vmem:[%s8582_s4 + $0x228] sm:$0xff]  }
 0x149   : > { %12116 = vst [vmem:[#allocation39_spill] sm:$0xff] %v8881_v57  ;;  %v8988_v57 = vld [vmem:[%s8582_s4 + $0x290] sm:$0xff]  }
 0x14a   : > { %12117 = vst [vmem:[#allocation40_spill] sm:$0xff] %v8888_v50  ;;  %v8931_v50 = vld [vmem:[%s8582_s4 + $0x238] sm:$0xff]  }
 0x14b   : > { %12118 = vst [vmem:[#allocation41_spill] sm:$0xff] %v8891_v62  ;;  %v8998_v62 = vld [vmem:[%s8582_s4 + $0x2a0] sm:$0xff]  }
 0x14c   : > { %12119 = vst [vmem:[#allocation42_spill] sm:$0xff] %v8951_v21  ;;  %v9519_v21 = vld [vmem:[%s8582_s4 + $0x5d0] sm:$0xff]  }
 0x14d   : > { %12120 = vst [vmem:[#allocation43_spill] sm:$0xff] %v8958_v55  ;;  %v9188_v55 = vld [vmem:[%s8582_s4 + $0x3d0] sm:$0xff]  }
 0x14e   : > { %12121 = vst [vmem:[#allocation44_spill] sm:$0xff] %v8961_v60  ;;  %v9111_v60 = vld [vmem:[%s8582_s4 + $0x358] sm:$0xff]  }
 0x14f   : > { %12122 = vst [vmem:[#allocation45_spill] sm:$0xff] %v8968_v7  ;;  %v9011_v7 = vld [vmem:[%s8582_s4 + $0x2b8] sm:$0xff]  }
 0x150   : > { %12123 = vst [vmem:[#allocation46_spill] sm:$0xff] %v8971_v31  ;;  %v9078_v31 = vld [vmem:[%s8582_s4 + $0x320] sm:$0xff]  }
 0x151   : > { %12124 = vst [vmem:[#allocation47_spill] sm:$0xff] %v8978_v63  ;;  %v9021_v63 = vld [vmem:[%s8582_s4 + $0x2c8] sm:$0xff]  }
 0x152   : > { %12125 = vst [vmem:[#allocation48_spill] sm:$0xff] %v8981_v40  ;;  %v9088_v40 = vld [vmem:[%s8582_s4 + $0x330] sm:$0xff]  }
 0x153   : > { %12126 = vst [vmem:[#allocation49_spill] sm:$0xff] %v8988_v57  ;;  %v9031_v57 = vld [vmem:[%s8582_s4 + $0x2d8] sm:$0xff]  }
 0x154   : > { %12127 = vst [vmem:[#allocation50_spill] sm:$0xff] %v8991_v26  ;;  %v9098_v26 = vld [vmem:[%s8582_s4 + $0x340] sm:$0xff]  }
 0x155   : > { %12128 = vst [vmem:[#allocation51_spill] sm:$0xff] %v8998_v62  ;;  %v9041_v62 = vld [vmem:[%s8582_s4 + $0x2e8] sm:$0xff]  }
 0x156   : > { %12129 = vst [vmem:[#allocation52_spill] sm:$0xff] %v9001_v44  ;;  %v9108_v44 = vld [vmem:[%s8582_s4 + $0x350] sm:$0xff]  }
 0x157   : > { %12130 = vst [vmem:[#allocation53_spill] sm:$0xff] %v9008_v56  ;;  %v9051_v56 = vld [vmem:[%s8582_s4 + $0x2f8] sm:$0xff]  }
 0x158   : > { %12131 = vst [vmem:[#allocation54_spill] sm:$0xff] %v9011_v7  ;;  %v9118_v7 = vld [vmem:[%s8582_s4 + $0x360] sm:$0xff]  }
 0x159   : > { %12132 = vst [vmem:[#allocation55_spill] sm:$0xff] %v9018_v13  ;;  %v9061_v13 = vld [vmem:[%s8582_s4 + $0x308] sm:$0xff]  }
 0x15a   : > { %12133 = vst [vmem:[#allocation56_spill] sm:$0xff] %v9021_v63  ;;  %v9128_v63 = vld [vmem:[%s8582_s4 + $0x370] sm:$0xff]  }
 0x15b   : > { %12134 = vst [vmem:[#allocation57_spill] sm:$0xff] %v9028_v59  ;;  %v9071_v59 = vld [vmem:[%s8582_s4 + $0x318] sm:$0xff]  }
 0x15c   : > { %12135 = vst [vmem:[#allocation58_spill] sm:$0xff] %v9031_v57  ;;  %v9138_v57 = vld [vmem:[%s8582_s4 + $0x380] sm:$0xff]  }
 0x15d   : > { %12136 = vst [vmem:[#allocation59_spill] sm:$0xff] %v9038_v54  ;;  %v9081_v54 = vld [vmem:[%s8582_s4 + $0x328] sm:$0xff]  }
 0x15e   : > { %12137 = vst [vmem:[#allocation60_spill] sm:$0xff] %v9041_v62  ;;  %v9148_v62 = vld [vmem:[%s8582_s4 + $0x390] sm:$0xff]  }
 0x15f   : > { %12138 = vst [vmem:[#allocation61_spill] sm:$0xff] %v9048_v53  ;;  %v9091_v53 = vld [vmem:[%s8582_s4 + $0x338] sm:$0xff]  }
 0x160   : > { %12139 = vst [vmem:[#allocation62_spill] sm:$0xff] %v9051_v56  ;;  %v9158_v56 = vld [vmem:[%s8582_s4 + $0x3a0] sm:$0xff]  }
 0x161   : > { %12140 = vst [vmem:[#allocation63_spill] sm:$0xff] %v9091_v53  ;;  %v9198_v53 = vld [vmem:[%s8582_s4 + $0x3e0] sm:$0xff]  }
 0x162   : > { %12141 = vst [vmem:[#allocation64_spill] sm:$0xff] %v9098_v26  ;;  %v9141_v26 = vld [vmem:[%s8582_s4 + $0x388] sm:$0xff]  }
 0x163   : > { %12142 = vst [vmem:[#allocation65_spill] sm:$0xff] %v9101_v22  ;;  %v9208_v22 = vld [vmem:[%s8582_s4 + $0x3f0] sm:$0xff]  }
 0x164   : > { %12143 = vst [vmem:[#allocation66_spill] sm:$0xff] %v9108_v44  ;;  %v9151_v44 = vld [vmem:[%s8582_s4 + $0x398] sm:$0xff]  }
 0x165   : > { %12144 = vst [vmem:[#allocation67_spill] sm:$0xff] %v9111_v60  ;;  %v9218_v60 = vld [vmem:[%s8582_s4 + $0x400] sm:$0xff]  }
 0x166   : > { %12145 = vst [vmem:[#allocation68_spill] sm:$0xff] %v9118_v7  ;;  %v9161_v7 = vld [vmem:[%s8582_s4 + $0x3a8] sm:$0xff]  }
 0x167   : > { %12146 = vst [vmem:[#allocation69_spill] sm:$0xff] %v9121_v41  ;;  %v9228_v41 = vld [vmem:[%s8582_s4 + $0x410] sm:$0xff]  }
 0x168   : > { %12147 = vst [vmem:[#allocation70_spill] sm:$0xff] %v9128_v63  ;;  %v9171_v63 = vld [vmem:[%s8582_s4 + $0x3b8] sm:$0xff]  }
 0x169   : > { %12148 = vst [vmem:[#allocation71_spill] sm:$0xff] %v9131_v32  ;;  %v9238_v32 = vld [vmem:[%s8582_s4 + $0x420] sm:$0xff]  }
 0x16a   : > { %12149 = vst [vmem:[#allocation72_spill] sm:$0xff] %v9138_v57  ;;  %v9181_v57 = vld [vmem:[%s8582_s4 + $0x3c8] sm:$0xff]  }
 0x16b   : > { %12150 = vst [vmem:[#allocation73_spill] sm:$0xff] %v9141_v26  ;;  %v9248_v26 = vld [vmem:[%s8582_s4 + $0x430] sm:$0xff]  }
 0x16c   : > { %12151 = vst [vmem:[#allocation74_spill] sm:$0xff] %v9148_v62  ;;  %v9191_v62 = vld [vmem:[%s8582_s4 + $0x3d8] sm:$0xff]  }
 0x16d   : > { %12152 = vst [vmem:[#allocation75_spill] sm:$0xff] %v9151_v44  ;;  %v9258_v44 = vld [vmem:[%s8582_s4 + $0x440] sm:$0xff]  }
 0x16e   : > { %12153 = vst [vmem:[#allocation76_spill] sm:$0xff] %v9158_v56  ;;  %v9201_v56 = vld [vmem:[%s8582_s4 + $0x3e8] sm:$0xff]  }
 0x16f   : > { %12154 = vst [vmem:[#allocation77_spill] sm:$0xff] %v9161_v7  ;;  %v9268_v7 = vld [vmem:[%s8582_s4 + $0x450] sm:$0xff]  }
 0x170   : > { %12155 = vst [vmem:[#allocation78_spill] sm:$0xff] %v9168_v42  ;;  %v9211_v42 = vld [vmem:[%s8582_s4 + $0x3f8] sm:$0xff]  }
 0x171   : > { %12156 = vst [vmem:[#allocation79_spill] sm:$0xff] %v9171_v63  ;;  %v9278_v63 = vld [vmem:[%s8582_s4 + $0x460] sm:$0xff]  }
 0x172   : > { %12157 = vst [vmem:[#allocation80_spill] sm:$0xff] %v9178_v34  ;;  %v9221_v34 = vld [vmem:[%s8582_s4 + $0x408] sm:$0xff]  }
 0x173   : > { %12158 = vst [vmem:[#allocation81_spill] sm:$0xff] %v9181_v57  ;;  %v9288_v57 = vld [vmem:[%s8582_s4 + $0x470] sm:$0xff]  }
 0x174   : > { %12159 = vst [vmem:[#allocation82_spill] sm:$0xff] %v9188_v55  ;;  %v9231_v55 = vld [vmem:[%s8582_s4 + $0x418] sm:$0xff]  }
 0x175   : > { %12160 = vst [vmem:[#allocation83_spill] sm:$0xff] %v9191_v62  ;;  %v9298_v62 = vld [vmem:[%s8582_s4 + $0x480] sm:$0xff]  }
 0x176   : > { %12161 = vst [vmem:[#allocation84_spill] sm:$0xff] %v9198_v53  ;;  %v9241_v53 = vld [vmem:[%s8582_s4 + $0x428] sm:$0xff]  }
 0x177   : > { %12162 = vst [vmem:[#allocation85_spill] sm:$0xff] %v9201_v56  ;;  %v9308_v56 = vld [vmem:[%s8582_s4 + $0x490] sm:$0xff]  }
 0x178   : > { %12163 = vst [vmem:[#allocation86_spill] sm:$0xff] %v9208_v22  ;;  %v9251_v22 = vld [vmem:[%s8582_s4 + $0x438] sm:$0xff]  }
 0x179   : > { %12164 = vst [vmem:[#allocation87_spill] sm:$0xff] %v9211_v42  ;;  %v9318_v42 = vld [vmem:[%s8582_s4 + $0x4a0] sm:$0xff]  }
 0x17a   : > { %12165 = vst [vmem:[#allocation88_spill] sm:$0xff] %v9218_v60  ;;  %v9261_v60 = vld [vmem:[%s8582_s4 + $0x448] sm:$0xff]  }
 0x17b   : > { %12166 = vst [vmem:[#allocation89_spill] sm:$0xff] %v9221_v34  ;;  %v9328_v34 = vld [vmem:[%s8582_s4 + $0x4b0] sm:$0xff]  }
 0x17c   : > { %12167 = vst [vmem:[#allocation90_spill] sm:$0xff] %v9228_v41  ;;  %v9271_v41 = vld [vmem:[%s8582_s4 + $0x458] sm:$0xff]  }
 0x17d   : > { %12168 = vst [vmem:[#allocation91_spill] sm:$0xff] %v9231_v55  ;;  %v9338_v55 = vld [vmem:[%s8582_s4 + $0x4c0] sm:$0xff]  }
 0x17e   : > { %12169 = vst [vmem:[#allocation92_spill] sm:$0xff] %v9238_v32  ;;  %v9281_v32 = vld [vmem:[%s8582_s4 + $0x468] sm:$0xff]  }
 0x17f   : > { %12170 = vst [vmem:[#allocation93_spill] sm:$0xff] %v9241_v53  ;;  %v9348_v53 = vld [vmem:[%s8582_s4 + $0x4d0] sm:$0xff]  }
 0x180   : > { %12171 = vst [vmem:[#allocation94_spill] sm:$0xff] %v9248_v26  ;;  %v9291_v26 = vld [vmem:[%s8582_s4 + $0x478] sm:$0xff]  }
 0x181   : > { %12172 = vst [vmem:[#allocation95_spill] sm:$0xff] %v9251_v22  ;;  %v9358_v22 = vld [vmem:[%s8582_s4 + $0x4e0] sm:$0xff]  }
 0x182   : > { %12173 = vst [vmem:[#allocation96_spill] sm:$0xff] %v9258_v44  ;;  %v9301_v44 = vld [vmem:[%s8582_s4 + $0x488] sm:$0xff]  }
 0x183   : > { %12174 = vst [vmem:[#allocation97_spill] sm:$0xff] %v9261_v60  ;;  %v9368_v60 = vld [vmem:[%s8582_s4 + $0x4f0] sm:$0xff]  }
 0x184   : > { %12175 = vst [vmem:[#allocation98_spill] sm:$0xff] %v9268_v7  ;;  %v9311_v7 = vld [vmem:[%s8582_s4 + $0x498] sm:$0xff]  }
 0x185   : > { %12176 = vst [vmem:[#allocation99_spill] sm:$0xff] %v9271_v41  ;;  %v9378_v41 = vld [vmem:[%s8582_s4 + $0x500] sm:$0xff]  }
 0x186   : > { %12177 = vst [vmem:[#allocation100_spill] sm:$0xff] %v9278_v63  ;;  %v9321_v63 = vld [vmem:[%s8582_s4 + $0x4a8] sm:$0xff]  }
 0x187   : > { %12178 = vst [vmem:[#allocation101_spill] sm:$0xff] %v9281_v32  ;;  %v9388_v32 = vld [vmem:[%s8582_s4 + $0x510] sm:$0xff]  }
 0x188   : > { %12179 = vst [vmem:[#allocation102_spill] sm:$0xff] %v9288_v57  ;;  %v9331_v57 = vld [vmem:[%s8582_s4 + $0x4b8] sm:$0xff]  }
 0x189   : > { %12180 = vst [vmem:[#allocation103_spill] sm:$0xff] %v9291_v26  ;;  %v9398_v26 = vld [vmem:[%s8582_s4 + $0x520] sm:$0xff]  }
 0x18a   : > { %12181 = vst [vmem:[#allocation104_spill] sm:$0xff] %v9298_v62  ;;  %v9341_v62 = vld [vmem:[%s8582_s4 + $0x4c8] sm:$0xff]  }
 0x18b   : > { %12182 = vst [vmem:[#allocation105_spill] sm:$0xff] %v9301_v44  ;;  %v9408_v44 = vld [vmem:[%s8582_s4 + $0x530] sm:$0xff]  }
 0x18c   : > { %12183 = vst [vmem:[#allocation106_spill] sm:$0xff] %v9308_v56  ;;  %v9351_v56 = vld [vmem:[%s8582_s4 + $0x4d8] sm:$0xff]  }
 0x18d   : > { %12184 = vst [vmem:[#allocation107_spill] sm:$0xff] %v9311_v7  ;;  %v9418_v7 = vld [vmem:[%s8582_s4 + $0x540] sm:$0xff]  }
 0x18e   : > { %12185 = vst [vmem:[#allocation108_spill] sm:$0xff] %v9318_v42  ;;  %v9361_v42 = vld [vmem:[%s8582_s4 + $0x4e8] sm:$0xff]  }
 0x18f   : > { %12186 = vst [vmem:[#allocation109_spill] sm:$0xff] %v9321_v63  ;;  %v9428_v63 = vld [vmem:[%s8582_s4 + $0x550] sm:$0xff]  }
 0x190   : > { %12187 = vst [vmem:[#allocation110_spill] sm:$0xff] %v9328_v34  ;;  %v9371_v34 = vld [vmem:[%s8582_s4 + $0x4f8] sm:$0xff]  }
 0x191   : > { %12188 = vst [vmem:[#allocation111_spill] sm:$0xff] %v9331_v57  ;;  %v9438_v57 = vld [vmem:[%s8582_s4 + $0x560] sm:$0xff]  }
 0x192   : > { %12189 = vst [vmem:[#allocation112_spill] sm:$0xff] %v9338_v55  ;;  %v9381_v55 = vld [vmem:[%s8582_s4 + $0x508] sm:$0xff]  }
 0x193   : > { %12190 = vst [vmem:[#allocation113_spill] sm:$0xff] %v9341_v62  ;;  %v9448_v62 = vld [vmem:[%s8582_s4 + $0x570] sm:$0xff]  }
 0x194   : > { %12191 = vst [vmem:[#allocation114_spill] sm:$0xff] %v9348_v53  ;;  %v9391_v53 = vld [vmem:[%s8582_s4 + $0x518] sm:$0xff]  }
 0x195   : > { %12192 = vst [vmem:[#allocation115_spill] sm:$0xff] %v9351_v56  ;;  %v9461_v56 = vld [vmem:[%s8582_s4 + $0x588] sm:$0xff]  }
 0x196   : > { %12193 = vst [vmem:[#allocation116_spill] sm:$0xff] %v9358_v22  ;;  %v9401_v22 = vld [vmem:[%s8582_s4 + $0x528] sm:$0xff]  }
 0x197   : > { %12194 = vst [vmem:[#allocation117_spill] sm:$0xff] %v9361_v42  ;;  %v9468_v42 = vld [vmem:[%s8582_s4 + $0x590] sm:$0xff]  }
 0x198   : > { %12195 = vst [vmem:[#allocation118_spill] sm:$0xff] %v9368_v60  ;;  %v9411_v60 = vld [vmem:[%s8582_s4 + $0x538] sm:$0xff]  }
 0x199   : > { %12196 = vst [vmem:[#allocation119_spill] sm:$0xff] %v9371_v34  ;;  %v12222_v34 = vunpack.c.l.bf16 %v8586_v1 }
 0x19a   : > { %12197 = vst [vmem:[#allocation120_spill] sm:$0xff] %v9378_v41  ;;  %v9421_v41 = vld [vmem:[%s8582_s4 + $0x548] sm:$0xff]  }
 0x19b   : > { %12198 = vst [vmem:[#allocation121_spill] sm:$0xff] %v9381_v55  ;;  %v9485_v55 = vld [vmem:[%s8582_s4 + $0x5a8] sm:$0xff]  }
 0x19c   : > { %12199 = vst [vmem:[#allocation122_spill] sm:$0xff] %v9388_v32  ;;  %v9431_v32 = vld [vmem:[%s8582_s4 + $0x558] sm:$0xff]  }
 0x19d   : > { %12200 = vst [vmem:[#allocation123_spill] sm:$0xff] %v9391_v53  ;;  %v12235_v53 = vunpack.c.h.bf16 %v8738_v61 }
 0x19e   : > { %12201 = vst [vmem:[#allocation124_spill] sm:$0xff] %v9398_v26  ;;  %v9441_v26 = vld [vmem:[%s8582_s4 + $0x568] sm:$0xff]  }
 0x19f   : > { %12202 = vst [vmem:[#allocation125_spill] sm:$0xff] %v9401_v22  ;;  %v9491_v22 = vld [vmem:[%s8582_s4 + $0x5b0] sm:$0xff]  }
 0x1a0   : > { %12203 = vst [vmem:[#allocation126_spill] sm:$0xff] %v9408_v44  ;;  %v9451_v44 = vld [vmem:[%s8582_s4 + $0x578] sm:$0xff]  }
 0x1a1   : > { %12204 = vst [vmem:[#allocation127_spill] sm:$0xff] %v9411_v60  ;;  %v9471_v60 = vld [vmem:[%s8582_s4 + $0x598] sm:$0xff]  }
 0x1a2   : > { %12205 = vst [vmem:[#allocation128_spill] sm:$0xff] %v9418_v7 }
 0x1a3   : > { %12206 = vst [vmem:[#allocation129_spill] sm:$0xff] %v9421_v41  ;;  %v9495_v41 = vld [vmem:[%s8582_s4 + $0x5b8] sm:$0xff]  }
 0x1a4   : > { %12207 = vst [vmem:[#allocation130_spill] sm:$0xff] %v9428_v63  ;;  %v12224_v63 = vunpack.c.l.bf16 %v8589_v2 }
 0x1a5   : > { %12208 = vst [vmem:[#allocation131_spill] sm:$0xff] %v9431_v32  ;;  %v12223_v32 = vunpack.c.h.bf16 %v8586_v1 }
 0x1a6   : > { %12209 = vst [vmem:[#allocation132_spill] sm:$0xff] %v9438_v57  ;;  %v9482_v57 = vld [vmem:[%s8582_s4 + $0x5a0] sm:$0xff]  }
 0x1a7   : > { %12210 = vst [vmem:[#allocation133_spill] sm:$0xff] %v9441_v26  ;;  %v9498_v26 = vld [vmem:[%s8582_s4 + $0x5c0] sm:$0xff]  }
 0x1a8   : > { %12211 = vst [vmem:[#allocation134_spill] sm:$0xff] %v9448_v62  ;;  %v5376_v62 = vsel %vm5374_vm1, %v12223_v32, 0.0  ;;  %v9546_v32 = vld [vmem:[%s8582_s4 + $0x5f0] sm:$0xff]  }
 0x1a9   : > { %12212 = vst [vmem:[#allocation135_spill] sm:$0xff] %v9451_v44  ;;  %v9513_v44 = vld [vmem:[%s8582_s4 + $0x5c8] sm:$0xff]  }
 0x1aa   : > { %12213 = vst [vmem:[#allocation136_spill] sm:$0xff] %v9458_v36  ;;  %v12228_v36 = vunpack.c.h.bf16 %v8589_v2  ;;  %v12230_v2 = vunpack.c.l.bf16 %v8592_v3 }
 0x1ab   : > { %12214 = vst [vmem:[#allocation137_spill] sm:$0xff] %v9461_v56  ;;  %v5375_v56 = vsel %vm5374_vm1, %v12222_v34, 0.0 }
 0x1ac   : > { %12215 = vst [vmem:[#allocation138_spill] sm:$0xff] %v9468_v42  ;;  %v5378_v42 = vsel %vm5374_vm1, %v12224_v63, 0.0  ;;  %v5377_v7 = vadd.f32 %v5376_v62, %v5375_v56  ;;  %v9522_v63 = vld [vmem:[%s8582_s4 + $0x5d8] sm:$0xff]   ;;  %v5509_v56 = vsel %vm5374_vm1, %v12235_v53, 0.0  ;;  %v12238_v53 = vunpack.c.l.bf16 %v8595_v4 }
 0x1ad   : > { %12216 = vst [vmem:[#allocation139_spill] sm:$0xff] %v9471_v60  ;;  %v5380_v60 = vsel %vm5374_vm1, %v12228_v36, 0.0  ;;  %v5382_v36 = vsel %vm5374_vm1, %v12230_v2, 0.0 }
 0x1ae   : > { %12217 = vst [vmem:[#allocation140_spill] sm:$0xff] %v9482_v57  ;;  %v5379_v34 = vadd.f32 %v5378_v42, %v5377_v7  ;;  %v9543_v42 = vld [vmem:[%s8582_s4 + $0x5e8] sm:$0xff]   ;;  %v12236_v7 = vunpack.c.l.bf16 %v8741_v43  ;;  %v5386_v57 = vsel %vm5374_vm1, %v12238_v53, 0.0  ;;  %v12240_v53 = vunpack.c.h.bf16 %v8595_v4 }
 0x1af   : > { %12218 = vst [vmem:[#allocation141_spill] sm:$0xff] %v9485_v55  ;;  %v9534_v55 = vld [vmem:[%s8582_s4 + $0x5e0] sm:$0xff]  }
 0x1b0   : > { %12219 = vst [vmem:[#allocation142_spill] sm:$0xff] %v9491_v22  ;;  %v5381_v1 = vadd.f32 %v5380_v60, %v5379_v34  ;;  %v12233_v22 = vunpack.c.h.bf16 %v8592_v3  ;;  %v9563_v3 = vld [vmem:[%s8582_s4 + $0x5f8] sm:$0xff]  }
 0x1b1   : > { %12220 = vst [vmem:[#allocation143_spill] sm:$0xff] %v9495_v41  ;;  %v9584_v41 = vld [vmem:[%s8582_s4 + $0x610] sm:$0xff]  }
 0x1b2   : > { %12221 = vst [vmem:[#allocation144_spill] sm:$0xff] %v9498_v26  ;;  %v5384_v62 = vsel %vm5374_vm1, %v12233_v22, 0.0  ;;  %v5383_v22 = vadd.f32 %v5382_v36, %v5381_v1  ;;  %v9579_v1 = vld [vmem:[%s8582_s4 + $0x608] sm:$0xff]  }
 0x1b3   : > { %12225 = vst [vmem:[#allocation145_spill] sm:$0xff] %v9513_v44  ;;  %v12234_v44 = vunpack.c.l.bf16 %v8738_v61  ;;  %v9568_v61 = vld [vmem:[%s8582_s4 + $0x600] sm:$0xff]  }
 0x1b4   : > { %12226 = vst [vmem:[#allocation146_spill] sm:$0xff] %v9519_v21  ;;  %v5511_v21 = vsel %vm5374_vm1, %v12236_v7, 0.0  ;;  %v12239_v7 = vunpack.c.h.bf16 %v8741_v43  ;;  %v5388_v43 = vsel %vm5374_vm1, %v12240_v53, 0.0  ;;  %v12243_v53 = vunpack.c.h.bf16 %v8748_v58 }
 0x1b5   : > { %12227 = vst [vmem:[#allocation147_spill] sm:$0xff] %v9522_v63  ;;  %v5508_v2 = vsel %vm5374_vm1, %v12234_v44, 0.0  ;;  %v12245_v44 = vunpack.c.l.bf16 %v8751_v39  ;;  %v9621_v63 = vld [vmem:[%s8582_s4 + $0x620] sm:$0xff]  }
 0x1b6   : > { %12229 = vst [vmem:[#allocation148_spill] sm:$0xff] %v9534_v55  ;;  %v5510_v26 = vadd.f32 %v5509_v56, %v5508_v2  ;;  %v5513_v60 = vsel %vm5374_vm1, %v12239_v7, 0.0  ;;  %v5385_v56 = vadd.f32 %v5384_v62, %v5383_v22  ;;  %v12241_v7 = vunpack.c.l.bf16 %v8748_v58  ;;  %v10145_v55 = vld [vmem:[%s8582_s4 + $0x790] sm:$0xff]  }
 0x1b7   : > { %12231 = vst [vmem:[#allocation149_spill] sm:$0xff] %v9543_v42  ;;  %v12242_v2 = vunpack.c.l.bf16 %v8598_v5  ;;  %v12246_v58 = vunpack.c.l.bf16 %v8898_v14  ;;  %v12249_v22 = vunpack.c.h.bf16 %v8751_v39  ;;  %v12252_v39 = vunpack.c.h.bf16 %v8601_v6  ;;  %v12398_v42 = vld [vmem:[#allocation45_spill] sm:$0xff] }
 0x1b8   : > { %12232 = vst [vmem:[#allocation150_spill] sm:$0xff] %v9546_v32  ;;  %v5512_v36 = vadd.f32 %v5511_v21, %v5510_v26  ;;  %v5515_v34 = vsel %vm5374_vm1, %v12241_v7, 0.0  ;;  %v5387_v21 = vadd.f32 %v5386_v57, %v5385_v56  ;;  %v5517_v32 = vsel %vm5374_vm1, %v12243_v53, 0.0 }
 0x1b9   : > { %12237 = vst [vmem:[#allocation151_spill] sm:$0xff] %v9563_v3  ;;  %v5390_v4 = vsel %vm5374_vm1, %v12242_v2, 0.0  ;;  %v12244_v56 = vunpack.c.h.bf16 %v8598_v5  ;;  %v5519_v2 = vsel %vm5374_vm1, %v12245_v44, 0.0  ;;  %v5641_v53 = vsel %vm5374_vm1, %v12246_v58, 0.0 }
 0x1ba   : > { %v5514_v26 = vadd.f32 %v5513_v60, %v5512_v36  ;;  %v5389_v62 = vadd.f32 %v5388_v43, %v5387_v21  ;;  %v9605_v60 = vld [vmem:[%s8582_s4 + $0x618] sm:$0xff]   ;;  %v12247_v7 = vunpack.c.h.bf16 %v8898_v14  ;;  %v5521_v58 = vsel %vm5374_vm1, %v12249_v22, 0.0  ;;  %12403 = vst [vmem:[#allocation182_spill] sm:$0xff] %v10145_v55 }
 0x1bb   : > { %v5392_v36 = vsel %vm5374_vm1, %v12244_v56, 0.0  ;;  %v12248_v56 = vunpack.c.l.bf16 %v8601_v6  ;;  %v12250_v14 = vunpack.c.l.bf16 %v8901_v19  ;;  %v5396_v22 = vsel %vm5374_vm1, %v12252_v39, 0.0 }
 0x1bc   : > { %v5516_v57 = vadd.f32 %v5515_v34, %v5514_v26  ;;  %v5642_v43 = vsel %vm5374_vm1, %v12247_v7, 0.0  ;;  %v5391_v21 = vadd.f32 %v5390_v4, %v5389_v62  ;;  %v12251_v7 = vunpack.c.h.bf16 %v8901_v19 }
 0x1bd   : > { %v5643_v5 = vadd.f32 %v5642_v43, %v5641_v53  ;;  %v5394_v44 = vsel %vm5374_vm1, %v12248_v56, 0.0  ;;  %v5644_v3 = vsel %vm5374_vm1, %v12250_v14, 0.0  ;;  %v9638_v56 = vld [vmem:[%s8582_s4 + $0x628] sm:$0xff]   ;;  %v12253_v14 = vunpack.c.l.bf16 %v8758_v0 }
 0x1be   : > { %v5518_v26 = vadd.f32 %v5517_v32, %v5516_v57  ;;  %v5646_v32 = vsel %vm5374_vm1, %v12251_v7, 0.0  ;;  %v5393_v4 = vadd.f32 %v5392_v36, %v5391_v21  ;;  %v12254_v34 = vunpack.c.l.bf16 %v8908_v10  ;;  %v10081_v36 = vld [vmem:[%s8582_s4 + $0x750] sm:$0xff]  }
 0x1bf   : > { %v5645_v53 = vadd.f32 %v5644_v3, %v5643_v5  ;;  %v5523_v19 = vsel %vm5374_vm1, %v12253_v14, 0.0  ;;  %v9652_v5 = vld [vmem:[%s8582_s4 + $0x630] sm:$0xff]   ;;  %v12255_v6 = vunpack.c.l.bf16 %v8608_v11  ;;  %v12256_v14 = vunpack.c.h.bf16 %v8758_v0  ;;  %12383 = vst [vmem:[#allocation178_spill] sm:$0xff] %v10081_v36 }
 0x1c0   : > { %v5520_v57 = vadd.f32 %v5519_v2, %v5518_v26  ;;  %v5648_v7 = vsel %vm5374_vm1, %v12254_v34, 0.0  ;;  %v5395_v3 = vadd.f32 %v5394_v44, %v5393_v4  ;;  %v12257_v62 = vunpack.c.h.bf16 %v8908_v10 }
 0x1c1   : > { %v5647_v21 = vadd.f32 %v5646_v32, %v5645_v53  ;;  %v5398_v39 = vsel %vm5374_vm1, %v12255_v6, 0.0  ;;  %v5525_v43 = vsel %vm5374_vm1, %v12256_v14, 0.0  ;;  %v9666_v53 = vld [vmem:[%s8582_s4 + $0x638] sm:$0xff]   ;;  %v12259_v6 = vunpack.c.h.bf16 %v8608_v11 }
 0x1c2   : > { %v5522_v2 = vadd.f32 %v5521_v58, %v5520_v57  ;;  %v5650_v34 = vsel %vm5374_vm1, %v12257_v62, 0.0  ;;  %v5397_v58 = vadd.f32 %v5396_v22, %v5395_v3  ;;  %12258 = vst [vmem:[#allocation152_spill] sm:$0xff] %v9666_v53  ;;  %v12260_v14 = vunpack.c.l.bf16 %v8761_v37 }
 0x1c3   : > { %v5649_v4 = vadd.f32 %v5648_v7, %v5647_v21  ;;  %v5400_v0 = vsel %vm5374_vm1, %v12259_v6, 0.0  ;;  %v12261_v26 = vunpack.c.l.bf16 %v8911_v16  ;;  %v9680_v21 = vld [vmem:[%s8582_s4 + $0x640] sm:$0xff]   ;;  %v12263_v11 = vunpack.c.l.bf16 %v8611_v12 }
 0x1c4   : > { %v5524_v32 = vadd.f32 %v5523_v19, %v5522_v2  ;;  %v5527_v10 = vsel %vm5374_vm1, %v12260_v14, 0.0  ;;  %v5399_v19 = vadd.f32 %v5398_v39, %v5397_v58  ;;  %12262 = vst [vmem:[#allocation153_spill] sm:$0xff] %v9680_v21  ;;  %v12264_v14 = vunpack.c.h.bf16 %v8761_v37  ;;  %v12506_v21 = vld [vmem:[#allocation35_spill] sm:$0xff] }
 0x1c5   : > { %v5652_v62 = vsel %vm5374_vm1, %v12261_v26, 0.0  ;;  %v5651_v3 = vadd.f32 %v5650_v34, %v5649_v4  ;;  %v5402_v6 = vsel %vm5374_vm1, %v12263_v11, 0.0  ;;  %v12265_v44 = vunpack.c.h.bf16 %v8911_v16  ;;  %v9694_v4 = vld [vmem:[%s8582_s4 + $0x648] sm:$0xff]  }
 0x1c6   : > { %v5526_v7 = vadd.f32 %v5525_v43, %v5524_v32  ;;  %v5529_v57 = vsel %vm5374_vm1, %v12264_v14, 0.0  ;;  %v5401_v43 = vadd.f32 %v5400_v0, %v5399_v19  ;;  %12266 = vst [vmem:[#allocation154_spill] sm:$0xff] %v9694_v4  ;;  %v12267_v2 = vunpack.c.h.bf16 %v8611_v12 }
 0x1c7   : > { %v5654_v26 = vsel %vm5374_vm1, %v12265_v44, 0.0  ;;  %v5653_v58 = vadd.f32 %v5652_v62, %v5651_v3  ;;  %v12268_v37 = vunpack.c.l.bf16 %v8768_v52  ;;  %v12269_v16 = vunpack.c.l.bf16 %v8918_v8 }
 0x1c8   : > { %v5528_v34 = vadd.f32 %v5527_v10, %v5526_v7  ;;  %v5404_v11 = vsel %vm5374_vm1, %v12267_v2, 0.0  ;;  %v5403_v10 = vadd.f32 %v5402_v6, %v5401_v43  ;;  %v12270_v3 = vunpack.c.l.bf16 %v8618_v17  ;;  %v10049_v7 = vld [vmem:[%s8582_s4 + $0x730] sm:$0xff]  }
 0x1c9   : > { %v5531_v14 = vsel %vm5374_vm1, %v12268_v37, 0.0  ;;  %v5656_v44 = vsel %vm5374_vm1, %v12269_v16, 0.0  ;;  %v5655_v19 = vadd.f32 %v5654_v26, %v5653_v58  ;;  %v12271_v2 = vunpack.c.h.bf16 %v8768_v52 }
 0x1ca   : > { %v5530_v62 = vadd.f32 %v5529_v57, %v5528_v34  ;;  %v5406_v12 = vsel %vm5374_vm1, %v12270_v3, 0.0  ;;  %v12272_v37 = vunpack.c.h.bf16 %v8918_v8  ;;  %v5405_v0 = vadd.f32 %v5404_v11, %v5403_v10 }
 0x1cb   : > { %v5533_v32 = vsel %vm5374_vm1, %v12271_v2, 0.0  ;;  %v5657_v57 = vadd.f32 %v5656_v44, %v5655_v19  ;;  %v12273_v43 = vunpack.c.h.bf16 %v8618_v17  ;;  %v12274_v58 = vunpack.c.l.bf16 %v8771_v33 }
 0x1cc   : > { %v5658_v39 = vsel %vm5374_vm1, %v12272_v37, 0.0  ;;  %v5532_v6 = vadd.f32 %v5531_v14, %v5530_v62  ;;  %v12275_v3 = vunpack.c.l.bf16 %v8921_v15  ;;  %v5407_v2 = vadd.f32 %v5406_v12, %v5405_v0 }
 0x1cd   : > { %v5408_v34 = vsel %vm5374_vm1, %v12273_v43, 0.0  ;;  %v5535_v52 = vsel %vm5374_vm1, %v12274_v58, 0.0  ;;  %v12276_v37 = vunpack.c.l.bf16 %v8621_v18  ;;  %v5659_v44 = vadd.f32 %v5658_v39, %v5657_v57 }
 0x1ce   : > { %v5660_v8 = vsel %vm5374_vm1, %v12275_v3, 0.0  ;;  %v5534_v14 = vadd.f32 %v5533_v32, %v5532_v6  ;;  %v12277_v10 = vunpack.c.h.bf16 %v8771_v33  ;;  %v12278_v62 = vunpack.c.h.bf16 %v8921_v15 }
 0x1cf   : > { %v5410_v11 = vsel %vm5374_vm1, %v12276_v37, 0.0  ;;  %v12279_v43 = vunpack.c.l.bf16 %v9058_v48  ;;  %v12280_v0 = vunpack.c.h.bf16 %v9058_v48  ;;  %v5409_v3 = vadd.f32 %v5408_v34, %v5407_v2 }
 0x1d0   : > { %v5537_v17 = vsel %vm5374_vm1, %v12277_v10, 0.0  ;;  %v5662_v19 = vsel %vm5374_vm1, %v12278_v62, 0.0  ;;  %v12281_v32 = vunpack.c.h.bf16 %v8621_v18  ;;  %v5536_v33 = vadd.f32 %v5535_v52, %v5534_v14 }
 0x1d1   : > { %v5774_v58 = vsel %vm5374_vm1, %v12279_v43, 0.0  ;;  %v5775_v12 = vsel %vm5374_vm1, %v12280_v0, 0.0  ;;  %v5661_v6 = vadd.f32 %v5660_v8, %v5659_v44  ;;  %v12282_v57 = vunpack.c.l.bf16 %v8778_v28 }
 0x1d2   : > { %v5412_v39 = vsel %vm5374_vm1, %v12281_v32, 0.0  ;;  %v12283_v37 = vunpack.c.l.bf16 %v8928_v45  ;;  %v5776_v62 = vadd.f32 %v5775_v12, %v5774_v58  ;;  %v12284_v48 = vunpack.c.l.bf16 %v9061_v13 }
 0x1d3   : > { %v5539_v15 = vsel %vm5374_vm1, %v12282_v57, 0.0  ;;  %v5411_v34 = vadd.f32 %v5410_v11, %v5409_v3  ;;  %v12285_v18 = vunpack.c.l.bf16 %v8628_v23  ;;  %v5538_v52 = vadd.f32 %v5537_v17, %v5536_v33 }
 0x1d4   : > { %v5664_v10 = vsel %vm5374_vm1, %v12283_v37, 0.0  ;;  %v5777_v43 = vsel %vm5374_vm1, %v12284_v48, 0.0  ;;  %v5663_v8 = vadd.f32 %v5662_v19, %v5661_v6  ;;  %v12286_v14 = vunpack.c.h.bf16 %v8778_v28 }
 0x1d5   : > { %v5414_v2 = vsel %vm5374_vm1, %v12285_v18, 0.0  ;;  %v12287_v0 = vunpack.c.h.bf16 %v8928_v45  ;;  %v5778_v58 = vadd.f32 %v5777_v43, %v5776_v62  ;;  %v12288_v12 = vunpack.c.h.bf16 %v9061_v13 }
 0x1d6   : > { %v5541_v44 = vsel %vm5374_vm1, %v12286_v14, 0.0  ;;  %v5413_v11 = vadd.f32 %v5412_v39, %v5411_v34  ;;  %v12289_v3 = vunpack.c.h.bf16 %v8628_v23  ;;  %v5540_v17 = vadd.f32 %v5539_v15, %v5538_v52 }
 0x1d7   : > { %v5666_v32 = vsel %vm5374_vm1, %v12287_v0, 0.0  ;;  %v5779_v57 = vsel %vm5374_vm1, %v12288_v12, 0.0  ;;  %v5665_v19 = vadd.f32 %v5664_v10, %v5663_v8  ;;  %v12290_v28 = vunpack.c.l.bf16 %v8781_v27 }
 0x1d8   : > { %v5416_v37 = vsel %vm5374_vm1, %v12289_v3, 0.0  ;;  %v12291_v45 = vunpack.c.l.bf16 %v8931_v50  ;;  %v5780_v62 = vadd.f32 %v5779_v57, %v5778_v58  ;;  %v12292_v13 = vunpack.c.l.bf16 %v9068_v47 }
 0x1d9   : > { %v5543_v33 = vsel %vm5374_vm1, %v12290_v28, 0.0  ;;  %v5415_v39 = vadd.f32 %v5414_v2, %v5413_v11  ;;  %v12293_v23 = vunpack.c.l.bf16 %v8631_v24  ;;  %v5542_v15 = vadd.f32 %v5541_v44, %v5540_v17 }
 0x1da   : > { %v5668_v6 = vsel %vm5374_vm1, %v12291_v45, 0.0  ;;  %v5781_v48 = vsel %vm5374_vm1, %v12292_v13, 0.0  ;;  %v5667_v10 = vadd.f32 %v5666_v32, %v5665_v19  ;;  %v12294_v34 = vunpack.c.h.bf16 %v8781_v27 }
 0x1db   : > { %v5418_v43 = vsel %vm5374_vm1, %v12293_v23, 0.0  ;;  %v12295_v52 = vunpack.c.h.bf16 %v8931_v50  ;;  %v5782_v14 = vadd.f32 %v5781_v48, %v5780_v62  ;;  %v12296_v0 = vunpack.c.h.bf16 %v9068_v47 }
 0x1dc   : > { %v5545_v18 = vsel %vm5374_vm1, %v12294_v34, 0.0  ;;  %v5417_v2 = vadd.f32 %v5416_v37, %v5415_v39  ;;  %v12297_v12 = vunpack.c.h.bf16 %v8631_v24  ;;  %v5544_v44 = vadd.f32 %v5543_v33, %v5542_v15 }
 0x1dd   : > { %v5670_v8 = vsel %vm5374_vm1, %v12295_v52, 0.0  ;;  %v5783_v58 = vsel %vm5374_vm1, %v12296_v0, 0.0  ;;  %v5669_v32 = vadd.f32 %v5668_v6, %v5667_v10  ;;  %v12298_v27 = vunpack.c.l.bf16 %v8788_v20 }
 0x1de   : > { %v5420_v57 = vsel %vm5374_vm1, %v12297_v12, 0.0  ;;  %v12299_v50 = vunpack.c.l.bf16 %v8938_v49  ;;  %v5784_v17 = vadd.f32 %v5783_v58, %v5782_v14  ;;  %v12300_v47 = vunpack.c.l.bf16 %v9071_v59 }
 0x1df   : > { %v5547_v11 = vsel %vm5374_vm1, %v12298_v27, 0.0  ;;  %v5419_v19 = vadd.f32 %v5418_v43, %v5417_v2  ;;  %v12301_v24 = vunpack.c.l.bf16 %v8638_v29  ;;  %v5546_v33 = vadd.f32 %v5545_v18, %v5544_v44  ;;  %v9830_v2 = vld [vmem:[%s8582_s4 + $0x658] sm:$0xff]  }
 0x1e0   : > { %v5672_v3 = vsel %vm5374_vm1, %v12299_v50, 0.0  ;;  %v5785_v37 = vsel %vm5374_vm1, %v12300_v47, 0.0  ;;  %v5671_v45 = vadd.f32 %v5670_v8, %v5669_v32  ;;  %v12302_v6 = vunpack.c.h.bf16 %v8788_v20  ;;  %v9818_v20 = vld [vmem:[%s8582_s4 + $0x650] sm:$0xff]   ;;  %12310 = vst [vmem:[#allocation156_spill] sm:$0xff] %v9830_v2 }
 0x1e1   : > { %v5422_v28 = vsel %vm5374_vm1, %v12301_v24, 0.0  ;;  %v12303_v13 = vunpack.c.h.bf16 %v8938_v49  ;;  %v5786_v39 = vadd.f32 %v5785_v37, %v5784_v17  ;;  %v12304_v23 = vunpack.c.h.bf16 %v9071_v59  ;;  %12306 = vst [vmem:[#allocation155_spill] sm:$0xff] %v9818_v20  ;;  %v12378_v24 = vld [vmem:[#allocation44_spill] sm:$0xff]  ;;  %v12500_v20 = vld [vmem:[#allocation69_spill] sm:$0xff] }
 0x1e2   : > { %v5549_v62 = vsel %vm5374_vm1, %v12302_v6, 0.0  ;;  %v5421_v15 = vadd.f32 %v5420_v57, %v5419_v19  ;;  %v12305_v10 = vunpack.c.h.bf16 %v8638_v29  ;;  %v5548_v18 = vadd.f32 %v5547_v11, %v5546_v33 }
 0x1e3   : > { %v5674_v48 = vsel %vm5374_vm1, %v12303_v13, 0.0  ;;  %v5787_v43 = vsel %vm5374_vm1, %v12304_v23, 0.0  ;;  %v5673_v52 = vadd.f32 %v5672_v3, %v5671_v45  ;;  %v12307_v8 = vunpack.c.l.bf16 %v8791_v46 }
 0x1e4   : > { %v5424_v34 = vsel %vm5374_vm1, %v12305_v10, 0.0  ;;  %v12308_v14 = vunpack.c.l.bf16 %v8941_v9  ;;  %v5788_v0 = vadd.f32 %v5787_v43, %v5786_v39  ;;  %v12309_v58 = vunpack.c.l.bf16 %v9078_v31  ;;  %v9857_v39 = vld [vmem:[%s8582_s4 + $0x670] sm:$0xff]  }
 0x1e5   : > { %v5551_v49 = vsel %vm5374_vm1, %v12307_v8, 0.0  ;;  %v5423_v12 = vadd.f32 %v5422_v28, %v5421_v15  ;;  %v12311_v57 = vunpack.c.l.bf16 %v8641_v30  ;;  %v5550_v32 = vadd.f32 %v5549_v62, %v5548_v18  ;;  %v9846_v28 = vld [vmem:[%s8582_s4 + $0x660] sm:$0xff]   ;;  %12318 = vst [vmem:[#allocation159_spill] sm:$0xff] %v9857_v39  ;;  %v9865_v8 = vld [vmem:[%s8582_s4 + $0x678] sm:$0xff]   ;;  %v10017_v18 = vld [vmem:[%s8582_s4 + $0x710] sm:$0xff]  }
 0x1e6   : > { %v5676_v59 = vsel %vm5374_vm1, %v12308_v14, 0.0  ;;  %v5789_v29 = vsel %vm5374_vm1, %v12309_v58, 0.0  ;;  %v5675_v27 = vadd.f32 %v5674_v48, %v5673_v52  ;;  %v12312_v11 = vunpack.c.h.bf16 %v8791_v46  ;;  %12315 = vst [vmem:[#allocation157_spill] sm:$0xff] %v9846_v28  ;;  %v12358_v58 = vld [vmem:[#allocation43_spill] sm:$0xff]  ;;  %v12486_v28 = vld [vmem:[#allocation17_spill] sm:$0xff] }
 0x1e7   : > { %v5426_v44 = vsel %vm5374_vm1, %v12311_v57, 0.0  ;;  %v12313_v3 = vunpack.c.h.bf16 %v8941_v9  ;;  %v5790_v47 = vadd.f32 %v5789_v29, %v5788_v0  ;;  %v12314_v37 = vunpack.c.h.bf16 %v9078_v31  ;;  %v9851_v9 = vld [vmem:[%s8582_s4 + $0x668] sm:$0xff]   ;;  %12320 = vst [vmem:[#allocation160_spill] sm:$0xff] %v9865_v8  ;;  %v12356_v29 = vld [vmem:[#allocation24_spill] sm:$0xff] }
 0x1e8   : > { %v5553_v50 = vsel %vm5374_vm1, %v12312_v11, 0.0  ;;  %v5425_v33 = vadd.f32 %v5424_v34, %v5423_v12  ;;  %v5552_v45 = vadd.f32 %v5551_v49, %v5550_v32  ;;  %v5677_v6 = vadd.f32 %v5676_v59, %v5675_v27  ;;  %12316 = vst [vmem:[#allocation158_spill] sm:$0xff] %v9851_v9  ;;  %v9877_v12 = vld [vmem:[%s8582_s4 + $0x680] sm:$0xff]   ;;  %v9882_v27 = vld [vmem:[%s8582_s4 + $0x688] sm:$0xff]   ;;  %v12480_v8 = vld [vmem:[#allocation52_spill] sm:$0xff] }
 0x1e9   : > { %v5678_v17 = vsel %vm5374_vm1, %v12313_v3, 0.0  ;;  %v5791_v19 = vsel %vm5374_vm1, %v12314_v37, 0.0  ;;  %v12317_v31 = vunpack.c.l.bf16 %v9081_v54  ;;  %v12319_v43 = vunpack.c.h.bf16 %v8641_v30  ;;  %12323 = vst [vmem:[#allocation161_spill] sm:$0xff] %v9877_v12 }
 0x1ea   : > { %v5792_v13 = vadd.f32 %v5791_v19, %v5790_v47  ;;  %v5427_v23 = vadd.f32 %v5426_v44, %v5425_v33  ;;  %v5554_v10 = vadd.f32 %v5553_v50, %v5552_v45  ;;  %v5679_v34 = vadd.f32 %v5678_v17, %v5677_v6  ;;  %12324 = vst [vmem:[#allocation162_spill] sm:$0xff] %v9882_v27  ;;  %v9889_v47 = vld [vmem:[%s8582_s4 + $0x690] sm:$0xff]  }
 0x1eb   : > { %v5793_v48 = vsel %vm5374_vm1, %v12317_v31, 0.0  ;;  %v5428_v15 = vsel %vm5374_vm1, %v12319_v43, 0.0  ;;  %v12321_v49 = vunpack.c.l.bf16 %v8798_v25  ;;  %v12322_v59 = vunpack.c.l.bf16 %v8948_v51  ;;  %12326 = vst [vmem:[#allocation163_spill] sm:$0xff] %v9889_v47  ;;  %v9897_v31 = vld [vmem:[%s8582_s4 + $0x698] sm:$0xff]   ;;  %v9953_v6 = vld [vmem:[%s8582_s4 + $0x6d0] sm:$0xff]  }
 0x1ec   : > { %v5794_v57 = vadd.f32 %v5793_v48, %v5792_v13  ;;  %v5429_v11 = vadd.f32 %v5428_v15, %v5427_v23  ;;  %v12325_v50 = vunpack.c.h.bf16 %v9081_v54  ;;  %v12327_v37 = vunpack.c.l.bf16 %v8648_v35  ;;  %12328 = vst [vmem:[#allocation164_spill] sm:$0xff] %v9897_v31  ;;  %v12462_v31 = vld [vmem:[#allocation50_spill] sm:$0xff]  ;;  %v12466_v27 = vld [vmem:[#allocation68_spill] sm:$0xff] }
 0x1ed   : > { %v5555_v14 = vsel %vm5374_vm1, %v12321_v49, 0.0  ;;  %v5680_v30 = vsel %vm5374_vm1, %v12322_v59, 0.0  ;;  %v12329_v54 = vunpack.c.h.bf16 %v8798_v25  ;;  %v12330_v23 = vunpack.c.h.bf16 %v8948_v51  ;;  %v9909_v49 = vld [vmem:[%s8582_s4 + $0x6a0] sm:$0xff]   ;;  %v9946_v25 = vld [vmem:[%s8582_s4 + $0x6c8] sm:$0xff]   ;;  %12343 = vst [vmem:[#allocation170_spill] sm:$0xff] %v9953_v6 }
 0x1ee   : > { %v5795_v3 = vsel %vm5374_vm1, %v12325_v50, 0.0  ;;  %v5430_v19 = vsel %vm5374_vm1, %v12327_v37, 0.0  ;;  %v5556_v33 = vadd.f32 %v5555_v14, %v5554_v10  ;;  %v5681_v45 = vadd.f32 %v5680_v30, %v5679_v34  ;;  %12331 = vst [vmem:[#allocation165_spill] sm:$0xff] %v9909_v49  ;;  %v9914_v30 = vld [vmem:[%s8582_s4 + $0x6a8] sm:$0xff]   ;;  %v12338_v10 = vld [vmem:[#allocation42_spill] sm:$0xff] }
 0x1ef   : > { %v5557_v48 = vsel %vm5374_vm1, %v12329_v54, 0.0  ;;  %v5682_v43 = vsel %vm5374_vm1, %v12330_v23, 0.0  ;;  %v5796_v14 = vadd.f32 %v5795_v3, %v5794_v57  ;;  %12332 = vst [vmem:[#allocation166_spill] sm:$0xff] %v9914_v30  ;;  %v5431_v51 = vadd.f32 %v5430_v19, %v5429_v11  ;;  %v9921_v23 = vld [vmem:[%s8582_s4 + $0x6b0] sm:$0xff]   ;;  %v9929_v19 = vld [vmem:[%s8582_s4 + $0x6b8] sm:$0xff]   ;;  %v12449_v49 = vld [vmem:[#allocation30_spill] sm:$0xff] }
 0x1f0   : > { %v12333_v50 = vunpack.c.l.bf16 %v9088_v40  ;;  %12334 = vst [vmem:[#allocation167_spill] sm:$0xff] %v9921_v23  ;;  %v12335_v34 = vunpack.c.h.bf16 %v8648_v35  ;;  %v5558_v3 = vadd.f32 %v5557_v48, %v5556_v33  ;;  %v5683_v59 = vadd.f32 %v5682_v43, %v5681_v45  ;;  %v9941_v48 = vld [vmem:[%s8582_s4 + $0x6c0] sm:$0xff]   ;;  %v12344_v45 = vld [vmem:[#allocation7_spill] sm:$0xff]  ;;  %v9985_v11 = vld [vmem:[%s8582_s4 + $0x6f0] sm:$0xff]  }
 0x1f1   : > { %12336 = vst [vmem:[#allocation168_spill] sm:$0xff] %v9929_v19  ;;  %v12339_v15 = vunpack.c.l.bf16 %v12338_v10  ;;  %v12345_v17 = vunpack.c.l.bf16 %v12344_v45  ;;  %v12348_v33 = vunpack.c.h.bf16 %v12338_v10  ;;  %v12359_v0 = vunpack.c.l.bf16 %v12358_v58 }
 0x1f2   : > { %v5797_v37 = vsel %vm5374_vm1, %v12333_v50, 0.0  ;;  %v5432_v57 = vsel %vm5374_vm1, %v12335_v34, 0.0  ;;  %v12337_v50 = vunpack.c.l.bf16 %v8801_v38  ;;  %12340 = vst [vmem:[#allocation42_spill] sm:$0xff] %v9941_v48 }
 0x1f3   : > { %v5684_v35 = vsel %vm5374_vm1, %v12339_v15, 0.0  ;;  %v5798_v43 = vadd.f32 %v5797_v37, %v5796_v14  ;;  %12341 = vst [vmem:[#allocation169_spill] sm:$0xff] %v9946_v25  ;;  %v12342_v15 = vunpack.c.h.bf16 %v9088_v40  ;;  %v5434_v14 = vsel %vm5374_vm1, %v12345_v17, 0.0 }
 0x1f4   : > { %v5559_v54 = vsel %vm5374_vm1, %v12337_v50, 0.0  ;;  %v5433_v50 = vadd.f32 %v5432_v57, %v5431_v51  ;;  %v5685_v34 = vadd.f32 %v5684_v35, %v5683_v59  ;;  %v9961_v57 = vld [vmem:[%s8582_s4 + $0x6d8] sm:$0xff]   ;;  %v12347_v40 = vunpack.c.h.bf16 %v8801_v38  ;;  %v9978_v51 = vld [vmem:[%s8582_s4 + $0x6e8] sm:$0xff]   ;;  %12363 = vst [vmem:[#allocation174_spill] sm:$0xff] %v10017_v18 }
 0x1f5   : > { %v5799_v13 = vsel %vm5374_vm1, %v12342_v15, 0.0  ;;  %v5560_v37 = vadd.f32 %v5559_v54, %v5558_v3  ;;  %12346 = vst [vmem:[#allocation7_spill] sm:$0xff] %v9961_v57  ;;  %v5686_v32 = vsel %vm5374_vm1, %v12348_v33, 0.0  ;;  %v9973_v54 = vld [vmem:[%s8582_s4 + $0x6e0] sm:$0xff]   ;;  %v12354_v59 = vunpack.c.h.bf16 %v12344_v45  ;;  %v10010_v38 = vld [vmem:[%s8582_s4 + $0x708] sm:$0xff]  }
 0x1f6   : > { %v5561_v15 = vsel %vm5374_vm1, %v12347_v40, 0.0  ;;  %12349 = vst [vmem:[#allocation171_spill] sm:$0xff] %v9973_v54  ;;  %v5800_v3 = vadd.f32 %v5799_v13, %v5798_v43  ;;  %v5435_v10 = vadd.f32 %v5434_v14, %v5433_v50  ;;  %v12351_v40 = vld [vmem:[#allocation63_spill] sm:$0xff]  ;;  %v5687_v35 = vadd.f32 %v5686_v32, %v5685_v34  ;;  %v9993_v14 = vld [vmem:[%s8582_s4 + $0x6f8] sm:$0xff]   ;;  %v10005_v34 = vld [vmem:[%s8582_s4 + $0x700] sm:$0xff]  }
 0x1f7   : > { %12350 = vst [vmem:[#allocation172_spill] sm:$0xff] %v9978_v51  ;;  %v12352_v33 = vunpack.c.l.bf16 %v12351_v40  ;;  %v5436_v13 = vsel %vm5374_vm1, %v12354_v59, 0.0  ;;  %v5562_v43 = vadd.f32 %v5561_v15, %v5560_v37  ;;  %v5688_v45 = vsel %vm5374_vm1, %v12359_v0, 0.0  ;;  %v12364_v32 = vld [vmem:[#allocation8_spill] sm:$0xff]  ;;  %v10042_v50 = vld [vmem:[%s8582_s4 + $0x728] sm:$0xff]   ;;  %v12396_v54 = vld [vmem:[#allocation26_spill] sm:$0xff] }
 0x1f8   : > { %12353 = vst [vmem:[#allocation63_spill] sm:$0xff] %v9985_v11  ;;  %v12362_v0 = vunpack.c.h.bf16 %v12351_v40  ;;  %v12365_v62 = vunpack.c.l.bf16 %v12364_v32  ;;  %v5689_v59 = vadd.f32 %v5688_v45, %v5687_v35  ;;  %v12367_v40 = vunpack.c.h.bf16 %v12356_v29  ;;  %v10037_v35 = vld [vmem:[%s8582_s4 + $0x720] sm:$0xff]  }
 0x1f9   : > { %v5801_v44 = vsel %vm5374_vm1, %v12352_v33, 0.0  ;;  %12355 = vst [vmem:[#allocation173_spill] sm:$0xff] %v9993_v14  ;;  %v12357_v33 = vunpack.c.l.bf16 %v12356_v29  ;;  %v12368_v37 = vunpack.c.h.bf16 %v12358_v58  ;;  %v10074_v29 = vld [vmem:[%s8582_s4 + $0x748] sm:$0xff]   ;;  %v12399_v57 = vunpack.c.l.bf16 %v12398_v42 }
 0x1fa   : > { %12360 = vst [vmem:[#allocation24_spill] sm:$0xff] %v10005_v34  ;;  %v5802_v15 = vadd.f32 %v5801_v44, %v5800_v3  ;;  %v5803_v52 = vsel %vm5374_vm1, %v12362_v0, 0.0  ;;  %v5438_v44 = vsel %vm5374_vm1, %v12365_v62, 0.0  ;;  %v5565_v0 = vsel %vm5374_vm1, %v12367_v40, 0.0  ;;  %v12371_v40 = vld [vmem:[#allocation64_spill] sm:$0xff]  ;;  %v12376_v62 = vld [vmem:[#allocation25_spill] sm:$0xff] }
 0x1fb   : > { %v5563_v17 = vsel %vm5374_vm1, %v12357_v33, 0.0  ;;  %12361 = vst [vmem:[#allocation43_spill] sm:$0xff] %v10010_v38  ;;  %v5437_v33 = vadd.f32 %v5436_v13, %v5435_v10  ;;  %v10025_v13 = vld [vmem:[%s8582_s4 + $0x718] sm:$0xff]   ;;  %v5690_v46 = vsel %vm5374_vm1, %v12368_v37, 0.0  ;;  %v12372_v37 = vunpack.c.l.bf16 %v12371_v40 }
 0x1fc   : > { %v5564_v3 = vadd.f32 %v5563_v17, %v5562_v43  ;;  %12366 = vst [vmem:[#allocation8_spill] sm:$0xff] %v10025_v13  ;;  %v5804_v43 = vadd.f32 %v5803_v52, %v5802_v15  ;;  %v12374_v17 = vunpack.c.h.bf16 %v12364_v32  ;;  %v5691_v45 = vadd.f32 %v5690_v46, %v5689_v59  ;;  %v10069_v59 = vld [vmem:[%s8582_s4 + $0x740] sm:$0xff]   ;;  %v12384_v46 = vld [vmem:[#allocation9_spill] sm:$0xff] }
 0x1fd   : > { %12369 = vst [vmem:[#allocation175_spill] sm:$0xff] %v10037_v35  ;;  %v5439_v58 = vadd.f32 %v5438_v44, %v5437_v33  ;;  %v5805_v26 = vsel %vm5374_vm1, %v12372_v37, 0.0  ;;  %v10057_v44 = vld [vmem:[%s8582_s4 + $0x738] sm:$0xff]   ;;  %v12377_v37 = vunpack.c.l.bf16 %v12376_v62  ;;  %v12379_v10 = vunpack.c.l.bf16 %v12378_v24  ;;  %v10113_v33 = vld [vmem:[%s8582_s4 + $0x770] sm:$0xff]  }
 0x1fe   : > { %12370 = vst [vmem:[#allocation176_spill] sm:$0xff] %v10042_v50  ;;  %v5440_v52 = vsel %vm5374_vm1, %v12374_v17, 0.0  ;;  %v5566_v15 = vadd.f32 %v5565_v0, %v5564_v3  ;;  %v5806_v0 = vadd.f32 %v5805_v26, %v5804_v43  ;;  %v12385_v14 = vunpack.c.l.bf16 %v12384_v46 }
 0x1ff   : > { %12373 = vst [vmem:[#allocation64_spill] sm:$0xff] %v10049_v7  ;;  %v5567_v16 = vsel %vm5374_vm1, %v12377_v37, 0.0  ;;  %v5692_v32 = vsel %vm5374_vm1, %v12379_v10, 0.0  ;;  %v5441_v37 = vadd.f32 %v5440_v52, %v5439_v58  ;;  %v12382_v10 = vunpack.c.h.bf16 %v12371_v40  ;;  %v10089_v52 = vld [vmem:[%s8582_s4 + $0x758] sm:$0xff]   ;;  %v10106_v58 = vld [vmem:[%s8582_s4 + $0x768] sm:$0xff]  }
 0x200   : > { %12375 = vst [vmem:[#allocation177_spill] sm:$0xff] %v10057_v44  ;;  %v5442_v26 = vsel %vm5374_vm1, %v12385_v14, 0.0  ;;  %v5568_v43 = vadd.f32 %v5567_v16, %v5566_v15  ;;  %v5693_v17 = vadd.f32 %v5692_v32, %v5691_v45  ;;  %v12387_v40 = vunpack.c.h.bf16 %v12376_v62  ;;  %v10101_v45 = vld [vmem:[%s8582_s4 + $0x760] sm:$0xff]   ;;  %v10138_v62 = vld [vmem:[%s8582_s4 + $0x788] sm:$0xff]  }
 0x201   : > { %12380 = vst [vmem:[#allocation25_spill] sm:$0xff] %v10069_v59  ;;  %v5807_v22 = vsel %vm5374_vm1, %v12382_v10, 0.0  ;;  %v12388_v3 = vunpack.c.h.bf16 %v12378_v24  ;;  %v5443_v24 = vadd.f32 %v5442_v26, %v5441_v37  ;;  %v12394_v14 = vunpack.c.h.bf16 %v12384_v46  ;;  %v10121_v26 = vld [vmem:[%s8582_s4 + $0x778] sm:$0xff]   ;;  %v10177_v37 = vld [vmem:[%s8582_s4 + $0x7b0] sm:$0xff]  }
 0x202   : > { %12381 = vst [vmem:[#allocation44_spill] sm:$0xff] %v10074_v29  ;;  %v5569_v10 = vsel %vm5374_vm1, %v12387_v40, 0.0  ;;  %v5808_v15 = vadd.f32 %v5807_v22, %v5806_v0  ;;  %v12391_v40 = vld [vmem:[#allocation65_spill] sm:$0xff]  ;;  %v5696_v46 = vsel %vm5374_vm1, %v12399_v57, 0.0  ;;  %v12481_v59 = vunpack.c.l.bf16 %v12480_v8 }
 0x203   : > { %12386 = vst [vmem:[#allocation9_spill] sm:$0xff] %v10089_v52  ;;  %v5694_v11 = vsel %vm5374_vm1, %v12388_v3, 0.0  ;;  %v12392_v3 = vunpack.c.l.bf16 %v12391_v40  ;;  %v5444_v22 = vsel %vm5374_vm1, %v12394_v14, 0.0  ;;  %v5570_v0 = vadd.f32 %v5569_v10, %v5568_v43 }
 0x204   : > { %12389 = vst [vmem:[#allocation179_spill] sm:$0xff] %v10101_v45  ;;  %v5695_v32 = vadd.f32 %v5694_v11, %v5693_v17  ;;  %v10133_v17 = vld [vmem:[%s8582_s4 + $0x780] sm:$0xff]   ;;  %v12402_v57 = vunpack.c.h.bf16 %v12391_v40  ;;  %v12407_v40 = vunpack.c.h.bf16 %v12396_v54  ;;  %v12408_v43 = vunpack.c.h.bf16 %v12398_v42 }
 0x205   : > { %12390 = vst [vmem:[#allocation180_spill] sm:$0xff] %v10106_v58  ;;  %v5809_v51 = vsel %vm5374_vm1, %v12392_v3, 0.0  ;;  %v12397_v3 = vunpack.c.l.bf16 %v12396_v54  ;;  %v12404_v11 = vld [vmem:[#allocation10_spill] sm:$0xff]  ;;  %v10202_v54 = vld [vmem:[%s8582_s4 + $0x7c8] sm:$0xff]   ;;  %v12450_v58 = vunpack.c.l.bf16 %v12449_v49  ;;  %v12487_v50 = vunpack.c.l.bf16 %v12486_v28 }
 0x206   : > { %12393 = vst [vmem:[#allocation65_spill] sm:$0xff] %v10113_v33  ;;  %v5810_v10 = vadd.f32 %v5809_v51, %v5808_v15  ;;  %v5811_v6 = vsel %vm5374_vm1, %v12402_v57, 0.0  ;;  %v12405_v25 = vunpack.c.l.bf16 %v12404_v11  ;;  %v5697_v14 = vadd.f32 %v5696_v46, %v5695_v32  ;;  %v10165_v32 = vld [vmem:[%s8582_s4 + $0x7a0] sm:$0xff]  }
 0x207   : > { %12395 = vst [vmem:[#allocation181_spill] sm:$0xff] %v10121_v26  ;;  %v5571_v16 = vsel %vm5374_vm1, %v12397_v3, 0.0  ;;  %v5445_v3 = vadd.f32 %v5444_v22, %v5443_v24  ;;  %v10153_v22 = vld [vmem:[%s8582_s4 + $0x798] sm:$0xff]   ;;  %v5573_v57 = vsel %vm5374_vm1, %v12407_v40, 0.0  ;;  %v5698_v48 = vsel %vm5374_vm1, %v12408_v43, 0.0  ;;  %v10170_v24 = vld [vmem:[%s8582_s4 + $0x7a8] sm:$0xff]  }
 0x208   : > { %12400 = vst [vmem:[#allocation26_spill] sm:$0xff] %v10133_v17  ;;  %v5446_v51 = vsel %vm5374_vm1, %v12405_v25, 0.0  ;;  %v5572_v15 = vadd.f32 %v5571_v16, %v5570_v0  ;;  %v5812_v0 = vadd.f32 %v5811_v6, %v5810_v10  ;;  %v12411_v40 = vld [vmem:[#allocation66_spill] sm:$0xff]  ;;  %v12414_v16 = vunpack.c.h.bf16 %v12404_v11 }
 0x209   : > { %12401 = vst [vmem:[#allocation45_spill] sm:$0xff] %v10138_v62  ;;  %v5447_v42 = vadd.f32 %v5446_v51, %v5445_v3  ;;  %v12412_v43 = vunpack.c.l.bf16 %v12411_v40  ;;  %v5699_v46 = vadd.f32 %v5698_v48, %v5697_v14  ;;  %v10185_v3 = vld [vmem:[%s8582_s4 + $0x7b8] sm:$0xff]   ;;  %v12416_v51 = vld [vmem:[#allocation27_spill] sm:$0xff]  ;;  %v12418_v25 = vld [vmem:[#allocation46_spill] sm:$0xff]  ;;  %v10382_v2 = vsel %vm5374_vm1, %v12487_v50, 0.0 }
 0x20a   : > { %12406 = vst [vmem:[#allocation10_spill] sm:$0xff] %v10153_v22  ;;  %v5448_v6 = vsel %vm5374_vm1, %v12414_v16, 0.0  ;;  %v5574_v10 = vadd.f32 %v5573_v57, %v5572_v15  ;;  %v12417_v62 = vunpack.c.l.bf16 %v12416_v51  ;;  %v12419_v17 = vunpack.c.l.bf16 %v12418_v25  ;;  %v10197_v14 = vld [vmem:[%s8582_s4 + $0x7c0] sm:$0xff]   ;;  %v12432_v57 = vld [vmem:[#allocation12_spill] sm:$0xff]  ;;  %v12491_v50 = vld [vmem:[#allocation89_spill] sm:$0xff] }
 0x20b   : > { %12409 = vst [vmem:[#allocation183_spill] sm:$0xff] %v10165_v32  ;;  %v5813_v19 = vsel %vm5374_vm1, %v12412_v43, 0.0  ;;  %v12422_v22 = vunpack.c.h.bf16 %v12411_v40  ;;  %v12423_v32 = vld [vmem:[#allocation11_spill] sm:$0xff]  ;;  %v12425_v55 = vunpack.c.h.bf16 %v12416_v51  ;;  %v12426_v40 = vunpack.c.h.bf16 %v12418_v25 }
 0x20c   : > { %12410 = vst [vmem:[#allocation184_spill] sm:$0xff] %v10170_v24  ;;  %v5575_v43 = vsel %vm5374_vm1, %v12417_v62, 0.0  ;;  %v5700_v23 = vsel %vm5374_vm1, %v12419_v17, 0.0  ;;  %v5814_v15 = vadd.f32 %v5813_v19, %v5812_v0  ;;  %v5449_v62 = vadd.f32 %v5448_v6, %v5447_v42  ;;  %v12428_v0 = vld [vmem:[#allocation28_spill] sm:$0xff]  ;;  %v12430_v19 = vld [vmem:[#allocation67_spill] sm:$0xff] }
 0x20d   : > { %12413 = vst [vmem:[#allocation66_spill] sm:$0xff] %v10177_v37  ;;  %v5815_v17 = vsel %vm5374_vm1, %v12422_v22, 0.0  ;;  %v12424_v16 = vunpack.c.l.bf16 %v12423_v32  ;;  %v5576_v24 = vadd.f32 %v5575_v43, %v5574_v10  ;;  %v5701_v26 = vadd.f32 %v5700_v23, %v5699_v46 }
 0x20e   : > { %12415 = vst [vmem:[#allocation185_spill] sm:$0xff] %v10185_v3  ;;  %v5577_v42 = vsel %vm5374_vm1, %v12425_v55, 0.0  ;;  %v5702_v22 = vsel %vm5374_vm1, %v12426_v40, 0.0  ;;  %v5816_v10 = vadd.f32 %v5815_v17, %v5814_v15  ;;  %v12427_v46 = vunpack.c.h.bf16 %v12423_v32  ;;  %v12434_v15 = vld [vmem:[#allocation47_spill] sm:$0xff] }
 0x20f   : > { %12420 = vst [vmem:[#allocation27_spill] sm:$0xff] %v10197_v14  ;;  %v5450_v48 = vsel %vm5374_vm1, %v12424_v16, 0.0  ;;  %v12429_v51 = vunpack.c.l.bf16 %v12428_v0  ;;  %v12431_v25 = vunpack.c.l.bf16 %v12430_v19  ;;  %v12433_v6 = vunpack.c.l.bf16 %v12432_v57 }
 0x210   : > { %12421 = vst [vmem:[#allocation46_spill] sm:$0xff] %v10202_v54  ;;  %v5451_v23 = vadd.f32 %v5450_v48, %v5449_v62  ;;  %v5452_v43 = vsel %vm5374_vm1, %v12427_v46, 0.0  ;;  %v5578_v14 = vadd.f32 %v5577_v42, %v5576_v24  ;;  %v5703_v16 = vadd.f32 %v5702_v22, %v5701_v26  ;;  %v12438_v54 = vld [vmem:[#allocation29_spill] sm:$0xff] }
 0x211   : > { %v5579_v55 = vsel %vm5374_vm1, %v12429_v51, 0.0  ;;  %v5817_v40 = vsel %vm5374_vm1, %v12431_v25, 0.0  ;;  %v5454_v11 = vsel %vm5374_vm1, %v12433_v6, 0.0  ;;  %v12435_v48 = vunpack.c.l.bf16 %v12434_v15  ;;  %v12441_v24 = vld [vmem:[#allocation13_spill] sm:$0xff] }
 0x212   : > { %v12436_v62 = vunpack.c.h.bf16 %v12432_v57  ;;  %v12437_v46 = vunpack.c.h.bf16 %v12428_v0  ;;  %v12439_v25 = vunpack.c.l.bf16 %v12438_v54  ;;  %v12440_v6 = vunpack.c.h.bf16 %v12434_v15 }
 0x213   : > { %v5704_v32 = vsel %vm5374_vm1, %v12435_v48, 0.0  ;;  %v12442_v42 = vunpack.c.l.bf16 %v12441_v24  ;;  %v12443_v57 = vunpack.c.h.bf16 %v12438_v54  ;;  %v5818_v37 = vadd.f32 %v5817_v40, %v5816_v10 }
 0x214   : > { %v5456_v17 = vsel %vm5374_vm1, %v12436_v62, 0.0  ;;  %v5581_v51 = vsel %vm5374_vm1, %v12437_v46, 0.0  ;;  %v5583_v3 = vsel %vm5374_vm1, %v12439_v25, 0.0  ;;  %v5706_v26 = vsel %vm5374_vm1, %v12440_v6, 0.0  ;;  %v12444_v62 = vld [vmem:[#allocation48_spill] sm:$0xff] }
 0x215   : > { %v5458_v22 = vsel %vm5374_vm1, %v12442_v42, 0.0  ;;  %v5585_v48 = vsel %vm5374_vm1, %v12443_v57, 0.0  ;;  %v12445_v0 = vunpack.c.l.bf16 %v12444_v62  ;;  %v5453_v30 = vadd.f32 %v5452_v43, %v5451_v23  ;;  %v12451_v23 = vld [vmem:[#allocation49_spill] sm:$0xff] }
 0x216   : > { %v12446_v25 = vunpack.c.h.bf16 %v12441_v24  ;;  %v12447_v6 = vunpack.c.h.bf16 %v12444_v62  ;;  %v12448_v42 = vunpack.c.h.bf16 %v12430_v19  ;;  %v5580_v57 = vadd.f32 %v5579_v55, %v5578_v14  ;;  %v12453_v24 = vld [vmem:[#allocation14_spill] sm:$0xff] }
 0x217   : > { %v5708_v46 = vsel %vm5374_vm1, %v12445_v0, 0.0  ;;  %v10272_v0 = vsel %vm5374_vm1, %v12450_v58, 0.0  ;;  %v5705_v10 = vadd.f32 %v5704_v32, %v5703_v16  ;;  %v12452_v43 = vunpack.c.l.bf16 %v12451_v23  ;;  %v12458_v32 = vld [vmem:[#allocation15_spill] sm:$0xff] }
 0x218   : > { %v10261_v15 = vsel %vm5374_vm1, %v12446_v25, 0.0  ;;  %v5710_v33 = vsel %vm5374_vm1, %v12447_v6, 0.0  ;;  %v5819_v54 = vsel %vm5374_vm1, %v12448_v42, 0.0  ;;  %v12454_v25 = vunpack.c.l.bf16 %v12453_v24 }
 0x219   : > { %v5712_v40 = vsel %vm5374_vm1, %v12452_v43, 0.0  ;;  %v12455_v19 = vunpack.c.h.bf16 %v12453_v24  ;;  %v12456_v14 = vunpack.c.h.bf16 %v12449_v49  ;;  %v12457_v16 = vunpack.c.h.bf16 %v12451_v23 }
 0x21a   : > { %v10280_v62 = vsel %vm5374_vm1, %v12454_v25, 0.0  ;;  %v12459_v42 = vunpack.c.l.bf16 %v12458_v32  ;;  %v12460_v25 = vld [vmem:[#allocation31_spill] sm:$0xff]  ;;  %v12463_v49 = vunpack.c.l.bf16 %v12462_v31  ;;  %v5820_v45 = vadd.f32 %v5819_v54, %v5818_v37  ;;  %v12469_v37 = vld [vmem:[#allocation32_spill] sm:$0xff] }
 0x21b   : > { %v10285_v6 = vsel %vm5374_vm1, %v12455_v19, 0.0  ;;  %v10290_v58 = vsel %vm5374_vm1, %v12456_v14, 0.0  ;;  %v10295_v55 = vsel %vm5374_vm1, %v12457_v16, 0.0  ;;  %v12461_v24 = vunpack.c.l.bf16 %v12460_v25 }
 0x21c   : > { %v10300_v43 = vsel %vm5374_vm1, %v12459_v42, 0.0  ;;  %v10310_v14 = vsel %vm5374_vm1, %v12463_v49, 0.0  ;;  %v5455_v23 = vadd.f32 %v5454_v11, %v5453_v30  ;;  %v12464_v16 = vunpack.c.h.bf16 %v12460_v25 }
 0x21d   : > { %v10305_v19 = vsel %vm5374_vm1, %v12461_v24, 0.0  ;;  %v12465_v42 = vunpack.c.h.bf16 %v12462_v31  ;;  %v12467_v24 = vunpack.c.l.bf16 %v12466_v27  ;;  %v12468_v12 = vunpack.c.h.bf16 %v12458_v32  ;;  %v12471_v31 = vld [vmem:[#allocation16_spill] sm:$0xff]  ;;  %v12474_v32 = vld [vmem:[#allocation51_spill] sm:$0xff] }
 0x21e   : > { %v10315_v47 = vsel %vm5374_vm1, %v12464_v16, 0.0  ;;  %v5582_v30 = vadd.f32 %v5581_v51, %v5580_v57  ;;  %v12470_v11 = vunpack.c.l.bf16 %v12469_v37  ;;  %v5707_v25 = vadd.f32 %v5706_v26, %v5705_v10 }
 0x21f   : > { %v10320_v52 = vsel %vm5374_vm1, %v12465_v42, 0.0  ;;  %v5821_v36 = vsel %vm5374_vm1, %v12467_v24, 0.0  ;;  %v10328_v49 = vsel %vm5374_vm1, %v12468_v12, 0.0  ;;  %v12472_v16 = vunpack.c.l.bf16 %v12471_v31 }
 0x220   : > { %v10333_v54 = vsel %vm5374_vm1, %v12470_v11, 0.0  ;;  %v12473_v29 = vunpack.c.h.bf16 %v12469_v37  ;;  %v12475_v12 = vunpack.c.l.bf16 %v12474_v32  ;;  %v12476_v57 = vunpack.c.h.bf16 %v12474_v32 }
 0x221   : > { %v10338_v42 = vsel %vm5374_vm1, %v12472_v16, 0.0  ;;  %v12477_v26 = vunpack.c.h.bf16 %v12471_v31  ;;  %v12478_v16 = vld [vmem:[#allocation33_spill] sm:$0xff]  ;;  %v5822_v39 = vadd.f32 %v5821_v36, %v5820_v45  ;;  %v5457_v32 = vadd.f32 %v5456_v17, %v5455_v23  ;;  %v12483_v31 = vld [vmem:[#allocation88_spill] sm:$0xff] }
 0x222   : > { %v10343_v24 = vsel %vm5374_vm1, %v12473_v29, 0.0  ;;  %v10348_v51 = vsel %vm5374_vm1, %v12475_v12, 0.0  ;;  %v10353_v11 = vsel %vm5374_vm1, %v12476_v57, 0.0  ;;  %v12479_v37 = vunpack.c.l.bf16 %v12478_v16 }
 0x223   : > { %v10358_v10 = vsel %vm5374_vm1, %v12477_v26, 0.0  ;;  %v10368_v12 = vsel %vm5374_vm1, %v12481_v59, 0.0  ;;  %v12482_v57 = vunpack.c.h.bf16 %v12466_v27  ;;  %v12484_v9 = vunpack.c.l.bf16 %v12483_v31 }
 0x224   : > { %v10363_v29 = vsel %vm5374_vm1, %v12479_v37, 0.0  ;;  %v12485_v7 = vunpack.c.h.bf16 %v12483_v31  ;;  %v5584_v59 = vadd.f32 %v5583_v3, %v5582_v30  ;;  %v12488_v36 = vunpack.c.h.bf16 %v12478_v16  ;;  %v12493_v30 = vld [vmem:[#allocation34_spill] sm:$0xff] }
 0x225   : > { %v5823_v44 = vsel %vm5374_vm1, %v12482_v57, 0.0  ;;  %v5907_v26 = vsel %vm5374_vm1, %v12484_v9, 0.0  ;;  %v5709_v45 = vadd.f32 %v5708_v46, %v5707_v25  ;;  %v12489_v17 = vunpack.c.h.bf16 %v12486_v28  ;;  %v12495_v46 = vld [vmem:[#allocation53_spill] sm:$0xff] }
 0x226   : > { %v5908_v37 = vsel %vm5374_vm1, %v12485_v7, 0.0  ;;  %v10387_v27 = vsel %vm5374_vm1, %v12488_v36, 0.0  ;;  %v12490_v23 = vunpack.c.h.bf16 %v12480_v8  ;;  %v12492_v31 = vunpack.c.l.bf16 %v12491_v50 }
 0x227   : > { %v10392_v9 = vsel %vm5374_vm1, %v12489_v17, 0.0  ;;  %v5909_v57 = vadd.f32 %v5908_v37, %v5907_v26  ;;  %v12494_v16 = vunpack.c.l.bf16 %v12493_v30  ;;  %v12496_v28 = vunpack.c.l.bf16 %v12495_v46  ;;  %v12498_v37 = vld [vmem:[#allocation18_spill] sm:$0xff] }
 0x228   : > { %v10397_v7 = vsel %vm5374_vm1, %v12490_v23, 0.0  ;;  %v5910_v3 = vsel %vm5374_vm1, %v12492_v31, 0.0  ;;  %v5824_v17 = vadd.f32 %v5823_v44, %v5822_v39  ;;  %v12497_v8 = vunpack.c.h.bf16 %v12491_v50  ;;  %v12503_v50 = vld [vmem:[#allocation90_spill] sm:$0xff] }
 0x229   : > { %v10405_v36 = vsel %vm5374_vm1, %v12494_v16, 0.0  ;;  %v10410_v25 = vsel %vm5374_vm1, %v12496_v28, 0.0  ;;  %v5459_v26 = vadd.f32 %v5458_v22, %v5457_v32  ;;  %v12499_v35 = vunpack.c.l.bf16 %v12498_v37 }
 0x22a   : > { %v5912_v23 = vsel %vm5374_vm1, %v12497_v8, 0.0  ;;  %v12501_v13 = vunpack.c.l.bf16 %v12500_v20  ;;  %v5911_v4 = vadd.f32 %v5910_v3, %v5909_v57  ;;  %v5586_v18 = vadd.f32 %v5585_v48, %v5584_v59 }
 0x22b   : > { %v10418_v31 = vsel %vm5374_vm1, %v12499_v35, 0.0  ;;  %v12502_v28 = vunpack.c.h.bf16 %v12493_v30  ;;  %v5711_v44 = vadd.f32 %v5710_v33, %v5709_v45  ;;  %v12504_v8 = vunpack.c.l.bf16 %v12503_v50  ;;  %v12509_v45 = vld [vmem:[#allocation19_spill] sm:$0xff]  ;;  %v12511_v30 = vld [vmem:[#allocation54_spill] sm:$0xff] }
 0x22c   : > { %v5825_v16 = vsel %vm5374_vm1, %v12501_v13, 0.0  ;;  %v12505_v32 = vunpack.c.h.bf16 %v12498_v37  ;;  %v12507_v38 = vunpack.c.l.bf16 %v12506_v21  ;;  %v12508_v48 = vunpack.c.h.bf16 %v12495_v46 }
 0x22d   : > { %v10426_v39 = vsel %vm5374_vm1, %v12502_v28, 0.0  ;;  %v5914_v22 = vsel %vm5374_vm1, %v12504_v8, 0.0  ;;  %v5913_v33 = vadd.f32 %v5912_v23, %v5911_v4  ;;  %v12510_v57 = vunpack.c.l.bf16 %v12509_v45 }
 0x22e   : > { %v10434_v35 = vsel %vm5374_vm1, %v12505_v32, 0.0  ;;  %v10439_v13 = vsel %vm5374_vm1, %v12507_v38, 0.0  ;;  %v10444_v59 = vsel %vm5374_vm1, %v12508_v48, 0.0  ;;  %v12512_v37 = vunpack.c.l.bf16 %v12511_v30 }
 0x22f   : > { %v10449_v3 = vsel %vm5374_vm1, %v12510_v57, 0.0  ;;  %v5826_v8 = vadd.f32 %v5825_v16, %v5824_v17  ;;  %v12513_v38 = vunpack.c.h.bf16 %v12503_v50  ;;  %v5461_v46 = vadd.f32 %v10261_v15, %v5459_v26  ;;  %v12517_v50 = vld [vmem:[#allocation91_spill] sm:$0xff] }
 0x230   : > { %v10454_v28 = vsel %vm5374_vm1, %v12512_v37, 0.0  ;;  %v12514_v48 = vunpack.c.h.bf16 %v12506_v21  ;;  %v12515_v23 = vunpack.c.h.bf16 %v12500_v20  ;;  %v5915_v34 = vadd.f32 %v5914_v22, %v5913_v33  ;;  %v12520_v20 = vld [vmem:[#allocation36_spill] sm:$0xff] }
 0x231   : > { %v5916_v32 = vsel %vm5374_vm1, %v12513_v38, 0.0  ;;  %v5588_v37 = vadd.f32 %v10272_v0, %v5586_v18  ;;  %v5713_v53 = vadd.f32 %v5712_v40, %v5711_v44  ;;  %v12516_v17 = vunpack.c.h.bf16 %v12511_v30  ;;  %v12523_v18 = vld [vmem:[#allocation55_spill] sm:$0xff]  ;;  %v12525_v33 = vld [vmem:[#allocation20_spill] sm:$0xff] }
 0x232   : > { %v10463_v4 = vsel %vm5374_vm1, %v12514_v48, 0.0  ;;  %v5827_v57 = vsel %vm5374_vm1, %v12515_v23, 0.0  ;;  %v12518_v15 = vunpack.c.l.bf16 %v12517_v50  ;;  %v12519_v26 = vunpack.c.h.bf16 %v12509_v45 }
 0x233   : > { %v10472_v16 = vsel %vm5374_vm1, %v12516_v17, 0.0  ;;  %v12521_v48 = vunpack.c.l.bf16 %v12520_v20  ;;  %v12524_v0 = vunpack.c.l.bf16 %v12523_v18  ;;  %v5917_v44 = vadd.f32 %v5916_v32, %v5915_v34  ;;  %v12532_v32 = vld [vmem:[#allocation70_spill] sm:$0xff] }
 0x234   : > { %v5918_v21 = vsel %vm5374_vm1, %v12518_v15, 0.0  ;;  %v10480_v38 = vsel %vm5374_vm1, %v12519_v26, 0.0  ;;  %v12526_v30 = vunpack.c.l.bf16 %v12525_v33  ;;  %v12528_v45 = vunpack.c.h.bf16 %v12520_v20 }
 0x235   : > { %v10485_v22 = vsel %vm5374_vm1, %v12521_v48, 0.0  ;;  %v10490_v40 = vsel %vm5374_vm1, %v12524_v0, 0.0  ;;  %v5828_v15 = vadd.f32 %v5827_v57, %v5826_v8  ;;  %v12529_v26 = vunpack.c.h.bf16 %v12517_v50 }
 0x236   : > { %12522 = vst [vmem:[#allocation11_spill] sm:$0xff] %v10485_v22  ;;  %v10495_v23 = vsel %vm5374_vm1, %v12526_v30, 0.0  ;;  %v10500_v17 = vsel %vm5374_vm1, %v12528_v45, 0.0  ;;  %v5463_v22 = vadd.f32 %v10280_v62, %v5461_v46  ;;  %v12530_v0 = vunpack.c.h.bf16 %v12523_v18  ;;  %v12536_v62 = vld [vmem:[#allocation92_spill] sm:$0xff] }
 0x237   : > { %12527 = vst [vmem:[#allocation28_spill] sm:$0xff] %v10495_v23  ;;  %v5920_v48 = vsel %vm5374_vm1, %v12529_v26, 0.0  ;;  %v12533_v30 = vunpack.c.l.bf16 %v12532_v32  ;;  %v5919_v20 = vadd.f32 %v5918_v21, %v5917_v44  ;;  %v12534_v45 = vunpack.c.h.bf16 %v12525_v33  ;;  %v12538_v26 = vld [vmem:[#allocation21_spill] sm:$0xff]  ;;  %v12544_v33 = vld [vmem:[#allocation56_spill] sm:$0xff] }
 0x238   : > { %v10509_v34 = vsel %vm5374_vm1, %v12530_v0, 0.0  ;;  %v5590_v57 = vadd.f32 %v10290_v58, %v5588_v37  ;;  %v5715_v50 = vadd.f32 %v10295_v55, %v5713_v53  ;;  %v12537_v46 = vunpack.c.l.bf16 %v12536_v62 }
 0x239   : > { %12531 = vst [vmem:[#allocation67_spill] sm:$0xff] %v10509_v34  ;;  %v5829_v23 = vsel %vm5374_vm1, %v12533_v30, 0.0  ;;  %v10517_v8 = vsel %vm5374_vm1, %v12534_v45, 0.0  ;;  %v12539_v0 = vunpack.c.l.bf16 %v12538_v26  ;;  %v12541_v30 = vld [vmem:[#allocation37_spill] sm:$0xff]  ;;  %v12545_v45 = vunpack.c.l.bf16 %v12544_v33 }
 0x23a   : > { %12535 = vst [vmem:[#allocation12_spill] sm:$0xff] %v10517_v8  ;;  %v5922_v18 = vsel %vm5374_vm1, %v12537_v46, 0.0  ;;  %v12542_v21 = vunpack.c.l.bf16 %v12541_v30  ;;  %v5921_v53 = vadd.f32 %v5920_v48, %v5919_v20  ;;  %v12546_v55 = vunpack.c.h.bf16 %v12541_v30 }
 0x23b   : > { %v10527_v34 = vsel %vm5374_vm1, %v12539_v0, 0.0  ;;  %v10537_v58 = vsel %vm5374_vm1, %v12545_v45, 0.0  ;;  %v12547_v46 = vunpack.c.h.bf16 %v12544_v33  ;;  %v5465_v8 = vadd.f32 %v10285_v6, %v5463_v22  ;;  %v12555_v6 = vld [vmem:[#allocation93_spill] sm:$0xff] }
 0x23c   : > { %12540 = vst [vmem:[#allocation47_spill] sm:$0xff] %v10527_v34  ;;  %v10532_v44 = vsel %vm5374_vm1, %v12542_v21, 0.0  ;;  %v10542_v37 = vsel %vm5374_vm1, %v12546_v55, 0.0  ;;  %v5830_v34 = vadd.f32 %v5829_v23, %v5828_v15  ;;  %v12548_v21 = vunpack.c.h.bf16 %v12536_v62 }
 0x23d   : > { %12543 = vst [vmem:[#allocation29_spill] sm:$0xff] %v10532_v44  ;;  %v10547_v0 = vsel %vm5374_vm1, %v12547_v46, 0.0  ;;  %v12549_v45 = vunpack.c.h.bf16 %v12538_v26  ;;  %v12551_v20 = vunpack.c.h.bf16 %v12532_v32  ;;  %v5923_v33 = vadd.f32 %v5922_v18, %v5921_v53  ;;  %v12552_v46 = vld [vmem:[#allocation38_spill] sm:$0xff] }
 0x23e   : > { %v5924_v44 = vsel %vm5374_vm1, %v12548_v21, 0.0  ;;  %v5592_v55 = vadd.f32 %v10305_v19, %v5590_v57  ;;  %v12553_v23 = vunpack.c.l.bf16 %v12552_v46  ;;  %v5717_v62 = vadd.f32 %v10310_v14, %v5715_v50  ;;  %v12557_v21 = vld [vmem:[#allocation22_spill] sm:$0xff]  ;;  %v12562_v57 = vld [vmem:[#allocation57_spill] sm:$0xff] }
 0x23f   : > { %v10556_v48 = vsel %vm5374_vm1, %v12549_v45, 0.0  ;;  %v5831_v30 = vsel %vm5374_vm1, %v12551_v20, 0.0  ;;  %v12556_v22 = vunpack.c.l.bf16 %v12555_v6  ;;  %v12558_v45 = vunpack.c.l.bf16 %v12557_v21 }
 0x240   : > { %12550 = vst [vmem:[#allocation13_spill] sm:$0xff] %v10556_v48  ;;  %v10565_v15 = vsel %vm5374_vm1, %v12553_v23, 0.0  ;;  %v12560_v18 = vunpack.c.h.bf16 %v12552_v46  ;;  %v12563_v53 = vunpack.c.l.bf16 %v12562_v57  ;;  %v5925_v14 = vadd.f32 %v5924_v44, %v5923_v33  ;;  %v12571_v33 = vld [vmem:[#allocation71_spill] sm:$0xff] }
 0x241   : > { %12554 = vst [vmem:[#allocation48_spill] sm:$0xff] %v10565_v15  ;;  %v5926_v26 = vsel %vm5374_vm1, %v12556_v22, 0.0  ;;  %v10574_v32 = vsel %vm5374_vm1, %v12558_v45, 0.0  ;;  %v12564_v50 = vunpack.c.h.bf16 %v12557_v21  ;;  %v12566_v22 = vunpack.c.h.bf16 %v12562_v57 }
 0x242   : > { %12559 = vst [vmem:[#allocation30_spill] sm:$0xff] %v10574_v32  ;;  %v10579_v19 = vsel %vm5374_vm1, %v12560_v18, 0.0  ;;  %v10584_v20 = vsel %vm5374_vm1, %v12563_v53, 0.0  ;;  %v5832_v46 = vadd.f32 %v5831_v30, %v5830_v34  ;;  %v12567_v18 = vunpack.c.h.bf16 %v12555_v6  ;;  %v12568_v53 = vld [vmem:[#allocation39_spill] sm:$0xff]  ;;  %v12573_v30 = vld [vmem:[#allocation58_spill] sm:$0xff] }
 0x243   : > { %12561 = vst [vmem:[#allocation49_spill] sm:$0xff] %v10579_v19  ;;  %v10589_v23 = vsel %vm5374_vm1, %v12564_v50, 0.0  ;;  %v10594_v45 = vsel %vm5374_vm1, %v12566_v22, 0.0  ;;  %v5467_v19 = vadd.f32 %v10300_v43, %v5465_v8  ;;  %v12569_v48 = vunpack.c.l.bf16 %v12568_v53  ;;  %v12575_v43 = vld [vmem:[#allocation94_spill] sm:$0xff] }
 0x244   : > { %12565 = vst [vmem:[#allocation14_spill] sm:$0xff] %v10589_v23  ;;  %v5928_v32 = vsel %vm5374_vm1, %v12567_v18, 0.0  ;;  %v12572_v21 = vunpack.c.l.bf16 %v12571_v33  ;;  %v5927_v57 = vadd.f32 %v5926_v26, %v5925_v14  ;;  %v5594_v22 = vadd.f32 %v10315_v47, %v5592_v55 }
 0x245   : > { %v10603_v44 = vsel %vm5374_vm1, %v12569_v48, 0.0  ;;  %v5719_v34 = vadd.f32 %v10320_v52, %v5717_v62  ;;  %v12574_v6 = vunpack.c.l.bf16 %v12573_v30  ;;  %v12576_v8 = vunpack.c.l.bf16 %v12575_v43  ;;  %v12577_v48 = vld [vmem:[#allocation23_spill] sm:$0xff] }
 0x246   : > { %12570 = vst [vmem:[#allocation15_spill] sm:$0xff] %v10603_v44  ;;  %v5833_v50 = vsel %vm5374_vm1, %v12572_v21, 0.0  ;;  %v12578_v44 = vunpack.c.l.bf16 %v12577_v48  ;;  %v12580_v26 = vunpack.c.h.bf16 %v12568_v53  ;;  %v12582_v52 = vunpack.c.h.bf16 %v12573_v30 }
 0x247   : > { %v10613_v18 = vsel %vm5374_vm1, %v12574_v6, 0.0  ;;  %v5930_v23 = vsel %vm5374_vm1, %v12576_v8, 0.0  ;;  %v5929_v62 = vadd.f32 %v5928_v32, %v5927_v57  ;;  %v12583_v14 = vunpack.c.h.bf16 %v12577_v48  ;;  %v12585_v6 = vld [vmem:[#allocation40_spill] sm:$0xff] }
 0x248   : > { %v10621_v15 = vsel %vm5374_vm1, %v12578_v44, 0.0  ;;  %v10626_v47 = vsel %vm5374_vm1, %v12580_v26, 0.0  ;;  %v10631_v55 = vsel %vm5374_vm1, %v12582_v52, 0.0  ;;  %v12586_v8 = vunpack.c.l.bf16 %v12585_v6  ;;  %v12589_v52 = vld [vmem:[#allocation59_spill] sm:$0xff] }
 0x249   : > { %12579 = vst [vmem:[#allocation31_spill] sm:$0xff] %v10621_v15  ;;  %v10636_v21 = vsel %vm5374_vm1, %v12583_v14, 0.0  ;;  %v5834_v53 = vadd.f32 %v5833_v50, %v5832_v46  ;;  %v12588_v26 = vunpack.c.h.bf16 %v12575_v43  ;;  %v5469_v30 = vadd.f32 %v10328_v49, %v5467_v19  ;;  %v12593_v50 = vld [vmem:[#allocation95_spill] sm:$0xff] }
 0x24a   : > { %12581 = vst [vmem:[#allocation50_spill] sm:$0xff] %v10626_v47  ;;  %v10641_v44 = vsel %vm5374_vm1, %v12586_v8, 0.0  ;;  %v12590_v47 = vunpack.c.l.bf16 %v12589_v52  ;;  %v12592_v57 = vunpack.c.h.bf16 %v12571_v33  ;;  %v5931_v14 = vadd.f32 %v5930_v23, %v5929_v62  ;;  %v12599_v33 = vld [vmem:[#allocation72_spill] sm:$0xff] }
 0x24b   : > { %12584 = vst [vmem:[#allocation68_spill] sm:$0xff] %v10636_v21  ;;  %v5932_v15 = vsel %vm5374_vm1, %v12588_v26, 0.0  ;;  %v5596_v8 = vadd.f32 %v10333_v54, %v5594_v22  ;;  %v5721_v46 = vadd.f32 %v10348_v51, %v5719_v34  ;;  %v12594_v43 = vunpack.c.l.bf16 %v12593_v50  ;;  %v12595_v21 = vld [vmem:[#allocation120_spill] sm:$0xff] }
 0x24c   : > { %12587 = vst [vmem:[#allocation32_spill] sm:$0xff] %v10641_v44  ;;  %v10650_v32 = vsel %vm5374_vm1, %v12590_v47, 0.0  ;;  %v5835_v48 = vsel %vm5374_vm1, %v12592_v57, 0.0  ;;  %v12596_v49 = vunpack.c.l.bf16 %v12595_v21  ;;  %v12597_v47 = vunpack.c.h.bf16 %v12585_v6 }
 0x24d   : > { %12591 = vst [vmem:[#allocation16_spill] sm:$0xff] %v10650_v32  ;;  %v5934_v26 = vsel %vm5374_vm1, %v12594_v43, 0.0  ;;  %v12600_v57 = vunpack.c.l.bf16 %v12599_v33  ;;  %v5933_v54 = vadd.f32 %v5932_v15, %v5931_v14  ;;  %v12601_v51 = vunpack.c.h.bf16 %v12595_v21 }
 0x24e   : > { %v6040_v19 = vsel %vm5374_vm1, %v12596_v49, 0.0  ;;  %v10666_v44 = vsel %vm5374_vm1, %v12597_v47, 0.0  ;;  %v12602_v34 = vunpack.c.h.bf16 %v12589_v52  ;;  %v5836_v43 = vadd.f32 %v5835_v48, %v5834_v53  ;;  %v12605_v47 = vld [vmem:[#allocation121_spill] sm:$0xff]  ;;  %v12608_v48 = vld [vmem:[#allocation96_spill] sm:$0xff] }
 0x24f   : > { %12598 = vst [vmem:[#allocation51_spill] sm:$0xff] %v10666_v44  ;;  %v5837_v23 = vsel %vm5374_vm1, %v12600_v57, 0.0  ;;  %v6041_v22 = vsel %vm5374_vm1, %v12601_v51, 0.0  ;;  %v12604_v6 = vunpack.c.h.bf16 %v12593_v50  ;;  %v12606_v44 = vunpack.c.l.bf16 %v12605_v47 }
 0x250   : > { %v10677_v62 = vsel %vm5374_vm1, %v12602_v34, 0.0  ;;  %v5471_v15 = vadd.f32 %v10338_v42, %v5469_v30  ;;  %v12607_v21 = vunpack.c.h.bf16 %v12599_v33  ;;  %v5935_v57 = vadd.f32 %v5934_v26, %v5933_v54  ;;  %v12614_v33 = vld [vmem:[#allocation73_spill] sm:$0xff] }
 0x251   : > { %12603 = vst [vmem:[#allocation33_spill] sm:$0xff] %v10677_v62  ;;  %v5936_v49 = vsel %vm5374_vm1, %v12604_v6, 0.0  ;;  %v6043_v32 = vsel %vm5374_vm1, %v12606_v44, 0.0  ;;  %v6042_v52 = vadd.f32 %v6041_v22, %v6040_v19  ;;  %v5598_v51 = vadd.f32 %v10343_v24, %v5596_v8  ;;  %v12611_v62 = vld [vmem:[#allocation41_spill] sm:$0xff] }
 0x252   : > { %v5839_v14 = vsel %vm5374_vm1, %v12607_v21, 0.0  ;;  %v5723_v53 = vadd.f32 %v10353_v11, %v5721_v46  ;;  %v12609_v50 = vunpack.c.l.bf16 %v12608_v48  ;;  %v12610_v6 = vunpack.c.h.bf16 %v12605_v47  ;;  %v12616_v11 = vld [vmem:[#allocation60_spill] sm:$0xff] }
 0x253   : > { %v12612_v42 = vunpack.c.l.bf16 %v12611_v62  ;;  %v12615_v26 = vunpack.c.l.bf16 %v12614_v33  ;;  %v5937_v24 = vadd.f32 %v5936_v49, %v5935_v57  ;;  %v6044_v8 = vadd.f32 %v6043_v32, %v6042_v52 }
 0x254   : > { %v5938_v34 = vsel %vm5374_vm1, %v12609_v50, 0.0  ;;  %v6045_v44 = vsel %vm5374_vm1, %v12610_v6, 0.0  ;;  %v12617_v46 = vunpack.c.l.bf16 %v12616_v11  ;;  %v5838_v22 = vadd.f32 %v5837_v23, %v5836_v43  ;;  %v12619_v50 = vld [vmem:[#allocation122_spill] sm:$0xff]  ;;  %v12622_v43 = vld [vmem:[#allocation97_spill] sm:$0xff] }
 0x255   : > { %v10700_v30 = vsel %vm5374_vm1, %v12612_v42, 0.0  ;;  %v5841_v19 = vsel %vm5374_vm1, %v12615_v26, 0.0  ;;  %v12618_v47 = vunpack.c.h.bf16 %v12608_v48  ;;  %v12620_v6 = vunpack.c.l.bf16 %v12619_v50 }
 0x256   : > { %12613 = vst [vmem:[#allocation52_spill] sm:$0xff] %v10700_v30  ;;  %v10708_v54 = vsel %vm5374_vm1, %v12617_v46, 0.0  ;;  %v5473_v30 = vadd.f32 %v10358_v10, %v5471_v15  ;;  %v12621_v26 = vunpack.c.h.bf16 %v12614_v33  ;;  %v5939_v49 = vadd.f32 %v5938_v34, %v5937_v24  ;;  %v12627_v33 = vld [vmem:[#allocation74_spill] sm:$0xff] }
 0x257   : > { %v5940_v21 = vsel %vm5374_vm1, %v12618_v47, 0.0  ;;  %v6047_v42 = vsel %vm5374_vm1, %v12620_v6, 0.0  ;;  %v6046_v57 = vadd.f32 %v6045_v44, %v6044_v8  ;;  %v5600_v52 = vadd.f32 %v10363_v29, %v5598_v51 }
 0x258   : > { %v5843_v32 = vsel %vm5374_vm1, %v12621_v26, 0.0  ;;  %v5725_v23 = vadd.f32 %v10368_v12, %v5723_v53  ;;  %v12623_v48 = vunpack.c.l.bf16 %v12622_v43  ;;  %v12624_v47 = vunpack.c.h.bf16 %v12619_v50  ;;  %v12631_v50 = vld [vmem:[#allocation123_spill] sm:$0xff] }
 0x259   : > { %v12625_v10 = vunpack.c.h.bf16 %v12611_v62  ;;  %v12628_v34 = vunpack.c.l.bf16 %v12627_v33  ;;  %v5941_v29 = vadd.f32 %v5940_v21, %v5939_v49  ;;  %v6048_v12 = vadd.f32 %v6047_v42, %v6046_v57 }
 0x25a   : > { %v5942_v46 = vsel %vm5374_vm1, %v12623_v48, 0.0  ;;  %v6049_v6 = vsel %vm5374_vm1, %v12624_v47, 0.0  ;;  %v12629_v51 = vunpack.c.h.bf16 %v12616_v11  ;;  %v5840_v24 = vadd.f32 %v5839_v14, %v5838_v22  ;;  %v12634_v22 = vld [vmem:[#allocation98_spill] sm:$0xff] }
 0x25b   : > { %v10731_v15 = vsel %vm5374_vm1, %v12625_v10, 0.0  ;;  %v10736_v44 = vsel %vm5374_vm1, %v12628_v34, 0.0  ;;  %v12630_v8 = vunpack.c.h.bf16 %v12622_v43  ;;  %v12632_v26 = vunpack.c.l.bf16 %v12631_v50 }
 0x25c   : > { %12626 = vst [vmem:[#allocation88_spill] sm:$0xff] %v10731_v15  ;;  %v10741_v53 = vsel %vm5374_vm1, %v12629_v51, 0.0  ;;  %v5475_v47 = vadd.f32 %v10382_v2, %v5473_v30  ;;  %v12633_v10 = vunpack.c.h.bf16 %v12627_v33  ;;  %v5943_v11 = vadd.f32 %v5942_v46, %v5941_v29  ;;  %v12637_v2 = vld [vmem:[#allocation61_spill] sm:$0xff] }
 0x25d   : > { %v5944_v62 = vsel %vm5374_vm1, %v12630_v8, 0.0  ;;  %v6051_v48 = vsel %vm5374_vm1, %v12632_v26, 0.0  ;;  %v6050_v42 = vadd.f32 %v6049_v6, %v6048_v12  ;;  %v5602_v49 = vadd.f32 %v10387_v27, %v5600_v52  ;;  %v12639_v8 = vld [vmem:[#allocation75_spill] sm:$0xff]  ;;  %v12643_v26 = vld [vmem:[#allocation124_spill] sm:$0xff] }
 0x25e   : > { %v10753_v21 = vsel %vm5374_vm1, %v12633_v10, 0.0  ;;  %v5727_v14 = vadd.f32 %v10397_v7, %v5725_v23  ;;  %v12635_v57 = vunpack.c.l.bf16 %v12634_v22  ;;  %v12636_v34 = vunpack.c.h.bf16 %v12631_v50 }
 0x25f   : > { %v12638_v30 = vunpack.c.l.bf16 %v12637_v2  ;;  %v12640_v46 = vunpack.c.l.bf16 %v12639_v8  ;;  %v5945_v27 = vadd.f32 %v5944_v62, %v5943_v11  ;;  %v6052_v7 = vadd.f32 %v6051_v48, %v6050_v42  ;;  %v12647_v42 = vld [vmem:[#allocation99_spill] sm:$0xff] }
 0x260   : > { %v5946_v43 = vsel %vm5374_vm1, %v12635_v57, 0.0  ;;  %v6053_v51 = vsel %vm5374_vm1, %v12636_v34, 0.0  ;;  %v5842_v52 = vadd.f32 %v5841_v19, %v5840_v24  ;;  %v12641_v23 = vunpack.c.h.bf16 %v12639_v8 }
 0x261   : > { %v10766_v33 = vsel %vm5374_vm1, %v12638_v30, 0.0  ;;  %v10771_v6 = vsel %vm5374_vm1, %v12640_v46, 0.0  ;;  %v12642_v12 = vunpack.c.h.bf16 %v12634_v22  ;;  %v12644_v10 = vunpack.c.l.bf16 %v12643_v26  ;;  %v12645_v30 = vld [vmem:[#allocation76_spill] sm:$0xff] }
 0x262   : > { %v10776_v29 = vsel %vm5374_vm1, %v12641_v23, 0.0  ;;  %v5477_v34 = vadd.f32 %v10392_v9, %v5475_v47  ;;  %v12646_v46 = vunpack.c.l.bf16 %v12645_v30  ;;  %v5947_v19 = vadd.f32 %v5946_v43, %v5945_v27 }
 0x263   : > { %v5948_v50 = vsel %vm5374_vm1, %v12642_v12, 0.0  ;;  %v6055_v57 = vsel %vm5374_vm1, %v12644_v10, 0.0  ;;  %v6054_v24 = vadd.f32 %v6053_v51, %v6052_v7  ;;  %v5604_v48 = vadd.f32 %v10405_v36, %v5602_v49  ;;  %v12655_v10 = vld [vmem:[#allocation125_spill] sm:$0xff] }
 0x264   : > { %v10788_v62 = vsel %vm5374_vm1, %v12646_v46, 0.0  ;;  %v5729_v11 = vadd.f32 %v10410_v25, %v5727_v14  ;;  %v12648_v22 = vunpack.c.l.bf16 %v12647_v42  ;;  %v12649_v23 = vunpack.c.h.bf16 %v12643_v26  ;;  %v12652_v14 = vld [vmem:[#allocation77_spill] sm:$0xff] }
 0x265   : > { %v12650_v9 = vunpack.c.h.bf16 %v12637_v2  ;;  %v12651_v43 = vunpack.c.h.bf16 %v12645_v30  ;;  %v5949_v36 = vadd.f32 %v5948_v50, %v5947_v19  ;;  %v6056_v25 = vadd.f32 %v6055_v57, %v6054_v24  ;;  %v12658_v57 = vld [vmem:[#allocation100_spill] sm:$0xff] }
 0x266   : > { %v5950_v8 = vsel %vm5374_vm1, %v12648_v22, 0.0  ;;  %v6057_v12 = vsel %vm5374_vm1, %v12649_v23, 0.0  ;;  %v5844_v49 = vadd.f32 %v5843_v32, %v5842_v52  ;;  %v12653_v27 = vunpack.c.l.bf16 %v12652_v14 }
 0x267   : > { %v10801_v47 = vsel %vm5374_vm1, %v12650_v9, 0.0  ;;  %v10806_v51 = vsel %vm5374_vm1, %v12651_v43, 0.0  ;;  %v12654_v26 = vunpack.c.h.bf16 %v12647_v42  ;;  %v12656_v46 = vunpack.c.l.bf16 %v12655_v10 }
 0x268   : > { %v10811_v7 = vsel %vm5374_vm1, %v12653_v27, 0.0  ;;  %v5479_v30 = vadd.f32 %v10418_v31, %v5477_v34  ;;  %v12657_v23 = vunpack.c.h.bf16 %v12652_v14  ;;  %v5951_v32 = vadd.f32 %v5950_v8, %v5949_v36 }
 0x269   : > { %v5952_v2 = vsel %vm5374_vm1, %v12654_v26, 0.0  ;;  %v6059_v22 = vsel %vm5374_vm1, %v12656_v46, 0.0  ;;  %v6058_v52 = vadd.f32 %v6057_v12, %v6056_v25  ;;  %v12659_v19 = vunpack.c.l.bf16 %v12658_v57 }
 0x26a   : > { %v10823_v50 = vsel %vm5374_vm1, %v12657_v23, 0.0  ;;  %v12660_v42 = vunpack.c.h.bf16 %v12655_v10  ;;  %v12661_v43 = vunpack.c.l.bf16 %v9568_v61  ;;  %v12662_v31 = vunpack.c.h.bf16 %v9568_v61  ;;  %v12664_v10 = vld [vmem:[#allocation126_spill] sm:$0xff] }
 0x26b   : > { %v5954_v24 = vsel %vm5374_vm1, %v12659_v19, 0.0  ;;  %v5606_v14 = vadd.f32 %v10426_v39, %v5604_v48  ;;  %v5731_v8 = vadd.f32 %v10444_v59, %v5729_v11  ;;  %v5953_v12 = vadd.f32 %v5952_v2, %v5951_v32 }
 0x26c   : > { %v6061_v9 = vsel %vm5374_vm1, %v12660_v42, 0.0  ;;  %v6173_v27 = vsel %vm5374_vm1, %v12661_v43, 0.0  ;;  %v6174_v34 = vsel %vm5374_vm1, %v12662_v31, 0.0  ;;  %v6060_v36 = vadd.f32 %v6059_v22, %v6058_v52  ;;  %v12667_v43 = vld [vmem:[#allocation78_spill] sm:$0xff] }
 0x26d   : > { %v12663_v25 = vunpack.c.h.bf16 %v12658_v57  ;;  %v12665_v46 = vunpack.c.l.bf16 %v12664_v10  ;;  %v6175_v19 = vadd.f32 %v6174_v34, %v6173_v27  ;;  %v12666_v42 = vunpack.c.l.bf16 %v9579_v1  ;;  %v12670_v22 = vld [vmem:[#allocation62_spill] sm:$0xff]  ;;  %v12672_v57 = vld [vmem:[#allocation101_spill] sm:$0xff] }
 0x26e   : > { %v12668_v31 = vunpack.c.l.bf16 %v12667_v43  ;;  %v5955_v59 = vadd.f32 %v5954_v24, %v5953_v12  ;;  %v6062_v48 = vadd.f32 %v6061_v9, %v6060_v36  ;;  %v12669_v11 = vunpack.c.h.bf16 %v9579_v1 }
 0x26f   : > { %v5956_v26 = vsel %vm5374_vm1, %v12663_v25, 0.0  ;;  %v6063_v23 = vsel %vm5374_vm1, %v12665_v46, 0.0  ;;  %v6176_v61 = vsel %vm5374_vm1, %v12666_v42, 0.0  ;;  %v12671_v32 = vunpack.c.l.bf16 %v12670_v22 }
 0x270   : > { %v10851_v39 = vsel %vm5374_vm1, %v12668_v31, 0.0  ;;  %v6178_v2 = vsel %vm5374_vm1, %v12669_v11, 0.0  ;;  %v12673_v27 = vunpack.c.l.bf16 %v12672_v57  ;;  %v12674_v25 = vunpack.c.h.bf16 %v12664_v10 }
 0x271   : > { %v10859_v52 = vsel %vm5374_vm1, %v12671_v32, 0.0  ;;  %v6177_v42 = vadd.f32 %v6176_v61, %v6175_v19  ;;  %v5846_v24 = vadd.f32 %v10736_v44, %v5844_v49  ;;  %v5957_v9 = vadd.f32 %v5956_v26, %v5955_v59  ;;  %v12680_v49 = vld [vmem:[#allocation79_spill] sm:$0xff] }
 0x272   : > { %v5958_v34 = vsel %vm5374_vm1, %v12673_v27, 0.0  ;;  %v6065_v46 = vsel %vm5374_vm1, %v12674_v25, 0.0  ;;  %v6064_v1 = vadd.f32 %v6063_v23, %v6062_v48  ;;  %v12675_v12 = vunpack.c.l.bf16 %v9584_v41  ;;  %v12678_v27 = vld [vmem:[#allocation127_spill] sm:$0xff] }
 0x273   : > { %v12676_v31 = vunpack.c.h.bf16 %v12667_v43  ;;  %v12677_v32 = vunpack.c.h.bf16 %v12672_v57  ;;  %v12679_v25 = vunpack.c.l.bf16 %v12678_v27  ;;  %v6179_v44 = vadd.f32 %v6178_v2, %v6177_v42 }
 0x274   : > { %v6180_v36 = vsel %vm5374_vm1, %v12675_v12, 0.0  ;;  %v12681_v26 = vunpack.c.l.bf16 %v12680_v49  ;;  %v5959_v61 = vadd.f32 %v5958_v34, %v5957_v9  ;;  %v6066_v59 = vadd.f32 %v6065_v46, %v6064_v1  ;;  %v12683_v12 = vld [vmem:[#allocation102_spill] sm:$0xff]  ;;  %v12688_v1 = vld [vmem:[#allocation128_spill] sm:$0xff] }
 0x275   : > { %v10874_v11 = vsel %vm5374_vm1, %v12676_v31, 0.0  ;;  %v5960_v10 = vsel %vm5374_vm1, %v12677_v32, 0.0  ;;  %v6067_v19 = vsel %vm5374_vm1, %v12679_v25, 0.0  ;;  %v12682_v43 = vunpack.c.h.bf16 %v9584_v41 }
 0x276   : > { %v10885_v23 = vsel %vm5374_vm1, %v12681_v26, 0.0  ;;  %v5481_v57 = vadd.f32 %v10434_v35, %v5479_v30  ;;  %v12684_v31 = vunpack.c.l.bf16 %v12683_v12  ;;  %v12685_v25 = vunpack.c.h.bf16 %v12678_v27 }
 0x277   : > { %v6182_v48 = vsel %vm5374_vm1, %v12682_v43, 0.0  ;;  %v6181_v42 = vadd.f32 %v6180_v36, %v6179_v44  ;;  %v5608_v26 = vadd.f32 %v10439_v13, %v5606_v14  ;;  %v5961_v15 = vadd.f32 %v5960_v10, %v5959_v61  ;;  %v12692_v44 = vld [vmem:[#allocation103_spill] sm:$0xff] }
 0x278   : > { %v5962_v32 = vsel %vm5374_vm1, %v12684_v31, 0.0  ;;  %v6069_v2 = vsel %vm5374_vm1, %v12685_v25, 0.0  ;;  %v6068_v34 = vadd.f32 %v6067_v19, %v6066_v59  ;;  %v12686_v46 = vunpack.c.l.bf16 %v9605_v60  ;;  %v12695_v25 = vld [vmem:[#allocation80_spill] sm:$0xff] }
 0x279   : > { %v5733_v9 = vadd.f32 %v10454_v28, %v5731_v8  ;;  %v12687_v35 = vunpack.c.h.bf16 %v12683_v12  ;;  %v12689_v43 = vunpack.c.l.bf16 %v12688_v1  ;;  %v6183_v31 = vadd.f32 %v6182_v48, %v6181_v42 }
 0x27a   : > { %v6184_v41 = vsel %vm5374_vm1, %v12686_v46, 0.0  ;;  %v12690_v36 = vunpack.c.h.bf16 %v12680_v49  ;;  %v5963_v14 = vadd.f32 %v5962_v32, %v5961_v15  ;;  %v6070_v10 = vadd.f32 %v6069_v2, %v6068_v34 }
 0x27b   : > { %v5964_v30 = vsel %vm5374_vm1, %v12687_v35, 0.0  ;;  %v6071_v27 = vsel %vm5374_vm1, %v12689_v43, 0.0  ;;  %v12691_v19 = vunpack.c.h.bf16 %v9605_v60  ;;  %v5848_v8 = vadd.f32 %v10753_v21, %v5846_v24  ;;  %v12700_v35 = vld [vmem:[#allocation129_spill] sm:$0xff] }
 0x27c   : > { %v10911_v13 = vsel %vm5374_vm1, %v12690_v36, 0.0  ;;  %v12693_v61 = vunpack.c.l.bf16 %v12692_v44  ;;  %v12694_v12 = vunpack.c.h.bf16 %v12688_v1  ;;  %v6185_v49 = vadd.f32 %v6184_v41, %v6183_v31 }
 0x27d   : > { %v6186_v28 = vsel %vm5374_vm1, %v12691_v19, 0.0  ;;  %v12696_v42 = vunpack.c.l.bf16 %v12695_v25  ;;  %v5965_v32 = vadd.f32 %v5964_v30, %v5963_v14  ;;  %v6072_v60 = vadd.f32 %v6071_v27, %v6070_v10 }
 0x27e   : > { %v5966_v59 = vsel %vm5374_vm1, %v12693_v61, 0.0  ;;  %v6073_v48 = vsel %vm5374_vm1, %v12694_v12, 0.0  ;;  %v12697_v2 = vunpack.c.l.bf16 %v9621_v63  ;;  %v12698_v24 = vunpack.c.h.bf16 %v12695_v25  ;;  %v12703_v61 = vld [vmem:[#allocation104_spill] sm:$0xff] }
 0x27f   : > { %v10926_v15 = vsel %vm5374_vm1, %v12696_v42, 0.0  ;;  %v12699_v46 = vunpack.c.h.bf16 %v12692_v44  ;;  %v12701_v1 = vunpack.c.l.bf16 %v12700_v35  ;;  %v6187_v31 = vadd.f32 %v6186_v28, %v6185_v49 }
 0x280   : > { %v6188_v21 = vsel %vm5374_vm1, %v12697_v2, 0.0  ;;  %v10934_v34 = vsel %vm5374_vm1, %v12698_v24, 0.0  ;;  %v5483_v30 = vadd.f32 %v10449_v3, %v5481_v57  ;;  %v5967_v27 = vadd.f32 %v5966_v59, %v5965_v32  ;;  %v12710_v2 = vld [vmem:[#allocation130_spill] sm:$0xff] }
 0x281   : > { %v5968_v41 = vsel %vm5374_vm1, %v12699_v46, 0.0  ;;  %v6075_v43 = vsel %vm5374_vm1, %v12701_v1, 0.0  ;;  %v6074_v36 = vadd.f32 %v6073_v48, %v6072_v60  ;;  %v12702_v14 = vunpack.c.h.bf16 %v9621_v63 }
 0x282   : > { %v10947_v19 = vadd.f32 %v10463_v4, %v5608_v26  ;;  %v12704_v44 = vunpack.c.l.bf16 %v12703_v61  ;;  %v12705_v25 = vunpack.c.h.bf16 %v12700_v35  ;;  %v6189_v28 = vadd.f32 %v6188_v21, %v6187_v31  ;;  %v12707_v4 = vld [vmem:[#allocation81_spill] sm:$0xff] }
 0x283   : > { %v6190_v10 = vsel %vm5374_vm1, %v12702_v14, 0.0  ;;  %v10956_v3 = vadd.f32 %v10472_v16, %v5733_v9  ;;  %v5969_v57 = vadd.f32 %v5968_v41, %v5967_v27  ;;  %v6076_v59 = vadd.f32 %v6075_v43, %v6074_v36  ;;  %v12714_v27 = vld [vmem:[#allocation105_spill] sm:$0xff] }
 0x284   : > { %v5970_v12 = vsel %vm5374_vm1, %v12704_v44, 0.0  ;;  %v6077_v42 = vsel %vm5374_vm1, %v12705_v25, 0.0  ;;  %v12706_v63 = vunpack.c.l.bf16 %v9638_v56  ;;  %v12708_v26 = vunpack.c.l.bf16 %v12707_v4 }
 0x285   : > { %v12709_v32 = vunpack.c.h.bf16 %v12703_v61  ;;  %v12711_v21 = vunpack.c.l.bf16 %v12710_v2  ;;  %v6191_v9 = vadd.f32 %v6190_v10, %v6189_v28  ;;  %v5850_v24 = vadd.f32 %v10771_v6, %v5848_v8  ;;  %v12717_v8 = vld [vmem:[#allocation82_spill] sm:$0xff] }
 0x286   : > { %v6192_v48 = vsel %vm5374_vm1, %v12706_v63, 0.0  ;;  %v10964_v49 = vsel %vm5374_vm1, %v12708_v26, 0.0  ;;  %v5971_v46 = vadd.f32 %v5970_v12, %v5969_v57  ;;  %v6078_v41 = vadd.f32 %v6077_v42, %v6076_v59 }
 0x287   : > { %v5972_v60 = vsel %vm5374_vm1, %v12709_v32, 0.0  ;;  %v6079_v16 = vsel %vm5374_vm1, %v12711_v21, 0.0  ;;  %v12712_v35 = vunpack.c.h.bf16 %v9638_v56  ;;  %v12713_v43 = vunpack.c.h.bf16 %v12707_v4  ;;  %v12722_v4 = vld [vmem:[#allocation131_spill] sm:$0xff] }
 0x288   : > { %v12715_v36 = vunpack.c.l.bf16 %v12714_v27  ;;  %v12716_v61 = vunpack.c.h.bf16 %v12710_v2  ;;  %v6193_v6 = vadd.f32 %v6192_v48, %v6191_v9  ;;  %v12718_v44 = vunpack.c.l.bf16 %v12717_v8 }
 0x289   : > { %v6194_v1 = vsel %vm5374_vm1, %v12712_v35, 0.0  ;;  %v10979_v31 = vsel %vm5374_vm1, %v12713_v43, 0.0  ;;  %v5973_v12 = vadd.f32 %v5972_v60, %v5971_v46  ;;  %v6080_v25 = vadd.f32 %v6079_v16, %v6078_v41  ;;  %v12725_v35 = vld [vmem:[#allocation106_spill] sm:$0xff] }
 0x28a   : > { %v5974_v14 = vsel %vm5374_vm1, %v12715_v36, 0.0  ;;  %v6081_v10 = vsel %vm5374_vm1, %v12716_v61, 0.0  ;;  %v10990_v56 = vsel %vm5374_vm1, %v12718_v44, 0.0  ;;  %v12719_v42 = vunpack.c.l.bf16 %v9652_v5 }
 0x28b   : > { %v12720_v57 = vunpack.c.h.bf16 %v12717_v8  ;;  %v12721_v63 = vunpack.c.h.bf16 %v12714_v27  ;;  %v12723_v26 = vunpack.c.l.bf16 %v12722_v4  ;;  %v6195_v2 = vadd.f32 %v6194_v1, %v6193_v6 }
 0x28c   : > { %v6196_v28 = vsel %vm5374_vm1, %v12719_v42, 0.0  ;;  %v11007_v60 = vadd.f32 %v10480_v38, %v5483_v30  ;;  %v5975_v21 = vadd.f32 %v5974_v14, %v5973_v12  ;;  %v6082_v16 = vadd.f32 %v6081_v10, %v6080_v25  ;;  %v12728_v30 = vld [vmem:[#allocation152_spill] sm:$0xff] }
 0x28d   : > { %v10998_v59 = vsel %vm5374_vm1, %v12720_v57, 0.0  ;;  %v5976_v48 = vsel %vm5374_vm1, %v12721_v63, 0.0  ;;  %v6083_v32 = vsel %vm5374_vm1, %v12723_v26, 0.0  ;;  %v12724_v9 = vunpack.c.h.bf16 %v9652_v5  ;;  %v12730_v5 = vld [vmem:[#allocation24_spill] sm:$0xff] }
 0x28e   : > { %v5852_v41 = vadd.f32 %v10776_v29, %v5850_v24  ;;  %v12726_v43 = vunpack.c.l.bf16 %v12725_v35  ;;  %v12727_v36 = vunpack.c.h.bf16 %v12722_v4  ;;  %v6197_v1 = vadd.f32 %v6196_v28, %v6195_v2  ;;  %v12733_v12 = vld [vmem:[#allocation132_spill] sm:$0xff]  ;;  %v12737_v2 = vld [vmem:[#allocation43_spill] sm:$0xff] }
 0x28f   : > { %v6198_v46 = vsel %vm5374_vm1, %v12724_v9, 0.0  ;;  %v5977_v6 = vadd.f32 %v5976_v48, %v5975_v21  ;;  %v6084_v38 = vadd.f32 %v6083_v32, %v6082_v16  ;;  %v12729_v14 = vunpack.c.l.bf16 %v12728_v30  ;;  %v12739_v9 = vld [vmem:[#allocation107_spill] sm:$0xff] }
 0x290   : > { %v5978_v27 = vsel %vm5374_vm1, %v12726_v43, 0.0  ;;  %v6085_v61 = vsel %vm5374_vm1, %v12727_v36, 0.0  ;;  %v12731_v8 = vunpack.c.l.bf16 %v12730_v5  ;;  %v12732_v29 = vunpack.c.h.bf16 %v12725_v35 }
 0x291   : > { %v6200_v10 = vsel %vm5374_vm1, %v12729_v14, 0.0  ;;  %v12734_v25 = vunpack.c.l.bf16 %v12733_v12  ;;  %v6199_v57 = vadd.f32 %v6198_v46, %v6197_v1  ;;  %v12735_v28 = vunpack.c.h.bf16 %v12730_v5 }
 0x292   : > { %v6306_v44 = vsel %vm5374_vm1, %v12731_v8, 0.0  ;;  %v5980_v24 = vsel %vm5374_vm1, %v12732_v29, 0.0  ;;  %v5979_v48 = vadd.f32 %v5978_v27, %v5977_v6  ;;  %v6086_v4 = vadd.f32 %v6085_v61, %v6084_v38  ;;  %v12742_v6 = vld [vmem:[#allocation153_spill] sm:$0xff] }
 0x293   : > { %v6087_v42 = vsel %vm5374_vm1, %v12734_v25, 0.0  ;;  %v6307_v63 = vsel %vm5374_vm1, %v12735_v28, 0.0  ;;  %v12736_v26 = vunpack.c.h.bf16 %v12728_v30  ;;  %v12738_v21 = vunpack.c.l.bf16 %v12737_v2  ;;  %v12746_v28 = vld [vmem:[#allocation133_spill] sm:$0xff] }
 0x294   : > { %v12740_v35 = vunpack.c.l.bf16 %v12739_v9  ;;  %v12741_v46 = vunpack.c.h.bf16 %v12733_v12  ;;  %v6201_v1 = vadd.f32 %v6200_v10, %v6199_v57  ;;  %v6308_v14 = vadd.f32 %v6307_v63, %v6306_v44 }
 0x295   : > { %v6202_v32 = vsel %vm5374_vm1, %v12736_v26, 0.0  ;;  %v6309_v16 = vsel %vm5374_vm1, %v12738_v21, 0.0  ;;  %v5981_v27 = vadd.f32 %v5980_v24, %v5979_v48  ;;  %v6088_v61 = vadd.f32 %v6087_v42, %v6086_v4  ;;  %v12749_v48 = vld [vmem:[#allocation174_spill] sm:$0xff] }
 0x296   : > { %v5982_v43 = vsel %vm5374_vm1, %v12740_v35, 0.0  ;;  %v6089_v36 = vsel %vm5374_vm1, %v12741_v46, 0.0  ;;  %v12743_v38 = vunpack.c.l.bf16 %v12742_v6  ;;  %v12744_v5 = vunpack.c.h.bf16 %v12737_v2 }
 0x297   : > { %v12745_v29 = vunpack.c.h.bf16 %v12739_v9  ;;  %v12747_v12 = vunpack.c.l.bf16 %v12746_v28  ;;  %v6203_v10 = vadd.f32 %v6202_v32, %v6201_v1  ;;  %v6310_v44 = vadd.f32 %v6309_v16, %v6308_v14 }
 0x298   : > { %v6204_v30 = vsel %vm5374_vm1, %v12743_v38, 0.0  ;;  %v6311_v8 = vsel %vm5374_vm1, %v12744_v5, 0.0  ;;  %v5983_v24 = vadd.f32 %v5982_v43, %v5981_v27  ;;  %v6090_v42 = vadd.f32 %v6089_v36, %v6088_v61  ;;  %v12752_v43 = vld [vmem:[#allocation154_spill] sm:$0xff]  ;;  %v12755_v61 = vld [vmem:[#allocation108_spill] sm:$0xff] }
 0x299   : > { %v5984_v25 = vsel %vm5374_vm1, %v12745_v29, 0.0  ;;  %v6091_v26 = vsel %vm5374_vm1, %v12747_v12, 0.0  ;;  %v12748_v57 = vunpack.c.h.bf16 %v12742_v6  ;;  %v12750_v4 = vunpack.c.l.bf16 %v12749_v48 }
 0x29a   : > { %v5854_v21 = vadd.f32 %v10788_v62, %v5852_v41  ;;  %v12751_v9 = vunpack.c.h.bf16 %v12746_v28  ;;  %v6205_v46 = vadd.f32 %v6204_v30, %v6203_v10  ;;  %v6312_v38 = vadd.f32 %v6311_v8, %v6310_v44  ;;  %v12757_v41 = vld [vmem:[#allocation134_spill] sm:$0xff]  ;;  %v12761_v44 = vld [vmem:[#allocation8_spill] sm:$0xff] }
 0x29b   : > { %v6206_v63 = vsel %vm5374_vm1, %v12748_v57, 0.0  ;;  %v6313_v2 = vsel %vm5374_vm1, %v12750_v4, 0.0  ;;  %v5985_v32 = vadd.f32 %v5984_v25, %v5983_v24  ;;  %v6092_v16 = vadd.f32 %v6091_v26, %v6090_v42  ;;  %v12759_v25 = vld [vmem:[#allocation11_spill] sm:$0xff] }
 0x29c   : > { %v6093_v35 = vsel %vm5374_vm1, %v12751_v9, 0.0  ;;  %v12753_v36 = vunpack.c.l.bf16 %v12752_v43  ;;  %v12754_v14 = vunpack.c.h.bf16 %v12749_v48  ;;  %v12756_v6 = vunpack.c.l.bf16 %v12755_v61 }
 0x29d   : > { %v12758_v5 = vunpack.c.l.bf16 %v12757_v41  ;;  %v6207_v30 = vadd.f32 %v6206_v63, %v6205_v46  ;;  %v6314_v8 = vadd.f32 %v6313_v2, %v6312_v38  ;;  %v11082_v28 = vadd.f32 %v12759_v25, %v10947_v19  ;;  %v12764_v46 = vld [vmem:[#allocation155_spill] sm:$0xff] }
 0x29e   : > { %v6208_v1 = vsel %vm5374_vm1, %v12753_v36, 0.0  ;;  %v6315_v27 = vsel %vm5374_vm1, %v12754_v14, 0.0  ;;  %v5986_v62 = vsel %vm5374_vm1, %v12756_v6, 0.0  ;;  %v6094_v12 = vadd.f32 %v6093_v35, %v6092_v16 }
 0x29f   : > { %v6095_v29 = vsel %vm5374_vm1, %v12758_v5, 0.0  ;;  %v12760_v26 = vunpack.c.h.bf16 %v12752_v43  ;;  %v12762_v24 = vunpack.c.l.bf16 %v12761_v44  ;;  %v5856_v57 = vadd.f32 %v10806_v51, %v5854_v21  ;;  %v12768_v21 = vld [vmem:[#allocation135_spill] sm:$0xff] }
 0x2a0   : > { %v12763_v48 = vunpack.c.h.bf16 %v12757_v41  ;;  %v6209_v4 = vadd.f32 %v6208_v1, %v6207_v30  ;;  %v6316_v2 = vadd.f32 %v6315_v27, %v6314_v8  ;;  %v5987_v9 = vadd.f32 %v5986_v62, %v5985_v32 }
 0x2a1   : > { %v6210_v10 = vsel %vm5374_vm1, %v12760_v26, 0.0  ;;  %v6317_v42 = vsel %vm5374_vm1, %v12762_v24, 0.0  ;;  %v6096_v19 = vadd.f32 %v6095_v29, %v6094_v12  ;;  %v12765_v35 = vunpack.c.l.bf16 %v12764_v46  ;;  %v12771_v29 = vld [vmem:[#allocation175_spill] sm:$0xff] }
 0x2a2   : > { %v6097_v63 = vsel %vm5374_vm1, %v12763_v48, 0.0  ;;  %v12766_v16 = vunpack.c.h.bf16 %v12761_v44  ;;  %v12767_v36 = vunpack.c.h.bf16 %v12755_v61  ;;  %v12769_v14 = vunpack.c.l.bf16 %v12768_v21 }
 0x2a3   : > { %v6212_v38 = vsel %vm5374_vm1, %v12765_v35, 0.0  ;;  %v6211_v1 = vadd.f32 %v6210_v10, %v6209_v4  ;;  %v6318_v27 = vadd.f32 %v6317_v42, %v6316_v2  ;;  %v11108_v32 = vadd.f32 %v10490_v40, %v10956_v3  ;;  %v12774_v3 = vld [vmem:[#allocation156_spill] sm:$0xff]  ;;  %v12777_v4 = vld [vmem:[#allocation109_spill] sm:$0xff] }
 0x2a4   : > { %v6319_v43 = vsel %vm5374_vm1, %v12766_v16, 0.0  ;;  %v5988_v51 = vsel %vm5374_vm1, %v12767_v36, 0.0  ;;  %v6099_v6 = vsel %vm5374_vm1, %v12769_v14, 0.0  ;;  %v6098_v62 = vadd.f32 %v6097_v63, %v6096_v19  ;;  %v12784_v14 = vld [vmem:[#allocation176_spill] sm:$0xff] }
 0x2a5   : > { %v12770_v41 = vunpack.c.h.bf16 %v12764_v46  ;;  %v12772_v30 = vunpack.c.l.bf16 %v12771_v29  ;;  %v5858_v8 = vadd.f32 %v10811_v7, %v5856_v57  ;;  %v12773_v25 = vunpack.c.h.bf16 %v12768_v21  ;;  %v12779_v57 = vld [vmem:[#allocation136_spill] sm:$0xff] }
 0x2a6   : > { %v6213_v26 = vadd.f32 %v6212_v38, %v6211_v1  ;;  %v6320_v10 = vadd.f32 %v6319_v43, %v6318_v27  ;;  %v5989_v44 = vadd.f32 %v5988_v51, %v5987_v9  ;;  %v6100_v40 = vadd.f32 %v6099_v6, %v6098_v62  ;;  %v12781_v9 = vld [vmem:[#allocation83_spill] sm:$0xff] }
 0x2a7   : > { %v6214_v5 = vsel %vm5374_vm1, %v12770_v41, 0.0  ;;  %v6321_v61 = vsel %vm5374_vm1, %v12772_v30, 0.0  ;;  %v6101_v12 = vsel %vm5374_vm1, %v12773_v25, 0.0  ;;  %v12775_v24 = vunpack.c.l.bf16 %v12774_v3  ;;  %v12787_v25 = vld [vmem:[#allocation157_spill] sm:$0xff] }
 0x2a8   : > { %v12776_v48 = vunpack.c.h.bf16 %v12771_v29  ;;  %v12778_v2 = vunpack.c.l.bf16 %v12777_v4  ;;  %v12780_v19 = vunpack.c.l.bf16 %v12779_v57  ;;  %v6215_v35 = vadd.f32 %v6214_v5, %v6213_v26 }
 0x2a9   : > { %v6216_v42 = vsel %vm5374_vm1, %v12775_v24, 0.0  ;;  %v6322_v38 = vadd.f32 %v6321_v61, %v6320_v10  ;;  %v12782_v16 = vunpack.c.l.bf16 %v12781_v9  ;;  %v6102_v36 = vadd.f32 %v6101_v12, %v6100_v40 }
 0x2aa   : > { %v6323_v63 = vsel %vm5374_vm1, %v12776_v48, 0.0  ;;  %v5990_v7 = vsel %vm5374_vm1, %v12778_v2, 0.0  ;;  %v6103_v46 = vsel %vm5374_vm1, %v12780_v19, 0.0  ;;  %v12783_v51 = vunpack.c.h.bf16 %v12774_v3 }
 0x2ab   : > { %v11135_v43 = vsel %vm5374_vm1, %v12782_v16, 0.0  ;;  %v12785_v6 = vunpack.c.l.bf16 %v12784_v14  ;;  %v5860_v27 = vadd.f32 %v10823_v50, %v5858_v8  ;;  %v12786_v62 = vunpack.c.h.bf16 %v12779_v57  ;;  %v12791_v8 = vld [vmem:[#allocation137_spill] sm:$0xff] }
 0x2ac   : > { %v6218_v21 = vsel %vm5374_vm1, %v12783_v51, 0.0  ;;  %v6217_v5 = vadd.f32 %v6216_v42, %v6215_v35  ;;  %v6324_v29 = vadd.f32 %v6323_v63, %v6322_v38  ;;  %v5991_v30 = vadd.f32 %v5990_v7, %v5989_v44 }
 0x2ad   : > { %v6325_v1 = vsel %vm5374_vm1, %v12785_v6, 0.0  ;;  %v6105_v41 = vsel %vm5374_vm1, %v12786_v62, 0.0  ;;  %v6104_v61 = vadd.f32 %v6103_v46, %v6102_v36  ;;  %v12788_v12 = vunpack.c.l.bf16 %v12787_v25  ;;  %v12795_v46 = vld [vmem:[#allocation64_spill] sm:$0xff]  ;;  %v12798_v6 = vld [vmem:[#allocation158_spill] sm:$0xff] }
 0x2ae   : > { %v12789_v10 = vunpack.c.h.bf16 %v12784_v14  ;;  %v12790_v3 = vunpack.c.h.bf16 %v12777_v4  ;;  %v12792_v24 = vunpack.c.l.bf16 %v12791_v8  ;;  %v6219_v42 = vadd.f32 %v6218_v21, %v6217_v5 }
 0x2af   : > { %v6220_v26 = vsel %vm5374_vm1, %v12788_v12, 0.0  ;;  %v6326_v63 = vadd.f32 %v6325_v1, %v6324_v29  ;;  %v12793_v44 = vunpack.c.h.bf16 %v12781_v9  ;;  %v6106_v7 = vadd.f32 %v6105_v41, %v6104_v61  ;;  %v12801_v29 = vld [vmem:[#allocation110_spill] sm:$0xff] }
 0x2b0   : > { %v6327_v40 = vsel %vm5374_vm1, %v12789_v10, 0.0  ;;  %v5992_v50 = vsel %vm5374_vm1, %v12790_v3, 0.0  ;;  %v6107_v48 = vsel %vm5374_vm1, %v12792_v24, 0.0  ;;  %v12794_v57 = vunpack.c.h.bf16 %v12787_v25  ;;  %v12807_v24 = vld [vmem:[#allocation177_spill] sm:$0xff] }
 0x2b1   : > { %v11162_v2 = vsel %vm5374_vm1, %v12793_v44, 0.0  ;;  %v12796_v4 = vunpack.c.l.bf16 %v12795_v46  ;;  %v5862_v38 = vadd.f32 %v10851_v39, %v5860_v27  ;;  %v12797_v16 = vunpack.c.h.bf16 %v12791_v8  ;;  %v12803_v27 = vld [vmem:[#allocation138_spill] sm:$0xff] }
 0x2b2   : > { %v6222_v19 = vsel %vm5374_vm1, %v12794_v57, 0.0  ;;  %v6221_v51 = vadd.f32 %v6220_v26, %v6219_v42  ;;  %v6328_v9 = vadd.f32 %v6327_v40, %v6326_v63  ;;  %v5993_v21 = vadd.f32 %v5992_v50, %v5991_v30  ;;  %v12805_v30 = vld [vmem:[#allocation28_spill] sm:$0xff] }
 0x2b3   : > { %v6329_v35 = vsel %vm5374_vm1, %v12796_v4, 0.0  ;;  %v6109_v36 = vsel %vm5374_vm1, %v12797_v16, 0.0  ;;  %v6108_v14 = vadd.f32 %v6107_v48, %v6106_v7  ;;  %v12799_v1 = vunpack.c.l.bf16 %v12798_v6  ;;  %v12810_v4 = vld [vmem:[#allocation159_spill] sm:$0xff] }
 0x2b4   : > { %v12800_v41 = vunpack.c.h.bf16 %v12795_v46  ;;  %v12802_v61 = vunpack.c.l.bf16 %v12801_v29  ;;  %v12804_v25 = vunpack.c.l.bf16 %v12803_v27  ;;  %v6223_v26 = vadd.f32 %v6222_v19, %v6221_v51 }
 0x2b5   : > { %v6224_v62 = vsel %vm5374_vm1, %v12799_v1, 0.0  ;;  %v6330_v10 = vadd.f32 %v6329_v35, %v6328_v9  ;;  %v11188_v40 = vadd.f32 %v12805_v30, %v11007_v60  ;;  %v6110_v3 = vadd.f32 %v6109_v36, %v6108_v14 }
 0x2b6   : > { %v6331_v5 = vsel %vm5374_vm1, %v12800_v41, 0.0  ;;  %v5994_v39 = vsel %vm5374_vm1, %v12802_v61, 0.0  ;;  %v6111_v12 = vsel %vm5374_vm1, %v12804_v25, 0.0  ;;  %v12806_v50 = vunpack.c.h.bf16 %v12798_v6 }
 0x2b7   : > { %v12808_v48 = vunpack.c.l.bf16 %v12807_v24  ;;  %v5864_v63 = vadd.f32 %v10874_v11, %v5862_v38  ;;  %v12809_v44 = vunpack.c.h.bf16 %v12803_v27  ;;  %v6225_v57 = vadd.f32 %v6224_v62, %v6223_v26  ;;  %v12814_v38 = vld [vmem:[#allocation139_spill] sm:$0xff] }
 0x2b8   : > { %v6226_v8 = vsel %vm5374_vm1, %v12806_v50, 0.0  ;;  %v6332_v19 = vadd.f32 %v6331_v5, %v6330_v10  ;;  %v5995_v46 = vadd.f32 %v5994_v39, %v5993_v21  ;;  %v6112_v60 = vadd.f32 %v6111_v12, %v6110_v3  ;;  %v12817_v39 = vld [vmem:[#allocation25_spill] sm:$0xff] }
 0x2b9   : > { %v6333_v42 = vsel %vm5374_vm1, %v12808_v48, 0.0  ;;  %v6113_v7 = vsel %vm5374_vm1, %v12809_v44, 0.0  ;;  %v12811_v35 = vunpack.c.l.bf16 %v12810_v4  ;;  %v12812_v36 = vunpack.c.h.bf16 %v12807_v24 }
 0x2ba   : > { %v12813_v9 = vunpack.c.h.bf16 %v12801_v29  ;;  %v12815_v14 = vunpack.c.l.bf16 %v12814_v38  ;;  %v6227_v1 = vadd.f32 %v6226_v8, %v6225_v57  ;;  %v6334_v62 = vadd.f32 %v6333_v42, %v6332_v19  ;;  %v12823_v42 = vld [vmem:[#allocation111_spill] sm:$0xff] }
 0x2bb   : > { %v6228_v16 = vsel %vm5374_vm1, %v12811_v35, 0.0  ;;  %v6335_v51 = vsel %vm5374_vm1, %v12812_v36, 0.0  ;;  %v11214_v21 = vadd.f32 %v10500_v17, %v11082_v28  ;;  %v6114_v41 = vadd.f32 %v6113_v7, %v6112_v60  ;;  %v12820_v28 = vld [vmem:[#allocation160_spill] sm:$0xff] }
 0x2bc   : > { %v5996_v11 = vsel %vm5374_vm1, %v12813_v9, 0.0  ;;  %v6115_v6 = vsel %vm5374_vm1, %v12815_v14, 0.0  ;;  %v12816_v5 = vunpack.c.h.bf16 %v12810_v4  ;;  %v12818_v27 = vunpack.c.l.bf16 %v12817_v39 }
 0x2bd   : > { %v5866_v25 = vadd.f32 %v10885_v23, %v5864_v63  ;;  %v12819_v12 = vunpack.c.h.bf16 %v12814_v38  ;;  %v6229_v10 = vadd.f32 %v6228_v16, %v6227_v1  ;;  %v6336_v30 = vadd.f32 %v6335_v51, %v6334_v62  ;;  %v12825_v63 = vld [vmem:[#allocation140_spill] sm:$0xff] }
 0x2be   : > { %v6230_v61 = vsel %vm5374_vm1, %v12816_v5, 0.0  ;;  %v6337_v29 = vsel %vm5374_vm1, %v12818_v27, 0.0  ;;  %v5997_v3 = vadd.f32 %v5996_v11, %v5995_v46  ;;  %v6116_v17 = vadd.f32 %v6115_v6, %v6114_v41  ;;  %v12827_v46 = vld [vmem:[#allocation67_spill] sm:$0xff]  ;;  %v12829_v51 = vld [vmem:[#allocation44_spill] sm:$0xff] }
 0x2bf   : > { %v6117_v26 = vsel %vm5374_vm1, %v12819_v12, 0.0  ;;  %v12821_v50 = vunpack.c.l.bf16 %v12820_v28  ;;  %v12822_v24 = vunpack.c.h.bf16 %v12817_v39  ;;  %v12824_v44 = vunpack.c.l.bf16 %v12823_v42 }
 0x2c0   : > { %v12826_v7 = vunpack.c.l.bf16 %v12825_v63  ;;  %v6231_v19 = vadd.f32 %v6230_v61, %v6229_v10  ;;  %v6338_v60 = vadd.f32 %v6337_v29, %v6336_v30  ;;  %v5739_v4 = vadd.f32 %v12827_v46, %v11108_v32  ;;  %v12832_v32 = vld [vmem:[#allocation161_spill] sm:$0xff] }
 0x2c1   : > { %v6232_v8 = vsel %vm5374_vm1, %v12821_v50, 0.0  ;;  %v6339_v48 = vsel %vm5374_vm1, %v12822_v24, 0.0  ;;  %v5998_v23 = vsel %vm5374_vm1, %v12824_v44, 0.0  ;;  %v6118_v35 = vadd.f32 %v6117_v26, %v6116_v17  ;;  %v12841_v44 = vld [vmem:[#allocation178_spill] sm:$0xff] }
 0x2c2   : > { %v6119_v57 = vsel %vm5374_vm1, %v12826_v7, 0.0  ;;  %v12828_v16 = vunpack.c.h.bf16 %v12820_v28  ;;  %v12830_v9 = vunpack.c.l.bf16 %v12829_v51  ;;  %v5868_v38 = vadd.f32 %v10911_v13, %v5866_v25  ;;  %v12836_v25 = vld [vmem:[#allocation141_spill] sm:$0xff] }
 0x2c3   : > { %v12831_v14 = vunpack.c.h.bf16 %v12825_v63  ;;  %v6233_v1 = vadd.f32 %v6232_v8, %v6231_v19  ;;  %v6340_v62 = vadd.f32 %v6339_v48, %v6338_v60  ;;  %v5999_v41 = vadd.f32 %v5998_v23, %v5997_v3  ;;  %v12838_v3 = vld [vmem:[#allocation84_spill] sm:$0xff] }
 0x2c4   : > { %v6234_v36 = vsel %vm5374_vm1, %v12828_v16, 0.0  ;;  %v6341_v11 = vsel %vm5374_vm1, %v12830_v9, 0.0  ;;  %v6120_v5 = vadd.f32 %v6119_v57, %v6118_v35  ;;  %v12833_v61 = vunpack.c.l.bf16 %v12832_v32  ;;  %v12844_v16 = vld [vmem:[#allocation162_spill] sm:$0xff] }
 0x2c5   : > { %v6121_v6 = vsel %vm5374_vm1, %v12831_v14, 0.0  ;;  %v12834_v27 = vunpack.c.h.bf16 %v12829_v51  ;;  %v12835_v12 = vunpack.c.h.bf16 %v12823_v42  ;;  %v12837_v26 = vunpack.c.l.bf16 %v12836_v25  ;;  %v12847_v14 = vld [vmem:[#allocation112_spill] sm:$0xff] }
 0x2c6   : > { %v6236_v39 = vsel %vm5374_vm1, %v12833_v61, 0.0  ;;  %v6235_v30 = vadd.f32 %v6234_v36, %v6233_v1  ;;  %v6342_v17 = vadd.f32 %v6341_v11, %v6340_v62  ;;  %v12839_v28 = vunpack.c.l.bf16 %v12838_v3 }
 0x2c7   : > { %v6343_v29 = vsel %vm5374_vm1, %v12834_v27, 0.0  ;;  %v6000_v13 = vsel %vm5374_vm1, %v12835_v12, 0.0  ;;  %v6123_v10 = vsel %vm5374_vm1, %v12837_v26, 0.0  ;;  %v6122_v8 = vadd.f32 %v6121_v6, %v6120_v5  ;;  %v12853_v12 = vld [vmem:[#allocation9_spill] sm:$0xff] }
 0x2c8   : > { %v11265_v50 = vsel %vm5374_vm1, %v12839_v28, 0.0  ;;  %v12840_v24 = vunpack.c.h.bf16 %v12832_v32  ;;  %v12842_v42 = vunpack.c.l.bf16 %v12841_v44  ;;  %v5870_v63 = vadd.f32 %v10926_v15, %v5868_v38  ;;  %v12849_v38 = vld [vmem:[#allocation142_spill] sm:$0xff] }
 0x2c9   : > { %v12843_v7 = vunpack.c.h.bf16 %v12836_v25  ;;  %v6237_v19 = vadd.f32 %v6236_v39, %v6235_v30  ;;  %v6344_v60 = vadd.f32 %v6343_v29, %v6342_v17  ;;  %v6001_v46 = vadd.f32 %v6000_v13, %v5999_v41  ;;  %v12851_v41 = vld [vmem:[#allocation12_spill] sm:$0xff] }
 0x2ca   : > { %v6238_v48 = vsel %vm5374_vm1, %v12840_v24, 0.0  ;;  %v6345_v23 = vsel %vm5374_vm1, %v12842_v42, 0.0  ;;  %v6124_v35 = vadd.f32 %v6123_v10, %v6122_v8  ;;  %v12845_v36 = vunpack.c.l.bf16 %v12844_v16  ;;  %v12856_v24 = vld [vmem:[#allocation163_spill] sm:$0xff] }
 0x2cb   : > { %v6125_v57 = vsel %vm5374_vm1, %v12843_v7, 0.0  ;;  %v12846_v9 = vunpack.c.h.bf16 %v12841_v44  ;;  %v12848_v6 = vunpack.c.l.bf16 %v12847_v14  ;;  %v12850_v1 = vunpack.c.l.bf16 %v12849_v38 }
 0x2cc   : > { %v6240_v51 = vsel %vm5374_vm1, %v12845_v36, 0.0  ;;  %v6239_v5 = vadd.f32 %v6238_v48, %v6237_v19  ;;  %v6346_v32 = vadd.f32 %v6345_v23, %v6344_v60  ;;  %v11291_v61 = vadd.f32 %v12851_v41, %v11188_v40 }
 0x2cd   : > { %v6347_v11 = vsel %vm5374_vm1, %v12846_v9, 0.0  ;;  %v6002_v15 = vsel %vm5374_vm1, %v12848_v6, 0.0  ;;  %v6127_v62 = vsel %vm5374_vm1, %v12850_v1, 0.0  ;;  %v6126_v39 = vadd.f32 %v6125_v57, %v6124_v35  ;;  %v12863_v9 = vld [vmem:[#allocation179_spill] sm:$0xff] }
 0x2ce   : > { %v12852_v27 = vunpack.c.h.bf16 %v12844_v16  ;;  %v12854_v13 = vunpack.c.l.bf16 %v12853_v12  ;;  %v5872_v26 = vadd.f32 %v10934_v34, %v5870_v63  ;;  %v12855_v10 = vunpack.c.h.bf16 %v12849_v38  ;;  %v12860_v63 = vld [vmem:[#allocation143_spill] sm:$0xff] }
 0x2cf   : > { %v6241_v17 = vadd.f32 %v6240_v51, %v6239_v5  ;;  %v6348_v28 = vadd.f32 %v6347_v11, %v6346_v32  ;;  %v6003_v8 = vadd.f32 %v6002_v15, %v6001_v46  ;;  %v6128_v40 = vadd.f32 %v6127_v62, %v6126_v39 }
 0x2d0   : > { %v6242_v29 = vsel %vm5374_vm1, %v12852_v27, 0.0  ;;  %v6349_v25 = vsel %vm5374_vm1, %v12854_v13, 0.0  ;;  %v6129_v30 = vsel %vm5374_vm1, %v12855_v10, 0.0  ;;  %v12857_v48 = vunpack.c.l.bf16 %v12856_v24  ;;  %v12871_v13 = vld [vmem:[#allocation144_spill] sm:$0xff] }
 0x2d1   : > { %v12858_v42 = vunpack.c.h.bf16 %v12853_v12  ;;  %v12859_v7 = vunpack.c.h.bf16 %v12847_v14  ;;  %v12861_v57 = vunpack.c.l.bf16 %v12860_v63  ;;  %v6243_v60 = vadd.f32 %v6242_v29, %v6241_v17  ;;  %v12869_v29 = vld [vmem:[#allocation113_spill] sm:$0xff] }
 0x2d2   : > { %v6244_v44 = vsel %vm5374_vm1, %v12857_v48, 0.0  ;;  %v6350_v35 = vadd.f32 %v6349_v25, %v6348_v28  ;;  %v5741_v46 = vadd.f32 %v10537_v58, %v5739_v4  ;;  %v6130_v16 = vadd.f32 %v6129_v30, %v6128_v40  ;;  %v12866_v58 = vld [vmem:[#allocation164_spill] sm:$0xff] }
 0x2d3   : > { %v6351_v23 = vsel %vm5374_vm1, %v12858_v42, 0.0  ;;  %v6004_v34 = vsel %vm5374_vm1, %v12859_v7, 0.0  ;;  %v6131_v19 = vsel %vm5374_vm1, %v12861_v57, 0.0  ;;  %v12862_v36 = vunpack.c.h.bf16 %v12856_v24  ;;  %v12874_v24 = vld [vmem:[#allocation180_spill] sm:$0xff] }
 0x2d4   : > { %v12864_v11 = vunpack.c.l.bf16 %v12863_v9  ;;  %v5874_v14 = vadd.f32 %v10964_v49, %v5872_v26  ;;  %v12865_v15 = vunpack.c.h.bf16 %v12860_v63  ;;  %v6245_v1 = vadd.f32 %v6244_v44, %v6243_v60 }
 0x2d5   : > { %v6246_v51 = vsel %vm5374_vm1, %v12862_v36, 0.0  ;;  %v6352_v62 = vadd.f32 %v6351_v23, %v6350_v35  ;;  %v6005_v5 = vadd.f32 %v6004_v34, %v6003_v8  ;;  %v6132_v32 = vadd.f32 %v6131_v19, %v6130_v16 }
 0x2d6   : > { %v6353_v6 = vsel %vm5374_vm1, %v12864_v11, 0.0  ;;  %v6133_v38 = vsel %vm5374_vm1, %v12865_v15, 0.0  ;;  %v12867_v4 = vunpack.c.l.bf16 %v12866_v58  ;;  %v12868_v39 = vunpack.c.h.bf16 %v12863_v9 }
 0x2d7   : > { %v12870_v12 = vunpack.c.l.bf16 %v12869_v29  ;;  %v12872_v25 = vunpack.c.l.bf16 %v12871_v13  ;;  %v6247_v10 = vadd.f32 %v6246_v51, %v6245_v1  ;;  %v6354_v30 = vadd.f32 %v6353_v6, %v6352_v62  ;;  %v12881_v51 = vld [vmem:[#allocation145_spill] sm:$0xff] }
 0x2d8   : > { %v6248_v41 = vsel %vm5374_vm1, %v12867_v4, 0.0  ;;  %v6355_v27 = vsel %vm5374_vm1, %v12868_v39, 0.0  ;;  %v5743_v17 = vadd.f32 %v10547_v0, %v5741_v46  ;;  %v6134_v28 = vadd.f32 %v6133_v38, %v6132_v32  ;;  %v12877_v0 = vld [vmem:[#allocation165_spill] sm:$0xff] }
 0x2d9   : > { %v6006_v49 = vsel %vm5374_vm1, %v12870_v12, 0.0  ;;  %v6135_v26 = vsel %vm5374_vm1, %v12872_v25, 0.0  ;;  %v12873_v8 = vunpack.c.h.bf16 %v12866_v58  ;;  %v12875_v48 = vunpack.c.l.bf16 %v12874_v24  ;;  %v12886_v4 = vld [vmem:[#allocation29_spill] sm:$0xff] }
 0x2da   : > { %v5876_v42 = vadd.f32 %v10979_v31, %v5874_v14  ;;  %v12876_v23 = vunpack.c.h.bf16 %v12871_v13  ;;  %v6249_v34 = vadd.f32 %v6248_v41, %v6247_v10  ;;  %v6356_v63 = vadd.f32 %v6355_v27, %v6354_v30  ;;  %v12888_v13 = vld [vmem:[#allocation166_spill] sm:$0xff] }
 0x2db   : > { %v6250_v40 = vsel %vm5374_vm1, %v12873_v8, 0.0  ;;  %v6357_v44 = vsel %vm5374_vm1, %v12875_v48, 0.0  ;;  %v6007_v57 = vadd.f32 %v6006_v49, %v6005_v5  ;;  %v6136_v19 = vadd.f32 %v6135_v26, %v6134_v28  ;;  %v12884_v5 = vld [vmem:[#allocation65_spill] sm:$0xff]  ;;  %v12891_v28 = vld [vmem:[#allocation114_spill] sm:$0xff] }
 0x2dc   : > { %v6137_v7 = vsel %vm5374_vm1, %v12876_v23, 0.0  ;;  %v12878_v60 = vunpack.c.l.bf16 %v12877_v0  ;;  %v12879_v46 = vunpack.c.h.bf16 %v12874_v24  ;;  %v12880_v36 = vunpack.c.h.bf16 %v12869_v29 }
 0x2dd   : > { %v12882_v9 = vunpack.c.l.bf16 %v12881_v51  ;;  %v6251_v6 = vadd.f32 %v6250_v40, %v6249_v34  ;;  %v6358_v14 = vadd.f32 %v6357_v44, %v6356_v63  ;;  %v5745_v15 = vadd.f32 %v10584_v20, %v5743_v17  ;;  %v12895_v63 = vld [vmem:[#allocation181_spill] sm:$0xff] }
 0x2de   : > { %v6252_v35 = vsel %vm5374_vm1, %v12878_v60, 0.0  ;;  %v6359_v16 = vsel %vm5374_vm1, %v12879_v46, 0.0  ;;  %v6008_v31 = vsel %vm5374_vm1, %v12880_v36, 0.0  ;;  %v6138_v38 = vadd.f32 %v6137_v7, %v6136_v19  ;;  %v12898_v46 = vld [vmem:[#allocation146_spill] sm:$0xff]  ;;  %v12900_v36 = vld [vmem:[#allocation167_spill] sm:$0xff] }
 0x2df   : > { %v6139_v11 = vsel %vm5374_vm1, %v12882_v9, 0.0  ;;  %v12883_v1 = vunpack.c.h.bf16 %v12877_v0  ;;  %v12885_v32 = vunpack.c.l.bf16 %v12884_v5  ;;  %v5616_v41 = vadd.f32 %v12886_v4, %v11214_v21 }
 0x2e0   : > { %v12887_v39 = vunpack.c.h.bf16 %v12881_v51  ;;  %v6253_v29 = vadd.f32 %v6252_v35, %v6251_v6  ;;  %v6360_v12 = vadd.f32 %v6359_v16, %v6358_v14  ;;  %v6009_v49 = vadd.f32 %v6008_v31, %v6007_v57 }
 0x2e1   : > { %v6254_v62 = vsel %vm5374_vm1, %v12883_v1, 0.0  ;;  %v6361_v58 = vsel %vm5374_vm1, %v12885_v32, 0.0  ;;  %v6140_v20 = vadd.f32 %v6139_v11, %v6138_v38  ;;  %v12889_v25 = vunpack.c.l.bf16 %v12888_v13 }
 0x2e2   : > { %v6141_v27 = vsel %vm5374_vm1, %v12887_v39, 0.0  ;;  %v12890_v10 = vunpack.c.h.bf16 %v12884_v5  ;;  %v5878_v17 = vadd.f32 %v10990_v56, %v5876_v42  ;;  %v12892_v21 = vunpack.c.l.bf16 %v12891_v28  ;;  %v12897_v42 = vld [vmem:[#allocation47_spill] sm:$0xff] }
 0x2e3   : > { %v6256_v26 = vsel %vm5374_vm1, %v12889_v25, 0.0  ;;  %v6255_v40 = vadd.f32 %v6254_v62, %v6253_v29  ;;  %v6362_v24 = vadd.f32 %v6361_v58, %v6360_v12  ;;  %v5747_v48 = vadd.f32 %v10594_v45, %v5745_v15  ;;  %v12905_v58 = vld [vmem:[#allocation26_spill] sm:$0xff] }
 0x2e4   : > { %v6363_v30 = vsel %vm5374_vm1, %v12890_v10, 0.0  ;;  %v6010_v8 = vsel %vm5374_vm1, %v12892_v21, 0.0  ;;  %v12893_v44 = vunpack.c.h.bf16 %v12838_v3  ;;  %v12894_v7 = vunpack.c.h.bf16 %v12888_v13 }
 0x2e5   : > { %v12896_v57 = vunpack.c.l.bf16 %v12895_v63  ;;  %v5491_v19 = vadd.f32 %v12897_v42, %v11291_v61  ;;  %v6142_v0 = vadd.f32 %v6141_v27, %v6140_v20  ;;  %v6257_v60 = vadd.f32 %v6256_v26, %v6255_v40  ;;  %v12907_v27 = vld [vmem:[#allocation85_spill] sm:$0xff] }
 0x2e6   : > { %v11387_v23 = vsel %vm5374_vm1, %v12893_v44, 0.0  ;;  %v6258_v34 = vsel %vm5374_vm1, %v12894_v7, 0.0  ;;  %v6364_v35 = vadd.f32 %v6363_v30, %v6362_v24  ;;  %v6011_v45 = vadd.f32 %v6010_v8, %v6009_v49 }
 0x2e7   : > { %v6365_v56 = vsel %vm5374_vm1, %v12896_v57, 0.0  ;;  %v12899_v3 = vunpack.c.l.bf16 %v12898_v46  ;;  %v12901_v31 = vunpack.c.l.bf16 %v12900_v36  ;;  %v12902_v9 = vunpack.c.h.bf16 %v12895_v63  ;;  %v12917_v57 = vld [vmem:[#allocation45_spill] sm:$0xff] }
 0x2e8   : > { %v5880_v6 = vadd.f32 %v10998_v59, %v5878_v17  ;;  %v12903_v61 = vunpack.c.h.bf16 %v12891_v28  ;;  %v6259_v15 = vadd.f32 %v6258_v34, %v6257_v60  ;;  %v6366_v38 = vadd.f32 %v6365_v56, %v6364_v35  ;;  %v12913_v28 = vld [vmem:[#allocation115_spill] sm:$0xff] }
 0x2e9   : > { %v6143_v16 = vsel %vm5374_vm1, %v12899_v3, 0.0  ;;  %v6260_v51 = vsel %vm5374_vm1, %v12901_v31, 0.0  ;;  %v6367_v11 = vsel %vm5374_vm1, %v12902_v9, 0.0  ;;  %v5618_v1 = vadd.f32 %v10542_v37, %v5616_v41  ;;  %v12910_v41 = vld [vmem:[#allocation168_spill] sm:$0xff]  ;;  %v12920_v3 = vld [vmem:[#allocation147_spill] sm:$0xff]  ;;  %v12922_v31 = vld [vmem:[#allocation42_spill] sm:$0xff] }
 0x2ea   : > { %v6012_v14 = vsel %vm5374_vm1, %v12903_v61, 0.0  ;;  %v5749_v62 = vadd.f32 %v10613_v18, %v5747_v48  ;;  %v12904_v5 = vunpack.c.h.bf16 %v12900_v36  ;;  %v12906_v4 = vunpack.c.l.bf16 %v12905_v58  ;;  %v12915_v48 = vld [vmem:[#allocation48_spill] sm:$0xff] }
 0x2eb   : > { %v12908_v59 = vunpack.c.l.bf16 %v12907_v27  ;;  %v6144_v12 = vadd.f32 %v6143_v16, %v6142_v0  ;;  %v6261_v49 = vadd.f32 %v6260_v51, %v6259_v15  ;;  %v6368_v20 = vadd.f32 %v6367_v11, %v6366_v38  ;;  %v12919_v0 = vld [vmem:[#allocation13_spill] sm:$0xff] }
 0x2ec   : > { %v6262_v32 = vsel %vm5374_vm1, %v12904_v5, 0.0  ;;  %v6369_v39 = vsel %vm5374_vm1, %v12906_v4, 0.0  ;;  %v6013_v13 = vadd.f32 %v6012_v14, %v6011_v45  ;;  %v12909_v37 = vunpack.c.h.bf16 %v12898_v46  ;;  %v12926_v38 = vld [vmem:[#allocation49_spill] sm:$0xff]  ;;  %v12929_v4 = vld [vmem:[#allocation182_spill] sm:$0xff] }
 0x2ed   : > { %v11421_v29 = vsel %vm5374_vm1, %v12908_v59, 0.0  ;;  %v12911_v25 = vunpack.c.l.bf16 %v12910_v41  ;;  %v12912_v10 = vunpack.c.h.bf16 %v12905_v58  ;;  %v5882_v17 = vadd.f32 %v11135_v43, %v5880_v6 }
 0x2ee   : > { %v6145_v18 = vsel %vm5374_vm1, %v12909_v37, 0.0  ;;  %v12914_v21 = vunpack.c.l.bf16 %v12913_v28  ;;  %v6263_v40 = vadd.f32 %v6262_v32, %v6261_v49  ;;  %v6370_v24 = vadd.f32 %v6369_v39, %v6368_v20 }
 0x2ef   : > { %v6264_v26 = vsel %vm5374_vm1, %v12911_v25, 0.0  ;;  %v6371_v30 = vsel %vm5374_vm1, %v12912_v10, 0.0  ;;  %v5620_v44 = vadd.f32 %v12915_v48, %v5618_v1  ;;  %v5751_v7 = vadd.f32 %v10631_v55, %v5749_v62  ;;  %v12927_v62 = vld [vmem:[#allocation16_spill] sm:$0xff]  ;;  %v12933_v25 = vld [vmem:[#allocation169_spill] sm:$0xff]  ;;  %v12938_v48 = vld [vmem:[#allocation15_spill] sm:$0xff] }
 0x2f0   : > { %v6014_v8 = vsel %vm5374_vm1, %v12914_v21, 0.0  ;;  %v12916_v34 = vunpack.c.h.bf16 %v12910_v41  ;;  %v12918_v56 = vunpack.c.l.bf16 %v12917_v57  ;;  %v5493_v43 = vadd.f32 %v12919_v0, %v5491_v19 }
 0x2f1   : > { %v6146_v60 = vadd.f32 %v6145_v18, %v6144_v12  ;;  %v6265_v35 = vadd.f32 %v6264_v26, %v6263_v40  ;;  %v6372_v45 = vadd.f32 %v6371_v30, %v6370_v24  ;;  %v6015_v46 = vadd.f32 %v6014_v8, %v6013_v13 }
 0x2f2   : > { %v6266_v63 = vsel %vm5374_vm1, %v12916_v34, 0.0  ;;  %v6373_v42 = vsel %vm5374_vm1, %v12918_v56, 0.0  ;;  %v12921_v16 = vunpack.c.l.bf16 %v12920_v3  ;;  %v12923_v55 = vunpack.c.l.bf16 %v12922_v31  ;;  %v12941_v56 = vld [vmem:[#allocation10_spill] sm:$0xff] }
 0x2f3   : > { %v12924_v9 = vunpack.c.h.bf16 %v12917_v57  ;;  %v5884_v6 = vadd.f32 %v11162_v2, %v5882_v17  ;;  %v12925_v19 = vunpack.c.h.bf16 %v12913_v28  ;;  %v6267_v14 = vadd.f32 %v6266_v63, %v6265_v35  ;;  %v12936_v28 = vld [vmem:[#allocation116_spill] sm:$0xff] }
 0x2f4   : > { %v6147_v36 = vsel %vm5374_vm1, %v12921_v16, 0.0  ;;  %v6268_v51 = vsel %vm5374_vm1, %v12923_v55, 0.0  ;;  %v6374_v15 = vadd.f32 %v6373_v42, %v6372_v45  ;;  %v5622_v1 = vadd.f32 %v12926_v38, %v5620_v44  ;;  %v12944_v16 = vld [vmem:[#allocation148_spill] sm:$0xff]  ;;  %v12946_v55 = vld [vmem:[#allocation170_spill] sm:$0xff] }
 0x2f5   : > { %v6375_v11 = vsel %vm5374_vm1, %v12924_v9, 0.0  ;;  %v6016_v61 = vsel %vm5374_vm1, %v12925_v19, 0.0  ;;  %v5753_v5 = vadd.f32 %v12927_v62, %v5751_v7  ;;  %v12928_v32 = vunpack.c.h.bf16 %v12922_v31  ;;  %v12939_v7 = vld [vmem:[#allocation33_spill] sm:$0xff]  ;;  %v12950_v38 = vld [vmem:[#allocation50_spill] sm:$0xff] }
 0x2f6   : > { %v12930_v39 = vunpack.c.l.bf16 %v12929_v4  ;;  %v12931_v2 = vunpack.c.h.bf16 %v12907_v27  ;;  %v6148_v49 = vadd.f32 %v6147_v36, %v6146_v60  ;;  %v6269_v20 = vadd.f32 %v6268_v51, %v6267_v14  ;;  %v12943_v60 = vld [vmem:[#allocation30_spill] sm:$0xff] }
 0x2f7   : > { %v6270_v58 = vsel %vm5374_vm1, %v12928_v32, 0.0  ;;  %v6376_v13 = vadd.f32 %v6375_v11, %v6374_v15  ;;  %v6017_v37 = vadd.f32 %v6016_v61, %v6015_v46  ;;  %v12932_v18 = vunpack.c.h.bf16 %v12920_v3 }
 0x2f8   : > { %v6377_v59 = vsel %vm5374_vm1, %v12930_v39, 0.0  ;;  %v5891_v12 = vsel %vm5374_vm1, %v12931_v2, 0.0  ;;  %v12934_v26 = vunpack.c.l.bf16 %v12933_v25  ;;  %v12935_v30 = vunpack.c.h.bf16 %v12929_v4 }
 0x2f9   : > { %v6149_v41 = vsel %vm5374_vm1, %v12932_v18, 0.0  ;;  %v5886_v27 = vadd.f32 %v11265_v50, %v5884_v6  ;;  %v12937_v21 = vunpack.c.l.bf16 %v12936_v28  ;;  %v6271_v40 = vadd.f32 %v6270_v58, %v6269_v20  ;;  %v12952_v58 = vld [vmem:[#allocation183_spill] sm:$0xff] }
 0x2fa   : > { %v6272_v10 = vsel %vm5374_vm1, %v12934_v26, 0.0  ;;  %v6379_v17 = vsel %vm5374_vm1, %v12935_v30, 0.0  ;;  %v6378_v24 = vadd.f32 %v6377_v59, %v6376_v13  ;;  %v5624_v44 = vadd.f32 %v12938_v48, %v5622_v1  ;;  %v12954_v59 = vld [vmem:[#allocation86_spill] sm:$0xff] }
 0x2fb   : > { %v6018_v8 = vsel %vm5374_vm1, %v12937_v21, 0.0  ;;  %v5755_v34 = vadd.f32 %v12939_v7, %v5753_v5  ;;  %v12940_v63 = vunpack.c.h.bf16 %v12933_v25  ;;  %v12942_v42 = vunpack.c.l.bf16 %v12941_v56 }
 0x2fc   : > { %v5495_v50 = vadd.f32 %v12943_v60, %v5493_v43  ;;  %v6150_v35 = vadd.f32 %v6149_v41, %v6148_v49  ;;  %v6273_v45 = vadd.f32 %v6272_v10, %v6271_v40  ;;  %v6380_v46 = vadd.f32 %v6379_v17, %v6378_v24  ;;  %v12957_v41 = vld [vmem:[#allocation7_spill] sm:$0xff]  ;;  %v12962_v24 = vld [vmem:[#allocation32_spill] sm:$0xff] }
 0x2fd   : > { %v6274_v57 = vsel %vm5374_vm1, %v12940_v63, 0.0  ;;  %v6381_v0 = vsel %vm5374_vm1, %v12942_v42, 0.0  ;;  %v6019_v3 = vadd.f32 %v6018_v8, %v6017_v37  ;;  %v12945_v36 = vunpack.c.l.bf16 %v12944_v16  ;;  %v12964_v63 = vld [vmem:[#allocation184_spill] sm:$0xff]  ;;  %v12966_v42 = vld [vmem:[#allocation14_spill] sm:$0xff] }
 0x2fe   : > { %v12947_v51 = vunpack.c.l.bf16 %v12946_v55  ;;  %v12948_v11 = vunpack.c.h.bf16 %v12941_v56  ;;  %v5888_v19 = vadd.f32 %v11387_v23, %v5886_v27  ;;  %v12949_v43 = vunpack.c.h.bf16 %v12936_v28  ;;  %v12960_v27 = vld [vmem:[#allocation117_spill] sm:$0xff] }
 0x2ff   : > { %v6151_v31 = vsel %vm5374_vm1, %v12945_v36, 0.0  ;;  %v6275_v14 = vadd.f32 %v6274_v57, %v6273_v45  ;;  %v6382_v15 = vadd.f32 %v6381_v0, %v6380_v46  ;;  %v5626_v1 = vadd.f32 %v12950_v38, %v5624_v44  ;;  %v12967_v46 = vld [vmem:[#allocation149_spill] sm:$0xff]  ;;  %v12969_v36 = vld [vmem:[#allocation171_spill] sm:$0xff] }
 0x300   : > { %v6276_v9 = vsel %vm5374_vm1, %v12947_v51, 0.0  ;;  %v6383_v6 = vsel %vm5374_vm1, %v12948_v11, 0.0  ;;  %v6020_v61 = vsel %vm5374_vm1, %v12949_v43, 0.0  ;;  %v5757_v62 = vadd.f32 %v10708_v54, %v5755_v34  ;;  %v12973_v43 = vld [vmem:[#allocation51_spill] sm:$0xff] }
 0x301   : > { %v12951_v5 = vunpack.c.h.bf16 %v12946_v55  ;;  %v12953_v4 = vunpack.c.l.bf16 %v12952_v58  ;;  %v12955_v23 = vunpack.c.l.bf16 %v12954_v59  ;;  %v6152_v49 = vadd.f32 %v6151_v31, %v6150_v35 }
 0x302   : > { %v6277_v20 = vadd.f32 %v6276_v9, %v6275_v14  ;;  %v6384_v13 = vadd.f32 %v6383_v6, %v6382_v15  ;;  %v6021_v37 = vadd.f32 %v6020_v61, %v6019_v3  ;;  %v12956_v18 = vunpack.c.h.bf16 %v12944_v16 }
 0x303   : > { %v6278_v32 = vsel %vm5374_vm1, %v12951_v5, 0.0  ;;  %v6385_v39 = vsel %vm5374_vm1, %v12953_v4, 0.0  ;;  %v5893_v2 = vsel %vm5374_vm1, %v12955_v23, 0.0  ;;  %v12958_v25 = vunpack.c.l.bf16 %v12957_v41 }
 0x304   : > { %v6153_v54 = vsel %vm5374_vm1, %v12956_v18, 0.0  ;;  %v12959_v10 = vunpack.c.h.bf16 %v12952_v58  ;;  %v5890_v17 = vadd.f32 %v11421_v29, %v5888_v19  ;;  %v12961_v28 = vunpack.c.l.bf16 %v12960_v27 }
 0x305   : > { %v6280_v26 = vsel %vm5374_vm1, %v12958_v25, 0.0  ;;  %v6279_v8 = vadd.f32 %v6278_v32, %v6277_v20  ;;  %v6386_v40 = vadd.f32 %v6385_v39, %v6384_v13  ;;  %v5628_v48 = vadd.f32 %v12962_v24, %v5626_v1  ;;  %v12975_v1 = vld [vmem:[#allocation66_spill] sm:$0xff]  ;;  %v12979_v20 = vld [vmem:[#allocation172_spill] sm:$0xff] }
 0x306   : > { %v6387_v30 = vsel %vm5374_vm1, %v12959_v10, 0.0  ;;  %v6022_v21 = vsel %vm5374_vm1, %v12961_v28, 0.0  ;;  %v5759_v44 = vadd.f32 %v10741_v53, %v5757_v62  ;;  %v12963_v7 = vunpack.c.h.bf16 %v12957_v41  ;;  %v12985_v28 = vld [vmem:[#allocation52_spill] sm:$0xff] }
 0x307   : > { %v12965_v57 = vunpack.c.l.bf16 %v12964_v63  ;;  %v5497_v29 = vadd.f32 %v12966_v42, %v5495_v50  ;;  %v6154_v0 = vadd.f32 %v6153_v54, %v6152_v49  ;;  %v6281_v60 = vadd.f32 %v6280_v26, %v6279_v8 }
 0x308   : > { %v6282_v34 = vsel %vm5374_vm1, %v12963_v7, 0.0  ;;  %v6388_v35 = vadd.f32 %v6387_v30, %v6386_v40  ;;  %v6023_v45 = vadd.f32 %v6022_v21, %v6021_v37  ;;  %v12968_v3 = vunpack.c.l.bf16 %v12967_v46  ;;  %v12986_v40 = vld [vmem:[#allocation185_spill] sm:$0xff] }
 0x309   : > { %v6389_v56 = vsel %vm5374_vm1, %v12965_v57, 0.0  ;;  %v12970_v53 = vunpack.c.l.bf16 %v12969_v36  ;;  %v12971_v55 = vunpack.c.h.bf16 %v12964_v63  ;;  %v5892_v9 = vadd.f32 %v5891_v12, %v5890_v17  ;;  %v12984_v17 = vld [vmem:[#allocation31_spill] sm:$0xff] }
 0x30a   : > { %v6155_v16 = vsel %vm5374_vm1, %v12968_v3, 0.0  ;;  %v12972_v11 = vunpack.c.h.bf16 %v12960_v27  ;;  %v6283_v6 = vadd.f32 %v6282_v34, %v6281_v60  ;;  %v6390_v19 = vadd.f32 %v6389_v56, %v6388_v35  ;;  %v12993_v3 = vld [vmem:[#allocation87_spill] sm:$0xff] }
 0x30b   : > { %v6284_v31 = vsel %vm5374_vm1, %v12970_v53, 0.0  ;;  %v6391_v51 = vsel %vm5374_vm1, %v12971_v55, 0.0  ;;  %v5630_v61 = vadd.f32 %v12973_v43, %v5628_v48  ;;  %v5761_v14 = vadd.f32 %v10766_v33, %v5759_v44  ;;  %v12996_v55 = vld [vmem:[#allocation68_spill] sm:$0xff] }
 0x30c   : > { %v6024_v50 = vsel %vm5374_vm1, %v12972_v11, 0.0  ;;  %v12974_v15 = vunpack.c.h.bf16 %v12969_v36  ;;  %v12976_v62 = vunpack.c.l.bf16 %v12975_v1  ;;  %v12977_v12 = vunpack.c.h.bf16 %v12954_v59  ;;  %v12982_v59 = vld [vmem:[#allocation118_spill] sm:$0xff]  ;;  %v12999_v43 = vld [vmem:[#allocation88_spill] sm:$0xff] }
 0x30d   : > { %v6156_v58 = vadd.f32 %v6155_v16, %v6154_v0  ;;  %v6285_v4 = vadd.f32 %v6284_v31, %v6283_v6  ;;  %v6392_v39 = vadd.f32 %v6391_v51, %v6390_v19  ;;  %v6025_v23 = vadd.f32 %v6024_v50, %v6023_v45  ;;  %v7870_v45 = vld [vmem:[%s8582_s4 + $0x7d0] sm:$0xff]   ;;  %v12997_v50 = vld [vmem:[#allocation27_spill] sm:$0xff] }
 0x30e   : > { %v6286_v38 = vsel %vm5374_vm1, %v12974_v15, 0.0  ;;  %v6393_v5 = vsel %vm5374_vm1, %v12976_v62, 0.0  ;;  %v5895_v32 = vsel %vm5374_vm1, %v12977_v12, 0.0  ;;  %v12978_v49 = vunpack.c.h.bf16 %v12967_v46  ;;  %v13000_v15 = vld [vmem:[#allocation63_spill] sm:$0xff] }
 0x30f   : > { %v12980_v13 = vunpack.c.l.bf16 %v12979_v20  ;;  %v12981_v18 = vunpack.c.h.bf16 %v12975_v1  ;;  %v5894_v41 = vadd.f32 %v5893_v2, %v5892_v9  ;;  %v12983_v25 = vunpack.c.l.bf16 %v12982_v59 }
 0x310   : > { %v6157_v33 = vsel %vm5374_vm1, %v12978_v49, 0.0  ;;  %v6287_v10 = vadd.f32 %v6286_v38, %v6285_v4  ;;  %v6394_v30 = vadd.f32 %v6393_v5, %v6392_v39  ;;  %v5499_v27 = vadd.f32 %v12984_v17, %v5497_v29  ;;  %v12990_v29 = vld [vmem:[#allocation150_spill] sm:$0xff] }
 0x311   : > { %v6288_v37 = vsel %vm5374_vm1, %v12980_v13, 0.0  ;;  %v6395_v54 = vsel %vm5374_vm1, %v12981_v18, 0.0  ;;  %v6026_v26 = vsel %vm5374_vm1, %v12983_v25, 0.0  ;;  %v5632_v21 = vadd.f32 %v12985_v28, %v5630_v61  ;;  %v7871_v18 = vld [vmem:[%s8582_s4 + $0x7d8] sm:$0xff]   ;;  %v13007_v25 = vld [vmem:[#allocation46_spill] sm:$0xff] }
 0x312   : > { %v5763_v8 = vadd.f32 %v10801_v47, %v5761_v14  ;;  %v12987_v24 = vunpack.c.l.bf16 %v12986_v40  ;;  %v6158_v44 = vadd.f32 %v6157_v33, %v6156_v58  ;;  %v6289_v7 = vadd.f32 %v6288_v37, %v6287_v10  ;;  %v13005_v33 = vld [vmem:[#allocation119_spill] sm:$0xff] }
 0x313   : > { %v12988_v2 = vunpack.c.h.bf16 %v12979_v20  ;;  %v6396_v63 = vadd.f32 %v6395_v54, %v6394_v30  ;;  %v12989_v57 = vunpack.c.h.bf16 %v12670_v22  ;;  %v6027_v42 = vadd.f32 %v6026_v26, %v6025_v23 }
 0x314   : > { %v6397_v48 = vsel %vm5374_vm1, %v12987_v24, 0.0  ;;  %v12991_v0 = vunpack.c.l.bf16 %v12990_v29  ;;  %v12992_v60 = vunpack.c.h.bf16 %v12986_v40  ;;  %v5896_v46 = vadd.f32 %v5895_v32, %v5894_v41  ;;  %v13010_v24 = vld [vmem:[#allocation151_spill] sm:$0xff] }
 0x315   : > { %v6290_v34 = vsel %vm5374_vm1, %v12988_v2, 0.0  ;;  %v5766_v56 = vsel %vm5374_vm1, %v12989_v57, 0.0  ;;  %v12994_v16 = vunpack.c.l.bf16 %v12993_v3  ;;  %v12995_v53 = vunpack.c.h.bf16 %v12982_v59 }
 0x316   : > { %v6159_v47 = vsel %vm5374_vm1, %v12991_v0, 0.0  ;;  %v6399_v35 = vsel %vm5374_vm1, %v12992_v60, 0.0  ;;  %v6398_v31 = vadd.f32 %v6397_v48, %v6396_v63  ;;  %v5501_v51 = vadd.f32 %v12996_v55, %v5499_v27 }
 0x317   : > { %v5897_v36 = vsel %vm5374_vm1, %v12994_v16, 0.0  ;;  %v6028_v22 = vsel %vm5374_vm1, %v12995_v53, 0.0  ;;  %v5765_v9 = vadd.f32 %v10859_v52, %v5763_v8  ;;  %v6291_v11 = vadd.f32 %v6290_v34, %v6289_v7 }
 0x318   : > { %v12998_v6 = vunpack.c.l.bf16 %v12997_v50  ;;  %v5634_v61 = vadd.f32 %v12999_v43, %v5632_v21  ;;  %v6160_v14 = vadd.f32 %v6159_v47, %v6158_v44  ;;  %v13001_v38 = vunpack.c.l.bf16 %v13000_v15 }
 0x319   : > { %v6400_v62 = vadd.f32 %v6399_v35, %v6398_v31  ;;  %v7599_v5 = vunpack.c.l.bf16 %v7870_v45  ;;  %v6029_v12 = vadd.f32 %v6028_v22, %v6027_v42  ;;  %v13002_v32 = vunpack.c.h.bf16 %v12990_v29  ;;  %v7872_v29 = vld [vmem:[%s8582_s4 + $0x7e0] sm:$0xff]  }
 0x31a   : > { %v6401_v19 = vsel %vm5374_vm1, %v12998_v6, 0.0  ;;  %v6292_v1 = vsel %vm5374_vm1, %v13001_v38, 0.0  ;;  %v13003_v52 = vunpack.c.h.bf16 %v12997_v50  ;;  %v5898_v39 = vadd.f32 %v5897_v36, %v5896_v46 }
 0x31b   : > { %v6161_v58 = vsel %vm5374_vm1, %v13002_v32, 0.0  ;;  %v13004_v23 = vunpack.c.h.bf16 %v12993_v3  ;;  %v13006_v20 = vunpack.c.l.bf16 %v13005_v33  ;;  %v6402_v37 = vadd.f32 %v6401_v19, %v6400_v62  ;;  %v13014_v3 = vld [vmem:[#allocation173_spill] sm:$0xff] }
 0x31c   : > { %v6403_v4 = vsel %vm5374_vm1, %v13003_v52, 0.0  ;;  %v5502_v54 = vrot.slane %v5501_v51, 4  ;;  %v5767_v41 = vadd.f32 %v5766_v56, %v5765_v9  ;;  %v6293_v59 = vadd.f32 %v6292_v1, %v6291_v11 }
 0x31d   : > { %v5899_v49 = vsel %vm5374_vm1, %v13004_v23, 0.0  ;;  %v6030_v13 = vsel %vm5374_vm1, %v13006_v20, 0.0  ;;  %v13008_v26 = vunpack.c.l.bf16 %v13007_v25  ;;  %v5635_v30 = vrot.slane %v5634_v61, 4 }
 0x31e   : > { %v6162_v17 = vadd.f32 %v6161_v58, %v6160_v14  ;;  %v13009_v27 = vunpack.c.h.bf16 %v13000_v15  ;;  %v6404_v21 = vadd.f32 %v6403_v4, %v6402_v37  ;;  %v7600_v8 = vunpack.c.h.bf16 %v7870_v45  ;;  %v7873_v15 = vld [vmem:[%s8582_s4 + $0x7e8] sm:$0xff]  }
 0x31f   : > { %v6405_v10 = vsel %vm5374_vm1, %v13008_v26, 0.0  ;;  %v6031_v40 = vadd.f32 %v6030_v13, %v6029_v12  ;;  %v13011_v48 = vunpack.c.l.bf16 %v13010_v24  ;;  %v13012_v7 = vunpack.c.h.bf16 %v13007_v25  ;;  %v7874_v13 = vld [vmem:[%s8582_s4 + $0x7f0] sm:$0xff]  }
 0x320   : > { %v6294_v28 = vsel %vm5374_vm1, %v13009_v27, 0.0  ;;  %v7603_v34 = vunpack.c.l.bf16 %v7871_v18  ;;  %v5900_v63 = vadd.f32 %v5899_v49, %v5898_v39  ;;  %v13013_v57 = vunpack.c.h.bf16 %v13005_v33 }
 0x321   : > { %v6163_v44 = vsel %vm5374_vm1, %v13011_v48, 0.0  ;;  %v6407_v2 = vsel %vm5374_vm1, %v13012_v7, 0.0  ;;  %v6406_v42 = vadd.f32 %v6405_v10, %v6404_v21  ;;  %v5503_v0 = vadd.f32 %v5502_v54, %v5501_v51 }
 0x322   : > { %v6032_v56 = vsel %vm5374_vm1, %v13013_v57, 0.0  ;;  %v5768_v47 = vrot.slane %v5767_v41, 4  ;;  %v6295_v60 = vadd.f32 %v6294_v28, %v6293_v59  ;;  %v6409_v35 = vsel %vm5374_vm1, %v7599_v5, 0.0 }
 0x323   : > { %v5636_v45 = vadd.f32 %v5635_v30, %v5634_v61  ;;  %v6164_v46 = vadd.f32 %v6163_v44, %v6162_v17  ;;  %v13015_v16 = vunpack.c.l.bf16 %v13014_v3  ;;  %v6408_v53 = vadd.f32 %v6407_v2, %v6406_v42 }
 0x324   : > { %v7604_v22 = vunpack.c.h.bf16 %v7871_v18  ;;  %v6033_v31 = vadd.f32 %v6032_v56, %v6031_v40  ;;  %v13016_v55 = vunpack.c.h.bf16 %v13010_v24  ;;  %v6411_v51 = vsel %vm5374_vm1, %v7600_v8, 0.0  ;;  %v7875_v8 = vld [vmem:[%s8582_s4 + $0x7f8] sm:$0xff]  }
 0x325   : > { %v6296_v36 = vsel %vm5374_vm1, %v13015_v16, 0.0  ;;  %v7607_v11 = vunpack.c.l.bf16 %v7872_v29  ;;  %v5901_v50 = vrot.slane %v5900_v63, 4  ;;  %v6410_v6 = vadd.f32 %v6409_v35, %v6408_v53 }
 0x326   : > { %v6165_v9 = vsel %vm5374_vm1, %v13016_v55, 0.0  ;;  %v5504_v19 = vrot.slane %v5503_v0, 2  ;;  %v5769_v43 = vadd.f32 %v5768_v47, %v5767_v41  ;;  %v6297_v61 = vadd.f32 %v6296_v36, %v6295_v60 }
 0x327   : > { %v6413_v14 = vsel %vm5374_vm1, %v7603_v34, 0.0  ;;  %v5637_v38 = vrot.slane %v5636_v45, 2  ;;  %v6166_v1 = vadd.f32 %v6165_v9, %v6164_v46  ;;  %v13017_v62 = vunpack.c.h.bf16 %v13014_v3 }
 0x328   : > { %v6412_v12 = vadd.f32 %v6411_v51, %v6410_v6  ;;  %v7608_v32 = vunpack.c.h.bf16 %v7872_v29  ;;  %v6034_v58 = vrot.slane %v6033_v31, 4  ;;  %v6415_v52 = vsel %vm5374_vm1, %v7604_v22, 0.0 }
 0x329   : > { %v6298_v5 = vsel %vm5374_vm1, %v13017_v62, 0.0  ;;  %v5902_v4 = vadd.f32 %v5901_v50, %v5900_v63  ;;  %v7611_v23 = vunpack.c.l.bf16 %v7873_v15  ;;  %v5770_v49 = vrot.slane %v5769_v43, 2 }
 0x32a   : > { %v6414_v39 = vadd.f32 %v6413_v14, %v6412_v12  ;;  %v6299_v33 = vadd.f32 %v6298_v5, %v6297_v61  ;;  %v6417_v20 = vsel %vm5374_vm1, %v7607_v11, 0.0  ;;  %v5505_v37 = vadd.f32 %v5504_v19, %v5503_v0 }
 0x32b   : > { %v5638_v18 = vadd.f32 %v5637_v38, %v5636_v45  ;;  %v6167_v54 = vrot.slane %v6166_v1, 4  ;;  %v7612_v59 = vunpack.c.h.bf16 %v7873_v15  ;;  %v6035_v25 = vadd.f32 %v6034_v58, %v6033_v31 }
 0x32c   : > { %v6416_v41 = vadd.f32 %v6415_v52, %v6414_v39  ;;  %v6419_v26 = vsel %vm5374_vm1, %v7608_v32, 0.0  ;;  %v5903_v10 = vrot.slane %v5902_v4, 2  ;;  %v7615_v17 = vunpack.c.l.bf16 %v7874_v13 }
 0x32d   : > { %v5771_v27 = vadd.f32 %v5770_v49, %v5769_v43  ;;  %v6300_v28 = vrot.slane %v6299_v33, 4  ;;  %v6421_v21 = vsel %vm5374_vm1, %v7611_v23, 0.0  ;;  %v5506_v40 = vrot.slane %v5505_v37, 1 }
 0x32e   : > { %v6418_v30 = vadd.f32 %v6417_v20, %v6416_v41  ;;  %v5639_v24 = vrot.slane %v5638_v18, 1  ;;  %v6168_v48 = vadd.f32 %v6167_v54, %v6166_v1  ;;  %v7616_v7 = vunpack.c.h.bf16 %v7874_v13  ;;  %v4349_v13 = vld [vmem:[#allocation2] sm:$0xff] }
 0x32f   : > { %v6036_v2 = vrot.slane %v6035_v25, 2  ;;  %v6423_v34 = vsel %vm5374_vm1, %v7612_v59, 0.0  ;;  %v5904_v63 = vadd.f32 %v5903_v10, %v5902_v4  ;;  %v7619_v56 = vunpack.c.l.bf16 %v7875_v8 }
 0x330   : > { %v6420_v44 = vadd.f32 %v6419_v26, %v6418_v30  ;;  %v5772_v42 = vrot.slane %v5771_v27, 1  ;;  %v6301_v29 = vadd.f32 %v6300_v28, %v6299_v33  ;;  %v6425_v0 = vsel %vm5374_vm1, %v7615_v17, 0.0 }
 0x331   : > { %v5507_v47 = vadd.f32 %v5506_v40, %v5505_v37  ;;  %v5640_v60 = vadd.f32 %v5639_v24, %v5638_v18  ;;  %v6169_v35 = vrot.slane %v6168_v48, 2  ;;  %v7620_v46 = vunpack.c.h.bf16 %v7875_v8 }
 0x332   : > { %v6422_v57 = vadd.f32 %v6421_v21, %v6420_v44  ;;  %v6037_v3 = vadd.f32 %v6036_v2, %v6035_v25  ;;  %v6427_v16 = vsel %vm5374_vm1, %v7616_v7, 0.0  ;;  %v5905_v36 = vrot.slane %v5904_v63, 1 }
 0x333   : > { %v5773_v22 = vadd.f32 %v5772_v42, %v5771_v27  ;;  %v6302_v31 = vrot.slane %v6301_v29, 2  ;;  %v6429_v55 = vsel %vm5374_vm1, %v7619_v56, 0.0  ;;  %v6170_v9 = vadd.f32 %v6169_v35, %v6168_v48 }
 0x334   : > { %v6424_v45 = vadd.f32 %v6423_v34, %v6422_v57  ;;  %v6448_v11 = vsel %vm6447_vm2, %v5640_v60, %v5507_v47  ;;  %v6038_v50 = vrot.slane %v6037_v3, 1  ;;  %v6431_v6 = vsel %vm5374_vm1, %v7620_v46, 0.0 }
 0x335   : > { %v5906_v19 = vadd.f32 %v5905_v36, %v5904_v63  ;;  %v6303_v61 = vadd.f32 %v6302_v31, %v6301_v29  ;;  %v6450_v14 = vsel %vm6449_vm3, %v5773_v22, %v6448_v11  ;;  %v6171_v15 = vrot.slane %v6170_v9, 1 }
 0x336   : > { %v6426_v53 = vadd.f32 %v6425_v0, %v6424_v45  ;;  %v6039_v1 = vadd.f32 %v6038_v50, %v6037_v3 }
 0x337   : > { %v6452_v5 = vsel %vm6451_vm4, %v5906_v19, %v6450_v14  ;;  %v6304_v12 = vrot.slane %v6303_v61, 1  ;;  %v6172_v32 = vadd.f32 %v6171_v15, %v6170_v9 }
 0x338   : > { %v6428_v51 = vadd.f32 %v6427_v16, %v6426_v53  ;;  %v6454_v52 = vsel %vm6453_vm5, %v6039_v1, %v6452_v5 }
 0x339   : > { %v6305_v39 = vadd.f32 %v6304_v12, %v6303_v61  ;;  %v6456_v49 = vsel %vm6455_vm6, %v6172_v32, %v6454_v52 }
 0x33a   : > { %v6430_v43 = vadd.f32 %v6429_v55, %v6428_v51 }
 0x33b   : > { %v6458_v20 = vsel %vm6457_vm7, %v6305_v39, %v6456_v49 }
 0x33c   : > { %v6432_v38 = vadd.f32 %v6431_v6, %v6430_v43 }
 0x33e   : > { %v6433_v62 = vrot.slane %v6432_v38, 4 }
 0x340   : > { %v6434_v58 = vadd.f32 %v6433_v62, %v6432_v38 }
 0x342   : > { %v6435_v4 = vrot.slane %v6434_v58, 2 }
 0x344   : > { %v6436_v23 = vadd.f32 %v6435_v4, %v6434_v58 }
 0x346   : > { %v6437_v33 = vrot.slane %v6436_v23, 1 }
 0x348   : > { %v6438_v37 = vadd.f32 %v6437_v33, %v6436_v23 }
 0x349   : > { %6467 = sbr.rel (%p6589_p10) target bundleno = 982 (0x3d6), region = 92 }
 0x34a   : > { %v6460_v18 = vsel %vm6459_vm8, %v6438_v37, %v6458_v20 }
 0x34b   : > { %v6462_v54 = vadd.f32 %v6460_v18, %v4349_v13 }
 0x34d   : > { %6463 = vst.msk [vmem:[#allocation2] sm:$0xff] %vm5374_vm1, %v6462_v54 }
 0x34e   : > { %v6469_v41 = vld [vmem:[%s11689_s1] sm:$0xf]  ;;  %vm6477_vm9 = vcmask 1043456  }
 0x34f   : > { %6590 = vmatpush.msk.msra.mxu0 %vm6477_vm9, %v6469_v41  ;;  %v7924_v25 = vld [vmem:[%s11690_s2] ss:$0 sm:$0xff] }
 0x354   : > { %v6468_v59 = vld [vmem:[#allocation2] sm:$0xff] }
 0x355   : > { %6591 = vmatmul.msk.f32.vlgmr.msra.gmra.mxu0 %vm5374_vm1, %v6468_v59 }
 0x3d2   : > { %v6498_v26 = vpop.f32.mrf.mxu0 }
 0x3d3   : > { %v6499_v10 = vadd.f32 %v7924_v25, %v6498_v26 }
 0x3d5   : > { %6501 = vst [vmem:[#allocation4] sm:$0xff] %v6499_v10 }
 0x3d6 PF: > { %p7880_p11 = scmp.eq.s32.totalorder %s6580_s17, 1  ;;  %s6512_s11 = sshll.u32 %s11691_s3, 4  ;;  %s6513_s11 = int_to_ptr.hbm [resolvable:$true] %s6512_s11 }
 0x3d7   : > { %s7998_s12 = smov [#allocation4]  }
 0x3d8   : > { %s6510_s14 = sshll.u32 %s7998_s12, 4  ;;  %s6511_s14 = int_to_ptr.vmem [resolvable:$true] %s6510_s14 }
 0x3d9   : > { %7877 = dma.vmem_to_hbm [thread:$0]  (%p7880_p11), %s6511_s14, 128, %s6513_s11, [#allocation5]  }
 0x3da   : > { %7974 = dma.done.wait (%p7880_p11), [#allocation5], 128  }
 0x3db   : > { %7976 = vsyncadd (%p7880_p11), [#allocation5], 4294967168 }
 0x3dc PF: > { %s14_s16 = sadd.s32 1, %s7995_s16   ;;  %s13018_s12 = smov %s7983_s13 }
 0x3dd   : > { %p11_p12 = scmp.ge.s32.totalorder %s14_s16, 4   ;;  %s13019_s13 = smov %s8055_s21 }
 0x3de   : > { %s13020_s14 = smov %s7991_s15  ;;  %s13021_s15 = smov %s13023_s18 }
 0x3df   :  { %13 = sbr.rel (!%p11_p12) target bundleno = 3 (0x3), region = 129 }
 0x3e4   :  { %6526 = vsyncpa [#allocation5], 1 }
 0x3e5   :  { %6528 = vsyncpa [#allocation5 + $0x1], 1 }

</bundles_post_ra>
